<compile_context>
chip_gen: v7x
topology: tpu7x:2x2x1
jax: 0.10.0
libtpu: 0.0.40
codegen_flags: <defaults>
</compile_context>

<pallas_src>
import math
import functools

import jax
import jax.numpy as jnp
from jax.experimental import pallas as pl
from jax.experimental.pallas import tpu as pltpu

# ----------------------------- model config ----------------------------------
IMAGE_H = 16
IMAGE_W = 16
CHANNEL = 4
PATCH = (4, 4)
HIDDEN = 32
NUM_HEAD = 4
NUM_LAYERS = 2
DIM_FF = 2048            # nn.TransformerEncoderLayer default dim_feedforward
NUM_CLASSES = 10
EPS = 1e-5               # PyTorch default layer_norm_eps

NUM_PATCHES = (IMAGE_H // PATCH[0]) * (IMAGE_W // PATCH[1])
SEQ = NUM_PATCHES + 1
FLAT_PATCH = PATCH[0] * PATCH[1] * CHANNEL
HEAD_DIM = HIDDEN // NUM_HEAD

FF_CHUNK = 512                     # DIM_FF tile streamed per grid step
FFN_WEIGHT_DTYPE = jnp.bfloat16    # set to jnp.float32 for exact f32 parity


# ------------------------------- kernel ---------------------------------------
def _layernorm(x, gamma, beta):
    mu = jnp.mean(x, axis=-1, keepdims=True)
    var = jnp.mean((x - mu) ** 2, axis=-1, keepdims=True)
    return (x - mu) * jax.lax.rsqrt(var + EPS) * gamma + beta


def vit_kernel(pp_ref, wemb_ref, posf_ref, bias_ref,
               wq_ref, wk_ref, wv_ref, bq_ref, bk_ref, bv_ref,
               wo_ref, bo_ref, g1_ref, be1_ref, g2_ref, be2_ref, b2_ref,
               w1_ref, b1_ref, w2t_ref, wc_ref, bc_ref,
               o_ref,
               x_scr, h1_scr, acc_scr,
               *, batch, seq, num_heads, head_dim, ffn_dtype):
    l = pl.program_id(0)            # layer index
    c = pl.program_id(1)            # FFN chunk index
    last_l = pl.num_programs(0) - 1
    last_c = pl.num_programs(1) - 1

    # ---- patch embedding + CLS + positional embedding (single aligned store) ----
    # pp has a zero row per sequence at the CLS position and posf carries
    # (cls + pos[0]) / (pos[i] + b_emb), so one matmul + one add builds x.
    @pl.when(jnp.logical_and(l == 0, c == 0))
    def _():
        x_scr[...] = (jnp.dot(pp_ref[...], wemb_ref[...],
                              preferred_element_type=jnp.float32)
                      + posf_ref[...])

    # ---- multi-head self-attention + post-norm1 (once per layer, at chunk 0) ----
    @pl.when(c == 0)
    def _():
        x = x_scr[...]                               # (M, D) f32, M = B * SEQ
        m, d = x.shape
        q = jnp.dot(x, wq_ref[0], preferred_element_type=jnp.float32) + bq_ref[0]
        k = jnp.dot(x, wk_ref[0], preferred_element_type=jnp.float32) + bk_ref[0]
        v = jnp.dot(x, wv_ref[0], preferred_element_type=jnp.float32) + bv_ref[0]

        lane = jax.lax.broadcasted_iota(jnp.int32, (m, d), 1)
        attn = jnp.zeros((m, d), jnp.float32)
        for h in range(num_heads):
            head_mask = jnp.logical_and(lane >= h * head_dim,
                                        lane < (h + 1) * head_dim)
            qm = jnp.where(head_mask, q, 0.0)        # restrict contraction to head h
            s = jax.lax.dot_general(qm, k, (((1,), (1,)), ((), ())),
                                    preferred_element_type=jnp.float32)   # (M, M)
            s = s + bias_ref[...]                    # block-diag mask over folded batch
            s = s - jnp.max(s, axis=-1, keepdims=True)
            p = jnp.exp(s)
            p = p * pl.reciprocal(jnp.sum(p, axis=-1, keepdims=True), approx=True)
            vm = jnp.where(head_mask, v, 0.0)        # head output lands in its own lanes
            attn = attn + jnp.dot(p, vm, preferred_element_type=jnp.float32)
        attn = jnp.dot(attn, wo_ref[0], preferred_element_type=jnp.float32) + bo_ref[0]

        h1_scr[...] = _layernorm(x + attn, g1_ref[0], be1_ref[0])   # norm_first=False
        acc_scr[...] = jnp.zeros_like(acc_scr)

    # ---- FFN chunk: acc += relu(h1 @ w1_c + b1_c) @ w2_c (bf16 MXU, f32 acc) ----
    f = (jnp.dot(h1_scr[...].astype(ffn_dtype), w1_ref[0],
                 preferred_element_type=jnp.float32) + b1_ref[0])
    f = jnp.maximum(f, 0.0).astype(ffn_dtype)
    acc_scr[...] += jax.lax.dot_general(f, w2t_ref[0], (((1,), (1,)), ((), ())),
                                        preferred_element_type=jnp.float32)

    # ---- finish the layer (post-norm2) --------------------------------------
    @pl.when(c == last_c)
    def _():
        x_scr[...] = _layernorm(h1_scr[...] + acc_scr[...] + b2_ref[0],
                                g2_ref[0], be2_ref[0])

    # ---- classifier head on the CLS token of every sequence ------------------
    @pl.when(jnp.logical_and(l == last_l, c == last_c))
    def _():
        xf = x_scr[...]
        cls = jnp.concatenate([xf[b * seq:b * seq + 1, :] for b in range(batch)],
                              axis=0)                                    # (B, D)
        o_ref[...] = (jnp.dot(cls, wc_ref[...], preferred_element_type=jnp.float32)
                      + bc_ref[...])


# ------------------------------- weight prep -----------------------------------
def prepare_params(params, ffn_dtype=FFN_WEIGHT_DTYPE):
    """One-time weight prep: transposes, qkv split, scale/bias folding, dtype cast."""
    d = HIDDEN
    scale = 1.0 / math.sqrt(HEAD_DIM)

    w_emb = params["lin_w"].T                                    # (FLAT, D)
    row0 = (params["cls"] + params["pos"][0]).reshape(1, d)      # cls + pos[0]
    rest = params["pos"][1:] + params["lin_b"][None, :]          # pos[1:] + b_emb
    pos_seq = jnp.concatenate([row0, rest], axis=0)              # (SEQ, D)

    def stack(fn):
        return jnp.stack([fn(p) for p in params["layers"]], axis=0)

    wq = stack(lambda p: p["in_proj_w"][:d].T * scale)           # 1/sqrt(dh) folded
    wk = stack(lambda p: p["in_proj_w"][d:2 * d].T)
    wv = stack(lambda p: p["in_proj_w"][2 * d:].T)
    bq = stack(lambda p: (p["in_proj_b"][:d] * scale).reshape(1, d))
    bk = stack(lambda p: p["in_proj_b"][d:2 * d].reshape(1, d))
    bv = stack(lambda p: p["in_proj_b"][2 * d:].reshape(1, d))
    wo = stack(lambda p: p["out_proj_w"].T)                      # (L, D, D)
    bo = stack(lambda p: p["out_proj_b"].reshape(1, d))
    g1 = stack(lambda p: p["norm1_w"].reshape(1, d))
    be1 = stack(lambda p: p["norm1_b"].reshape(1, d))
    g2 = stack(lambda p: p["norm2_w"].reshape(1, d))
    be2 = stack(lambda p: p["norm2_b"].reshape(1, d))
    b2 = stack(lambda p: p["lin2_b"].reshape(1, d))
    w1 = stack(lambda p: p["lin1_w"].T).astype(ffn_dtype)        # (L, D, FF)
    b1 = stack(lambda p: p["lin1_b"].reshape(1, DIM_FF))
    w2t = stack(lambda p: p["lin2_w"]).astype(ffn_dtype)         # (L, D, FF), used as rhs^T
    wc = params["clf_w"].T                                       # (D, NC)
    bc = params["clf_b"].reshape(1, NUM_CLASSES)

    return dict(w_emb=w_emb, pos_seq=pos_seq,
                wq=wq, wk=wk, wv=wv, bq=bq, bk=bk, bv=bv, wo=wo, bo=bo,
                g1=g1, be1=be1, g2=g2, be2=be2, b2=b2,
                w1=w1, b1=b1, w2t=w2t, wc=wc, bc=bc)


# ------------------------------- forward wrapper --------------------------------
def vision_transformer_forward(x, prepped):
    """x: (B, C, H, W) float32 -> logits (B, NUM_CLASSES)."""
    B, C, H, W = x.shape
    assert (C, H, W) == (CHANNEL, IMAGE_H, IMAGE_W)
    ph, pw = PATCH
    m = B * SEQ
    n_chunks = DIM_FF // FF_CHUNK

    # patchify (matches torch view / permute(0,2,4,3,5,1) / view); prepend a zero
    # row per sequence so the CLS/positional rows fall out of the same matmul.
    patches = x.reshape(B, C, H // ph, ph, W // pw, pw)
    patches = jnp.transpose(patches, (0, 2, 4, 3, 5, 1)).reshape(B, NUM_PATCHES, FLAT_PATCH)
    pp = jnp.concatenate([jnp.zeros((B, 1, FLAT_PATCH), patches.dtype), patches],
                         axis=1).reshape(m, FLAT_PATCH)
    posf = jnp.tile(prepped["pos_seq"], (B, 1))                  # (M, D)

    # additive block-diagonal mask: queries attend only within their own sequence
    seq_id = jnp.arange(m, dtype=jnp.int32) // SEQ
    attn_bias = jnp.where(seq_id[:, None] == seq_id[None, :], 0.0, -1e30).astype(jnp.float32)

    inputs = (pp, prepped["w_emb"], posf, attn_bias,
              prepped["wq"], prepped["wk"], prepped["wv"],
              prepped["bq"], prepped["bk"], prepped["bv"],
              prepped["wo"], prepped["bo"],
              prepped["g1"], prepped["be1"], prepped["g2"], prepped["be2"], prepped["b2"],
              prepped["w1"], prepped["b1"], prepped["w2t"],
              prepped["wc"], prepped["bc"])

    def full_spec(a):
        nd = a.ndim
        return pl.BlockSpec(a.shape, lambda l, c, nd=nd: (0,) * nd)

    def layer_spec(a):
        nd = a.ndim
        return pl.BlockSpec((1,) + a.shape[1:], lambda l, c, nd=nd: (l,) + (0,) * (nd - 1))

    in_specs = [
        full_spec(pp), full_spec(prepped["w_emb"]), full_spec(posf), full_spec(attn_bias),
        layer_spec(prepped["wq"]), layer_spec(prepped["wk"]), layer_spec(prepped["wv"]),
        layer_spec(prepped["bq"]), layer_spec(prepped["bk"]), layer_spec(prepped["bv"]),
        layer_spec(prepped["wo"]), layer_spec(prepped["bo"]),
        layer_spec(prepped["g1"]), layer_spec(prepped["be1"]),
        layer_spec(prepped["g2"]), layer_spec(prepped["be2"]), layer_spec(prepped["b2"]),
        # FFN weights streamed per (layer, chunk): overlaps HBM DMA with compute
        pl.BlockSpec((1, HIDDEN, FF_CHUNK), lambda l, c: (l, 0, c)),   # w1
        pl.BlockSpec((1, 1, FF_CHUNK), lambda l, c: (l, 0, c)),       # b1
        pl.BlockSpec((1, HIDDEN, FF_CHUNK), lambda l, c: (l, 0, c)),  # w2 (transposed)
        full_spec(prepped["wc"]), full_spec(prepped["bc"]),
    ]

    weight_bytes = sum(int(a.size) * a.dtype.itemsize for a in inputs)
    flops = (2 * m * FLAT_PATCH * HIDDEN
             + NUM_LAYERS * (4 * 2 * m * HIDDEN * HIDDEN
                             + NUM_HEAD * 2 * m * m * 2 * HIDDEN
                             + 2 * 2 * m * HIDDEN * DIM_FF)
             + 2 * B * HIDDEN * NUM_CLASSES)
    cost = pl.CostEstimate(flops=flops,
                           transcendentals=NUM_LAYERS * NUM_HEAD * m * m,
                           bytes_accessed=weight_bytes + 4 * B * NUM_CLASSES)

    kernel = functools.partial(vit_kernel, batch=B, seq=SEQ, num_heads=NUM_HEAD,
                               head_dim=HEAD_DIM, ffn_dtype=prepped["w1"].dtype)

    out = pl.pallas_call(
        kernel,
        out_shape=jax.ShapeDtypeStruct((B, NUM_CLASSES), jnp.float32),
        grid=(NUM_LAYERS, n_chunks),
        in_specs=in_specs,
        out_specs=pl.BlockSpec((B, NUM_CLASSES), lambda l, c: (0, 0)),
        scratch_shapes=[pltpu.VMEM((m, HIDDEN), jnp.float32),   # x (activation carry)
                        pltpu.VMEM((m, HIDDEN), jnp.float32),   # h1 (FFN input / residual)
                        pltpu.VMEM((m, HIDDEN), jnp.float32)],  # FFN accumulator
        compiler_params=pltpu.CompilerParams(
            dimension_semantics=("arbitrary", "arbitrary")),
        cost_estimate=cost,
    )(*inputs)
    return out


# ------------------------------- param init ------------------------------------
def init_params(key):
    ks = iter(jax.random.split(key, 8 + 8 * NUM_LAYERS))
    nk = lambda: next(ks)
    s = 0.02
    params = {
        "lin_w": s * jax.random.normal(nk(), (HIDDEN, FLAT_PATCH), jnp.float32),
        "lin_b": jnp.zeros((HIDDEN,), jnp.float32),
        "pos": s * jax.random.normal(nk(), (SEQ, HIDDEN), jnp.float32),
        "cls": jax.random.normal(nk(), (HIDDEN,), jnp.float32),
        "clf_w": s * jax.random.normal(nk(), (NUM_CLASSES, HIDDEN), jnp.float32),
        "clf_b": jnp.zeros((NUM_CLASSES,), jnp.float32),
        "layers": [],
    }
    for _ in range(NUM_LAYERS):
        params["layers"].append({
            "in_proj_w": s * jax.random.normal(nk(), (3 * HIDDEN, HIDDEN), jnp.float32),
            "in_proj_b": jnp.zeros((3 * HIDDEN,), jnp.float32),
            "out_proj_w": s * jax.random.normal(nk(), (HIDDEN, HIDDEN), jnp.float32),
            "out_proj_b": jnp.zeros((HIDDEN,), jnp.float32),
            "lin1_w": s * jax.random.normal(nk(), (DIM_FF, HIDDEN), jnp.float32),
            "lin1_b": jnp.zeros((DIM_FF,), jnp.float32),
            "lin2_w": s * jax.random.normal(nk(), (HIDDEN, DIM_FF), jnp.float32),
            "lin2_b": jnp.zeros((HIDDEN,), jnp.float32),
            "norm1_w": jnp.ones((HIDDEN,), jnp.float32),
            "norm1_b": jnp.zeros((HIDDEN,), jnp.float32),
            "norm2_w": jnp.ones((HIDDEN,), jnp.float32),
            "norm2_b": jnp.zeros((HIDDEN,), jnp.float32),
        })
    return params


if __name__ == "__main__":
    key = jax.random.PRNGKey(0)
    k_params, k_x = jax.random.split(key)
    params = init_params(k_params)
    prepped = prepare_params(params)        # one-time layout prep (transposes/splits/scale)
    x = jax.random.normal(k_x, (2, CHANNEL, IMAGE_H, IMAGE_W), jnp.float32)

    fwd = jax.jit(vision_transformer_forward)
    out = jax.block_until_ready(fwd(x, prepped))
    assert out.shape == (2, NUM_CLASSES), out.shape
    assert bool(jnp.all(jnp.isfinite(out)))
    print("KERNEL_OK")
</pallas_src>

<mosaic_0001>
module attributes {stable_mosaic.version = 11 : i64} {
  func.func @vit_kernel(%arg0: i32, %arg1: i32, %arg2: memref<34x64xf32, #tpu.memory_space<vmem>>, %arg3: memref<64x32xf32, #tpu.memory_space<vmem>>, %arg4: memref<34x32xf32, #tpu.memory_space<vmem>>, %arg5: memref<34x34xf32, #tpu.memory_space<vmem>>, %arg6: memref<1x32x32xf32, #tpu.memory_space<vmem>>, %arg7: memref<1x32x32xf32, #tpu.memory_space<vmem>>, %arg8: memref<1x32x32xf32, #tpu.memory_space<vmem>>, %arg9: memref<1x1x32xf32, #tpu.memory_space<vmem>>, %arg10: memref<1x1x32xf32, #tpu.memory_space<vmem>>, %arg11: memref<1x1x32xf32, #tpu.memory_space<vmem>>, %arg12: memref<1x32x32xf32, #tpu.memory_space<vmem>>, %arg13: memref<1x1x32xf32, #tpu.memory_space<vmem>>, %arg14: memref<1x1x32xf32, #tpu.memory_space<vmem>>, %arg15: memref<1x1x32xf32, #tpu.memory_space<vmem>>, %arg16: memref<1x1x32xf32, #tpu.memory_space<vmem>>, %arg17: memref<1x1x32xf32, #tpu.memory_space<vmem>>, %arg18: memref<1x1x32xf32, #tpu.memory_space<vmem>>, %arg19: memref<1x32x512xbf16, #tpu.memory_space<vmem>>, %arg20: memref<1x1x512xf32, #tpu.memory_space<vmem>>, %arg21: memref<1x32x512xbf16, #tpu.memory_space<vmem>>, %arg22: memref<32x10xf32, #tpu.memory_space<vmem>>, %arg23: memref<1x10xf32, #tpu.memory_space<vmem>>, %arg24: memref<2x10xf32, #tpu.memory_space<vmem>>, %arg25: memref<34x32xf32, #tpu.memory_space<vmem>>, %arg26: memref<34x32xf32, #tpu.memory_space<vmem>>, %arg27: memref<34x32xf32, #tpu.memory_space<vmem>>) attributes {dimension_semantics = [#tpu.dimension_semantics<arbitrary>, #tpu.dimension_semantics<arbitrary>], iteration_bounds = array<i64: 2, 4>, scalar_prefetch = 0 : i64, scratch_operands = 3 : i64, tpu.core_type = #tpu.core_type<tc>, window_params = [{pipeline_mode = #tpu.pipeline_mode<synchronous>, transform_indices = @transform_0, window_bounds = array<i64: 34, 64>}, {pipeline_mode = #tpu.pipeline_mode<synchronous>, transform_indices = @transform_1, window_bounds = array<i64: 64, 32>}, {pipeline_mode = #tpu.pipeline_mode<synchronous>, transform_indices = @transform_2, window_bounds = array<i64: 34, 32>}, {pipeline_mode = #tpu.pipeline_mode<synchronous>, transform_indices = @transform_3, window_bounds = array<i64: 34, 34>}, {transform_indices = @transform_4, window_bounds = array<i64: 1, 32, 32>}, {transform_indices = @transform_5, window_bounds = array<i64: 1, 32, 32>}, {transform_indices = @transform_6, window_bounds = array<i64: 1, 32, 32>}, {transform_indices = @transform_7, window_bounds = array<i64: 1, 1, 32>}, {transform_indices = @transform_8, window_bounds = array<i64: 1, 1, 32>}, {transform_indices = @transform_9, window_bounds = array<i64: 1, 1, 32>}, {transform_indices = @transform_10, window_bounds = array<i64: 1, 32, 32>}, {transform_indices = @transform_11, window_bounds = array<i64: 1, 1, 32>}, {transform_indices = @transform_12, window_bounds = array<i64: 1, 1, 32>}, {transform_indices = @transform_13, window_bounds = array<i64: 1, 1, 32>}, {transform_indices = @transform_14, window_bounds = array<i64: 1, 1, 32>}, {transform_indices = @transform_15, window_bounds = array<i64: 1, 1, 32>}, {transform_indices = @transform_16, window_bounds = array<i64: 1, 1, 32>}, {transform_indices = @transform_17, window_bounds = array<i64: 1, 32, 512>}, {transform_indices = @transform_18, window_bounds = array<i64: 1, 1, 512>}, {transform_indices = @transform_19, window_bounds = array<i64: 1, 32, 512>}, {pipeline_mode = #tpu.pipeline_mode<synchronous>, transform_indices = @transform_20, window_bounds = array<i64: 32, 10>}, {pipeline_mode = #tpu.pipeline_mode<synchronous>, transform_indices = @transform_21, window_bounds = array<i64: 1, 10>}, {pipeline_mode = #tpu.pipeline_mode<synchronous>, transform_indices = @transform_22, window_bounds = array<i64: 2, 10>}]} {
    %c0_i32 = arith.constant 0 : i32
    %0 = arith.cmpi eq, %arg0, %c0_i32 : i32
    %c0_i32_0 = arith.constant 0 : i32
    %1 = arith.cmpi eq, %arg1, %c0_i32_0 : i32
    %2 = arith.andi %0, %1 : i1
    %3 = arith.extui %2 : i1 to i32
    %c0_i32_1 = arith.constant 0 : i32
    %4 = arith.cmpi ne, %3, %c0_i32_1 : i32
    scf.if %4 {
      %c0_23 = arith.constant 0 : index
      %c0_24 = arith.constant 0 : index
      %34 = vector.load %arg2[%c0_23, %c0_24] : memref<34x64xf32, #tpu.memory_space<vmem>>, vector<34x64xf32>
      %c0_25 = arith.constant 0 : index
      %c0_26 = arith.constant 0 : index
      %35 = vector.load %arg3[%c0_25, %c0_26] : memref<64x32xf32, #tpu.memory_space<vmem>>, vector<64x32xf32>
      %cst_27 = arith.constant dense<0.000000e+00> : vector<34x32xf32>
      %36 = tpu.matmul %34, %35, %cst_27 {dimension_numbers = #tpu.dot_dimension_numbers<[1], [0], [0], [1], [0, 0, 1, 1], [], []>} : vector<34x64xf32>, vector<64x32xf32>, vector<34x32xf32> -> vector<34x32xf32>
      %c0_28 = arith.constant 0 : index
      %c0_29 = arith.constant 0 : index
      %37 = vector.load %arg4[%c0_28, %c0_29] : memref<34x32xf32, #tpu.memory_space<vmem>>, vector<34x32xf32>
      %38 = arith.addf %36, %37 : vector<34x32xf32>
      %c0_30 = arith.constant 0 : index
      %c0_31 = arith.constant 0 : index
      %39 = vector.load %arg25[%c0_30, %c0_31] : memref<34x32xf32, #tpu.memory_space<vmem>>, vector<34x32xf32>
      tpu.vector_store %arg25[%c0_30, %c0_31], %38 {strides = array<i32>} : memref<34x32xf32, #tpu.memory_space<vmem>>, vector<34x32xf32>,
    } else {
    }
    %c0_i32_2 = arith.constant 0 : i32
    %5 = arith.cmpi eq, %arg1, %c0_i32_2 : i32
    %6 = arith.extui %5 : i1 to i32
    %c0_i32_3 = arith.constant 0 : i32
    %7 = arith.cmpi ne, %6, %c0_i32_3 : i32
    scf.if %7 {
      %c0_23 = arith.constant 0 : index
      %c0_24 = arith.constant 0 : index
      %34 = vector.load %arg25[%c0_23, %c0_24] : memref<34x32xf32, #tpu.memory_space<vmem>>, vector<34x32xf32>
      %c0_25 = arith.constant 0 : index
      %c0_26 = arith.constant 0 : index
      %c0_27 = arith.constant 0 : index
      %35 = vector.load %arg6[%c0_25, %c0_26, %c0_27] : memref<1x32x32xf32, #tpu.memory_space<vmem>>, vector<1x32x32xf32>
      %36 = vector.shape_cast %35 : vector<1x32x32xf32> to vector<32x32xf32>
      %cst_28 = arith.constant dense<0.000000e+00> : vector<34x32xf32>
      %37 = tpu.matmul %34, %36, %cst_28 {dimension_numbers = #tpu.dot_dimension_numbers<[1], [0], [0], [1], [0, 0, 1, 1], [], []>} : vector<34x32xf32>, vector<32x32xf32>, vector<34x32xf32> -> vector<34x32xf32>
      %c0_29 = arith.constant 0 : index
      %c0_30 = arith.constant 0 : index
      %c0_31 = arith.constant 0 : index
      %38 = vector.load %arg9[%c0_29, %c0_30, %c0_31] : memref<1x1x32xf32, #tpu.memory_space<vmem>>, vector<1x1x32xf32>
      %39 = vector.shape_cast %38 : vector<1x1x32xf32> to vector<1x32xf32>
      %40 = vector.broadcast %39 : vector<1x32xf32> to vector<34x32xf32>
      %41 = arith.addf %37, %40 : vector<34x32xf32>
      %c0_32 = arith.constant 0 : index
      %c0_33 = arith.constant 0 : index
      %c0_34 = arith.constant 0 : index
      %42 = vector.load %arg7[%c0_32, %c0_33, %c0_34] : memref<1x32x32xf32, #tpu.memory_space<vmem>>, vector<1x32x32xf32>
      %43 = vector.shape_cast %42 : vector<1x32x32xf32> to vector<32x32xf32>
      %cst_35 = arith.constant dense<0.000000e+00> : vector<34x32xf32>
      %44 = tpu.matmul %34, %43, %cst_35 {dimension_numbers = #tpu.dot_dimension_numbers<[1], [0], [0], [1], [0, 0, 1, 1], [], []>} : vector<34x32xf32>, vector<32x32xf32>, vector<34x32xf32> -> vector<34x32xf32>
      %c0_36 = arith.constant 0 : index
      %c0_37 = arith.constant 0 : index
      %c0_38 = arith.constant 0 : index
      %45 = vector.load %arg10[%c0_36, %c0_37, %c0_38] : memref<1x1x32xf32, #tpu.memory_space<vmem>>, vector<1x1x32xf32>
      %46 = vector.shape_cast %45 : vector<1x1x32xf32> to vector<1x32xf32>
      %47 = vector.broadcast %46 : vector<1x32xf32> to vector<34x32xf32>
      %48 = arith.addf %44, %47 : vector<34x32xf32>
      %c0_39 = arith.constant 0 : index
      %c0_40 = arith.constant 0 : index
      %c0_41 = arith.constant 0 : index
      %49 = vector.load %arg8[%c0_39, %c0_40, %c0_41] : memref<1x32x32xf32, #tpu.memory_space<vmem>>, vector<1x32x32xf32>
      %50 = vector.shape_cast %49 : vector<1x32x32xf32> to vector<32x32xf32>
      %cst_42 = arith.constant dense<0.000000e+00> : vector<34x32xf32>
      %51 = tpu.matmul %34, %50, %cst_42 {dimension_numbers = #tpu.dot_dimension_numbers<[1], [0], [0], [1], [0, 0, 1, 1], [], []>} : vector<34x32xf32>, vector<32x32xf32>, vector<34x32xf32> -> vector<34x32xf32>
      %c0_43 = arith.constant 0 : index
      %c0_44 = arith.constant 0 : index
      %c0_45 = arith.constant 0 : index
      %52 = vector.load %arg11[%c0_43, %c0_44, %c0_45] : memref<1x1x32xf32, #tpu.memory_space<vmem>>, vector<1x1x32xf32>
      %53 = vector.shape_cast %52 : vector<1x1x32xf32> to vector<1x32xf32>
      %54 = vector.broadcast %53 : vector<1x32xf32> to vector<34x32xf32>
      %55 = arith.addf %51, %54 : vector<34x32xf32>
      %56 = tpu.iota {dimensions = array<i32: 1>} : vector<34x32xi32>
      %cst_46 = arith.constant 0.000000e+00 : f32
      %57 = vector.broadcast %cst_46 : f32 to vector<34x32xf32>
      %c0_i32_47 = arith.constant 0 : i32
      %58 = vector.broadcast %c0_i32_47 : i32 to vector<34x32xi32>
      %59 = arith.cmpi sge, %56, %58 : vector<34x32xi32>
      %c8_i32 = arith.constant 8 : i32
      %60 = vector.broadcast %c8_i32 : i32 to vector<34x32xi32>
      %61 = arith.cmpi slt, %56, %60 : vector<34x32xi32>
      %62 = arith.andi %59, %61 : vector<34x32xi1>
      %cst_48 = arith.constant 0.000000e+00 : f32
      %63 = vector.broadcast %cst_48 : f32 to vector<34x32xf32>
      %64 = arith.select %62, %41, %63 : vector<34x32xi1>, vector<34x32xf32>
      %cst_49 = arith.constant dense<0.000000e+00> : vector<34x34xf32>
      %65 = tpu.matmul %64, %48, %cst_49 {dimension_numbers = #tpu.dot_dimension_numbers<[1], [1], [0], [0], [0, 0, 1, 0], [], []>} : vector<34x32xf32>, vector<34x32xf32>, vector<34x34xf32> -> vector<34x34xf32>
      %c0_50 = arith.constant 0 : index
      %c0_51 = arith.constant 0 : index
      %66 = vector.load %arg5[%c0_50, %c0_51] : memref<34x34xf32, #tpu.memory_space<vmem>>, vector<34x34xf32>
      %67 = arith.addf %65, %66 : vector<34x34xf32>
      %cst_52 = arith.constant dense<0xFF800000> : vector<34xf32>
      %68 = vector.multi_reduction <maximumf>, %67, %cst_52 [1] : vector<34x34xf32> to vector<34xf32>
      %69 = vector.shape_cast %68 : vector<34xf32> to vector<34x1xf32>
      %70 = vector.broadcast %69 : vector<34x1xf32> to vector<34x34xf32>
      %71 = arith.subf %67, %70 : vector<34x34xf32>
      %72 = math.exp %71 : vector<34x34xf32>
      %cst_53 = arith.constant dense<0.000000e+00> : vector<34xf32>
      %73 = vector.multi_reduction <add>, %72, %cst_53 [1] : vector<34x34xf32> to vector<34xf32>
      %74 = vector.shape_cast %73 : vector<34xf32> to vector<34x1xf32>
      %75 = tpu.reciprocal %74 {approx = true} : vector<34x1xf32> -> vector<34x1xf32>
      %76 = vector.broadcast %75 : vector<34x1xf32> to vector<34x34xf32>
      %77 = arith.mulf %72, %76 : vector<34x34xf32>
      %cst_54 = arith.constant 0.000000e+00 : f32
      %78 = vector.broadcast %cst_54 : f32 to vector<34x32xf32>
      %79 = arith.select %62, %55, %78 : vector<34x32xi1>, vector<34x32xf32>
      %cst_55 = arith.constant dense<0.000000e+00> : vector<34x32xf32>
      %80 = tpu.matmul %77, %79, %cst_55 {dimension_numbers = #tpu.dot_dimension_numbers<[1], [0], [0], [1], [0, 0, 1, 1], [], []>} : vector<34x34xf32>, vector<34x32xf32>, vector<34x32xf32> -> vector<34x32xf32>
      %81 = arith.addf %57, %80 : vector<34x32xf32>
      %c8_i32_56 = arith.constant 8 : i32
      %82 = vector.broadcast %c8_i32_56 : i32 to vector<34x32xi32>
      %83 = arith.cmpi sge, %56, %82 : vector<34x32xi32>
      %c16_i32 = arith.constant 16 : i32
      %84 = vector.broadcast %c16_i32 : i32 to vector<34x32xi32>
      %85 = arith.cmpi slt, %56, %84 : vector<34x32xi32>
      %86 = arith.andi %83, %85 : vector<34x32xi1>
      %cst_57 = arith.constant 0.000000e+00 : f32
      %87 = vector.broadcast %cst_57 : f32 to vector<34x32xf32>
      %88 = arith.select %86, %41, %87 : vector<34x32xi1>, vector<34x32xf32>
      %cst_58 = arith.constant dense<0.000000e+00> : vector<34x34xf32>
      %89 = tpu.matmul %88, %48, %cst_58 {dimension_numbers = #tpu.dot_dimension_numbers<[1], [1], [0], [0], [0, 0, 1, 0], [], []>} : vector<34x32xf32>, vector<34x32xf32>, vector<34x34xf32> -> vector<34x34xf32>
      %c0_59 = arith.constant 0 : index
      %c0_60 = arith.constant 0 : index
      %90 = vector.load %arg5[%c0_59, %c0_60] : memref<34x34xf32, #tpu.memory_space<vmem>>, vector<34x34xf32>
      %91 = arith.addf %89, %90 : vector<34x34xf32>
      %cst_61 = arith.constant dense<0xFF800000> : vector<34xf32>
      %92 = vector.multi_reduction <maximumf>, %91, %cst_61 [1] : vector<34x34xf32> to vector<34xf32>
      %93 = vector.shape_cast %92 : vector<34xf32> to vector<34x1xf32>
      %94 = vector.broadcast %93 : vector<34x1xf32> to vector<34x34xf32>
      %95 = arith.subf %91, %94 : vector<34x34xf32>
      %96 = math.exp %95 : vector<34x34xf32>
      %cst_62 = arith.constant dense<0.000000e+00> : vector<34xf32>
      %97 = vector.multi_reduction <add>, %96, %cst_62 [1] : vector<34x34xf32> to vector<34xf32>
      %98 = vector.shape_cast %97 : vector<34xf32> to vector<34x1xf32>
      %99 = tpu.reciprocal %98 {approx = true} : vector<34x1xf32> -> vector<34x1xf32>
      %100 = vector.broadcast %99 : vector<34x1xf32> to vector<34x34xf32>
      %101 = arith.mulf %96, %100 : vector<34x34xf32>
      %cst_63 = arith.constant 0.000000e+00 : f32
      %102 = vector.broadcast %cst_63 : f32 to vector<34x32xf32>
      %103 = arith.select %86, %55, %102 : vector<34x32xi1>, vector<34x32xf32>
      %cst_64 = arith.constant dense<0.000000e+00> : vector<34x32xf32>
      %104 = tpu.matmul %101, %103, %cst_64 {dimension_numbers = #tpu.dot_dimension_numbers<[1], [0], [0], [1], [0, 0, 1, 1], [], []>} : vector<34x34xf32>, vector<34x32xf32>, vector<34x32xf32> -> vector<34x32xf32>
      %105 = arith.addf %81, %104 : vector<34x32xf32>
      %c16_i32_65 = arith.constant 16 : i32
      %106 = vector.broadcast %c16_i32_65 : i32 to vector<34x32xi32>
      %107 = arith.cmpi sge, %56, %106 : vector<34x32xi32>
      %c24_i32 = arith.constant 24 : i32
      %108 = vector.broadcast %c24_i32 : i32 to vector<34x32xi32>
      %109 = arith.cmpi slt, %56, %108 : vector<34x32xi32>
      %110 = arith.andi %107, %109 : vector<34x32xi1>
      %cst_66 = arith.constant 0.000000e+00 : f32
      %111 = vector.broadcast %cst_66 : f32 to vector<34x32xf32>
      %112 = arith.select %110, %41, %111 : vector<34x32xi1>, vector<34x32xf32>
      %cst_67 = arith.constant dense<0.000000e+00> : vector<34x34xf32>
      %113 = tpu.matmul %112, %48, %cst_67 {dimension_numbers = #tpu.dot_dimension_numbers<[1], [1], [0], [0], [0, 0, 1, 0], [], []>} : vector<34x32xf32>, vector<34x32xf32>, vector<34x34xf32> -> vector<34x34xf32>
      %c0_68 = arith.constant 0 : index
      %c0_69 = arith.constant 0 : index
      %114 = vector.load %arg5[%c0_68, %c0_69] : memref<34x34xf32, #tpu.memory_space<vmem>>, vector<34x34xf32>
      %115 = arith.addf %113, %114 : vector<34x34xf32>
      %cst_70 = arith.constant dense<0xFF800000> : vector<34xf32>
      %116 = vector.multi_reduction <maximumf>, %115, %cst_70 [1] : vector<34x34xf32> to vector<34xf32>
      %117 = vector.shape_cast %116 : vector<34xf32> to vector<34x1xf32>
      %118 = vector.broadcast %117 : vector<34x1xf32> to vector<34x34xf32>
      %119 = arith.subf %115, %118 : vector<34x34xf32>
      %120 = math.exp %119 : vector<34x34xf32>
      %cst_71 = arith.constant dense<0.000000e+00> : vector<34xf32>
      %121 = vector.multi_reduction <add>, %120, %cst_71 [1] : vector<34x34xf32> to vector<34xf32>
      %122 = vector.shape_cast %121 : vector<34xf32> to vector<34x1xf32>
      %123 = tpu.reciprocal %122 {approx = true} : vector<34x1xf32> -> vector<34x1xf32>
      %124 = vector.broadcast %123 : vector<34x1xf32> to vector<34x34xf32>
      %125 = arith.mulf %120, %124 : vector<34x34xf32>
      %cst_72 = arith.constant 0.000000e+00 : f32
      %126 = vector.broadcast %cst_72 : f32 to vector<34x32xf32>
      %127 = arith.select %110, %55, %126 : vector<34x32xi1>, vector<34x32xf32>
      %cst_73 = arith.constant dense<0.000000e+00> : vector<34x32xf32>
      %128 = tpu.matmul %125, %127, %cst_73 {dimension_numbers = #tpu.dot_dimension_numbers<[1], [0], [0], [1], [0, 0, 1, 1], [], []>} : vector<34x34xf32>, vector<34x32xf32>, vector<34x32xf32> -> vector<34x32xf32>
      %129 = arith.addf %105, %128 : vector<34x32xf32>
      %c24_i32_74 = arith.constant 24 : i32
      %130 = vector.broadcast %c24_i32_74 : i32 to vector<34x32xi32>
      %131 = arith.cmpi sge, %56, %130 : vector<34x32xi32>
      %c32_i32 = arith.constant 32 : i32
      %132 = vector.broadcast %c32_i32 : i32 to vector<34x32xi32>
      %133 = arith.cmpi slt, %56, %132 : vector<34x32xi32>
      %134 = arith.andi %131, %133 : vector<34x32xi1>
      %cst_75 = arith.constant 0.000000e+00 : f32
      %135 = vector.broadcast %cst_75 : f32 to vector<34x32xf32>
      %136 = arith.select %134, %41, %135 : vector<34x32xi1>, vector<34x32xf32>
      %cst_76 = arith.constant dense<0.000000e+00> : vector<34x34xf32>
      %137 = tpu.matmul %136, %48, %cst_76 {dimension_numbers = #tpu.dot_dimension_numbers<[1], [1], [0], [0], [0, 0, 1, 0], [], []>} : vector<34x32xf32>, vector<34x32xf32>, vector<34x34xf32> -> vector<34x34xf32>
      %c0_77 = arith.constant 0 : index
      %c0_78 = arith.constant 0 : index
      %138 = vector.load %arg5[%c0_77, %c0_78] : memref<34x34xf32, #tpu.memory_space<vmem>>, vector<34x34xf32>
      %139 = arith.addf %137, %138 : vector<34x34xf32>
      %cst_79 = arith.constant dense<0xFF800000> : vector<34xf32>
      %140 = vector.multi_reduction <maximumf>, %139, %cst_79 [1] : vector<34x34xf32> to vector<34xf32>
      %141 = vector.shape_cast %140 : vector<34xf32> to vector<34x1xf32>
      %142 = vector.broadcast %141 : vector<34x1xf32> to vector<34x34xf32>
      %143 = arith.subf %139, %142 : vector<34x34xf32>
      %144 = math.exp %143 : vector<34x34xf32>
      %cst_80 = arith.constant dense<0.000000e+00> : vector<34xf32>
      %145 = vector.multi_reduction <add>, %144, %cst_80 [1] : vector<34x34xf32> to vector<34xf32>
      %146 = vector.shape_cast %145 : vector<34xf32> to vector<34x1xf32>
      %147 = tpu.reciprocal %146 {approx = true} : vector<34x1xf32> -> vector<34x1xf32>
      %148 = vector.broadcast %147 : vector<34x1xf32> to vector<34x34xf32>
      %149 = arith.mulf %144, %148 : vector<34x34xf32>
      %cst_81 = arith.constant 0.000000e+00 : f32
      %150 = vector.broadcast %cst_81 : f32 to vector<34x32xf32>
      %151 = arith.select %134, %55, %150 : vector<34x32xi1>, vector<34x32xf32>
      %cst_82 = arith.constant dense<0.000000e+00> : vector<34x32xf32>
      %152 = tpu.matmul %149, %151, %cst_82 {dimension_numbers = #tpu.dot_dimension_numbers<[1], [0], [0], [1], [0, 0, 1, 1], [], []>} : vector<34x34xf32>, vector<34x32xf32>, vector<34x32xf32> -> vector<34x32xf32>
      %153 = arith.addf %129, %152 : vector<34x32xf32>
      %c0_83 = arith.constant 0 : index
      %c0_84 = arith.constant 0 : index
      %c0_85 = arith.constant 0 : index
      %154 = vector.load %arg12[%c0_83, %c0_84, %c0_85] : memref<1x32x32xf32, #tpu.memory_space<vmem>>, vector<1x32x32xf32>
      %155 = vector.shape_cast %154 : vector<1x32x32xf32> to vector<32x32xf32>
      %cst_86 = arith.constant dense<0.000000e+00> : vector<34x32xf32>
      %156 = tpu.matmul %153, %155, %cst_86 {dimension_numbers = #tpu.dot_dimension_numbers<[1], [0], [0], [1], [0, 0, 1, 1], [], []>} : vector<34x32xf32>, vector<32x32xf32>, vector<34x32xf32> -> vector<34x32xf32>
      %c0_87 = arith.constant 0 : index
      %c0_88 = arith.constant 0 : index
      %c0_89 = arith.constant 0 : index
      %157 = vector.load %arg13[%c0_87, %c0_88, %c0_89] : memref<1x1x32xf32, #tpu.memory_space<vmem>>, vector<1x1x32xf32>
      %158 = vector.shape_cast %157 : vector<1x1x32xf32> to vector<1x32xf32>
      %159 = vector.broadcast %158 : vector<1x32xf32> to vector<34x32xf32>
      %160 = arith.addf %156, %159 : vector<34x32xf32>
      %161 = arith.addf %34, %160 : vector<34x32xf32>
      %c0_90 = arith.constant 0 : index
      %c0_91 = arith.constant 0 : index
      %c0_92 = arith.constant 0 : index
      %162 = vector.load %arg14[%c0_90, %c0_91, %c0_92] : memref<1x1x32xf32, #tpu.memory_space<vmem>>, vector<1x1x32xf32>
      %163 = vector.shape_cast %162 : vector<1x1x32xf32> to vector<1x32xf32>
      %c0_93 = arith.constant 0 : index
      %c0_94 = arith.constant 0 : index
      %c0_95 = arith.constant 0 : index
      %164 = vector.load %arg15[%c0_93, %c0_94, %c0_95] : memref<1x1x32xf32, #tpu.memory_space<vmem>>, vector<1x1x32xf32>
      %165 = vector.shape_cast %164 : vector<1x1x32xf32> to vector<1x32xf32>
      %cst_96 = arith.constant dense<0.000000e+00> : vector<34xf32>
      %166 = vector.multi_reduction <add>, %161, %cst_96 [1] : vector<34x32xf32> to vector<34xf32>
      %167 = vector.shape_cast %166 : vector<34xf32> to vector<34x1xf32>
      %cst_97 = arith.constant 3.200000e+01 : f32
      %168 = vector.broadcast %cst_97 : f32 to vector<34x1xf32>
      %169 = arith.divf %167, %168 : vector<34x1xf32>
      %170 = vector.broadcast %169 : vector<34x1xf32> to vector<34x32xf32>
      %171 = arith.subf %161, %170 : vector<34x32xf32>
      %172 = arith.mulf %171, %171 : vector<34x32xf32>
      %cst_98 = arith.constant dense<0.000000e+00> : vector<34xf32>
      %173 = vector.multi_reduction <add>, %172, %cst_98 [1] : vector<34x32xf32> to vector<34xf32>
      %174 = vector.shape_cast %173 : vector<34xf32> to vector<34x1xf32>
      %cst_99 = arith.constant 3.200000e+01 : f32
      %175 = vector.broadcast %cst_99 : f32 to vector<34x1xf32>
      %176 = arith.divf %174, %175 : vector<34x1xf32>
      %177 = vector.broadcast %169 : vector<34x1xf32> to vector<34x32xf32>
      %178 = arith.subf %161, %177 : vector<34x32xf32>
      %cst_100 = arith.constant 9.99999974E-6 : f32
      %179 = vector.broadcast %cst_100 : f32 to vector<34x1xf32>
      %180 = arith.addf %176, %179 : vector<34x1xf32>
      %181 = math.rsqrt %180 : vector<34x1xf32>
      %182 = vector.broadcast %181 : vector<34x1xf32> to vector<34x32xf32>
      %183 = arith.mulf %178, %182 : vector<34x32xf32>
      %184 = vector.broadcast %163 : vector<1x32xf32> to vector<34x32xf32>
      %185 = arith.mulf %183, %184 : vector<34x32xf32>
      %186 = vector.broadcast %165 : vector<1x32xf32> to vector<34x32xf32>
      %187 = arith.addf %185, %186 : vector<34x32xf32>
      %c0_101 = arith.constant 0 : index
      %c0_102 = arith.constant 0 : index
      %188 = vector.load %arg26[%c0_101, %c0_102] : memref<34x32xf32, #tpu.memory_space<vmem>>, vector<34x32xf32>
      tpu.vector_store %arg26[%c0_101, %c0_102], %187 {strides = array<i32>} : memref<34x32xf32, #tpu.memory_space<vmem>>, vector<34x32xf32>,
      %cst_103 = arith.constant 0.000000e+00 : f32
      %189 = vector.broadcast %cst_103 : f32 to vector<34x32xf32>
      %c0_104 = arith.constant 0 : index
      %c0_105 = arith.constant 0 : index
      %190 = vector.load %arg27[%c0_104, %c0_105] : memref<34x32xf32, #tpu.memory_space<vmem>>, vector<34x32xf32>
      tpu.vector_store %arg27[%c0_104, %c0_105], %189 {strides = array<i32>} : memref<34x32xf32, #tpu.memory_space<vmem>>, vector<34x32xf32>,
    } else {
    }
    %c0 = arith.constant 0 : index
    %c0_4 = arith.constant 0 : index
    %8 = vector.load %arg26[%c0, %c0_4] : memref<34x32xf32, #tpu.memory_space<vmem>>, vector<34x32xf32>
    %9 = arith.truncf %8 : vector<34x32xf32> to vector<34x32xbf16>
    %c0_5 = arith.constant 0 : index
    %c0_6 = arith.constant 0 : index
    %c0_7 = arith.constant 0 : index
    %10 = vector.load %arg19[%c0_5, %c0_6, %c0_7] : memref<1x32x512xbf16, #tpu.memory_space<vmem>>, vector<1x32x512xbf16>
    %11 = vector.shape_cast %10 : vector<1x32x512xbf16> to vector<32x512xbf16>
    %cst = arith.constant dense<0.000000e+00> : vector<34x512xf32>
    %12 = tpu.matmul %9, %11, %cst {dimension_numbers = #tpu.dot_dimension_numbers<[1], [0], [0], [1], [0, 0, 1, 1], [], []>} : vector<34x32xbf16>, vector<32x512xbf16>, vector<34x512xf32> -> vector<34x512xf32>
    %c0_8 = arith.constant 0 : index
    %c0_9 = arith.constant 0 : index
    %c0_10 = arith.constant 0 : index
    %13 = vector.load %arg20[%c0_8, %c0_9, %c0_10] : memref<1x1x512xf32, #tpu.memory_space<vmem>>, vector<1x1x512xf32>
    %14 = vector.shape_cast %13 : vector<1x1x512xf32> to vector<1x512xf32>
    %15 = vector.broadcast %14 : vector<1x512xf32> to vector<34x512xf32>
    %16 = arith.addf %12, %15 : vector<34x512xf32>
    %cst_11 = arith.constant 0.000000e+00 : f32
    %17 = vector.broadcast %cst_11 : f32 to vector<34x512xf32>
    %18 = arith.maximumf %16, %17 : vector<34x512xf32>
    %19 = arith.truncf %18 : vector<34x512xf32> to vector<34x512xbf16>
    %c0_12 = arith.constant 0 : index
    %c0_13 = arith.constant 0 : index
    %20 = vector.load %arg27[%c0_12, %c0_13] : memref<34x32xf32, #tpu.memory_space<vmem>>, vector<34x32xf32>
    %c0_14 = arith.constant 0 : index
    %c0_15 = arith.constant 0 : index
    %c0_16 = arith.constant 0 : index
    %21 = vector.load %arg21[%c0_14, %c0_15, %c0_16] : memref<1x32x512xbf16, #tpu.memory_space<vmem>>, vector<1x32x512xbf16>
    %22 = vector.shape_cast %21 : vector<1x32x512xbf16> to vector<32x512xbf16>
    %cst_17 = arith.constant dense<0.000000e+00> : vector<34x32xf32>
    %23 = tpu.matmul %19, %22, %cst_17 {dimension_numbers = #tpu.dot_dimension_numbers<[1], [1], [0], [0], [0, 0, 1, 0], [], []>} : vector<34x512xbf16>, vector<32x512xbf16>, vector<34x32xf32> -> vector<34x32xf32>
    %24 = arith.addf %20, %23 : vector<34x32xf32>
    %c0_18 = arith.constant 0 : index
    %c0_19 = arith.constant 0 : index
    %25 = vector.load %arg27[%c0_18, %c0_19] : memref<34x32xf32, #tpu.memory_space<vmem>>, vector<34x32xf32>
    tpu.vector_store %arg27[%c0_18, %c0_19], %24 {strides = array<i32>} : memref<34x32xf32, #tpu.memory_space<vmem>>, vector<34x32xf32>,
    %c3_i32 = arith.constant 3 : i32
    %26 = arith.cmpi eq, %arg1, %c3_i32 : i32
    %27 = arith.extui %26 : i1 to i32
    %c0_i32_20 = arith.constant 0 : i32
    %28 = arith.cmpi ne, %27, %c0_i32_20 : i32
    scf.if %28 {
      %c0_23 = arith.constant 0 : index
      %c0_24 = arith.constant 0 : index
      %34 = vector.load %arg26[%c0_23, %c0_24] : memref<34x32xf32, #tpu.memory_space<vmem>>, vector<34x32xf32>
      %c0_25 = arith.constant 0 : index
      %c0_26 = arith.constant 0 : index
      %35 = vector.load %arg27[%c0_25, %c0_26] : memref<34x32xf32, #tpu.memory_space<vmem>>, vector<34x32xf32>
      %36 = arith.addf %34, %35 : vector<34x32xf32>
      %c0_27 = arith.constant 0 : index
      %c0_28 = arith.constant 0 : index
      %c0_29 = arith.constant 0 : index
      %37 = vector.load %arg18[%c0_27, %c0_28, %c0_29] : memref<1x1x32xf32, #tpu.memory_space<vmem>>, vector<1x1x32xf32>
      %38 = vector.shape_cast %37 : vector<1x1x32xf32> to vector<1x32xf32>
      %39 = vector.broadcast %38 : vector<1x32xf32> to vector<34x32xf32>
      %40 = arith.addf %36, %39 : vector<34x32xf32>
      %c0_30 = arith.constant 0 : index
      %c0_31 = arith.constant 0 : index
      %c0_32 = arith.constant 0 : index
      %41 = vector.load %arg16[%c0_30, %c0_31, %c0_32] : memref<1x1x32xf32, #tpu.memory_space<vmem>>, vector<1x1x32xf32>
      %42 = vector.shape_cast %41 : vector<1x1x32xf32> to vector<1x32xf32>
      %c0_33 = arith.constant 0 : index
      %c0_34 = arith.constant 0 : index
      %c0_35 = arith.constant 0 : index
      %43 = vector.load %arg17[%c0_33, %c0_34, %c0_35] : memref<1x1x32xf32, #tpu.memory_space<vmem>>, vector<1x1x32xf32>
      %44 = vector.shape_cast %43 : vector<1x1x32xf32> to vector<1x32xf32>
      %cst_36 = arith.constant dense<0.000000e+00> : vector<34xf32>
      %45 = vector.multi_reduction <add>, %40, %cst_36 [1] : vector<34x32xf32> to vector<34xf32>
      %46 = vector.shape_cast %45 : vector<34xf32> to vector<34x1xf32>
      %cst_37 = arith.constant 3.200000e+01 : f32
      %47 = vector.broadcast %cst_37 : f32 to vector<34x1xf32>
      %48 = arith.divf %46, %47 : vector<34x1xf32>
      %49 = vector.broadcast %48 : vector<34x1xf32> to vector<34x32xf32>
      %50 = arith.subf %40, %49 : vector<34x32xf32>
      %51 = arith.mulf %50, %50 : vector<34x32xf32>
      %cst_38 = arith.constant dense<0.000000e+00> : vector<34xf32>
      %52 = vector.multi_reduction <add>, %51, %cst_38 [1] : vector<34x32xf32> to vector<34xf32>
      %53 = vector.shape_cast %52 : vector<34xf32> to vector<34x1xf32>
      %cst_39 = arith.constant 3.200000e+01 : f32
      %54 = vector.broadcast %cst_39 : f32 to vector<34x1xf32>
      %55 = arith.divf %53, %54 : vector<34x1xf32>
      %56 = vector.broadcast %48 : vector<34x1xf32> to vector<34x32xf32>
      %57 = arith.subf %40, %56 : vector<34x32xf32>
      %cst_40 = arith.constant 9.99999974E-6 : f32
      %58 = vector.broadcast %cst_40 : f32 to vector<34x1xf32>
      %59 = arith.addf %55, %58 : vector<34x1xf32>
      %60 = math.rsqrt %59 : vector<34x1xf32>
      %61 = vector.broadcast %60 : vector<34x1xf32> to vector<34x32xf32>
      %62 = arith.mulf %57, %61 : vector<34x32xf32>
      %63 = vector.broadcast %42 : vector<1x32xf32> to vector<34x32xf32>
      %64 = arith.mulf %62, %63 : vector<34x32xf32>
      %65 = vector.broadcast %44 : vector<1x32xf32> to vector<34x32xf32>
      %66 = arith.addf %64, %65 : vector<34x32xf32>
      %c0_41 = arith.constant 0 : index
      %c0_42 = arith.constant 0 : index
      %67 = vector.load %arg25[%c0_41, %c0_42] : memref<34x32xf32, #tpu.memory_space<vmem>>, vector<34x32xf32>
      tpu.vector_store %arg25[%c0_41, %c0_42], %66 {strides = array<i32>} : memref<34x32xf32, #tpu.memory_space<vmem>>, vector<34x32xf32>,
    } else {
    }
    %c1_i32 = arith.constant 1 : i32
    %29 = arith.cmpi eq, %arg0, %c1_i32 : i32
    %c3_i32_21 = arith.constant 3 : i32
    %30 = arith.cmpi eq, %arg1, %c3_i32_21 : i32
    %31 = arith.andi %29, %30 : i1
    %32 = arith.extui %31 : i1 to i32
    %c0_i32_22 = arith.constant 0 : i32
    %33 = arith.cmpi ne, %32, %c0_i32_22 : i32
    scf.if %33 {
      %c0_23 = arith.constant 0 : index
      %c0_24 = arith.constant 0 : index
      %34 = vector.load %arg25[%c0_23, %c0_24] : memref<34x32xf32, #tpu.memory_space<vmem>>, vector<34x32xf32>
      %35 = vector.extract_strided_slice %34 {offsets = [0, 0], sizes = [1, 32], strides = [1, 1]} : vector<34x32xf32> to vector<1x32xf32>
      %36 = vector.extract_strided_slice %34 {offsets = [17, 0], sizes = [1, 32], strides = [1, 1]} : vector<34x32xf32> to vector<1x32xf32>
      %37 = tpu.concatenate %35, %36 in 0 : vector<1x32xf32>, vector<1x32xf32> -> vector<2x32xf32>
      %c0_25 = arith.constant 0 : index
      %c0_26 = arith.constant 0 : index
      %38 = vector.load %arg22[%c0_25, %c0_26] : memref<32x10xf32, #tpu.memory_space<vmem>>, vector<32x10xf32>
      %cst_27 = arith.constant dense<0.000000e+00> : vector<2x10xf32>
      %39 = tpu.matmul %37, %38, %cst_27 {dimension_numbers = #tpu.dot_dimension_numbers<[1], [0], [0], [1], [0, 0, 1, 1], [], []>} : vector<2x32xf32>, vector<32x10xf32>, vector<2x10xf32> -> vector<2x10xf32>
      %c0_28 = arith.constant 0 : index
      %c0_29 = arith.constant 0 : index
      %40 = vector.load %arg23[%c0_28, %c0_29] : memref<1x10xf32, #tpu.memory_space<vmem>>, vector<1x10xf32>
      %41 = vector.broadcast %40 : vector<1x10xf32> to vector<2x10xf32>
      %42 = arith.addf %39, %41 : vector<2x10xf32>
      %c0_30 = arith.constant 0 : index
      %c0_31 = arith.constant 0 : index
      %43 = vector.load %arg24[%c0_30, %c0_31] : memref<2x10xf32, #tpu.memory_space<vmem>>, vector<2x10xf32>
      tpu.vector_store %arg24[%c0_30, %c0_31], %42 {strides = array<i32>} : memref<2x10xf32, #tpu.memory_space<vmem>>, vector<2x10xf32>,
    } else {
    }
    return
  }
  func.func @transform_0(%arg0: i32, %arg1: i32) -> (i32, i32) {
    %c0_i32 = arith.constant 0 : i32
    %c0_i32_0 = arith.constant 0 : i32
    %c0_i32_1 = arith.constant 0 : i32
    return %c0_i32, %c0_i32_0 : i32, i32
  }
  func.func @transform_1(%arg0: i32, %arg1: i32) -> (i32, i32) {
    %c0_i32 = arith.constant 0 : i32
    %c0_i32_0 = arith.constant 0 : i32
    %c0_i32_1 = arith.constant 0 : i32
    return %c0_i32, %c0_i32_0 : i32, i32
  }
  func.func @transform_2(%arg0: i32, %arg1: i32) -> (i32, i32) {
    %c0_i32 = arith.constant 0 : i32
    %c0_i32_0 = arith.constant 0 : i32
    %c0_i32_1 = arith.constant 0 : i32
    return %c0_i32, %c0_i32_0 : i32, i32
  }
  func.func @transform_3(%arg0: i32, %arg1: i32) -> (i32, i32) {
    %c0_i32 = arith.constant 0 : i32
    %c0_i32_0 = arith.constant 0 : i32
    %c0_i32_1 = arith.constant 0 : i32
    return %c0_i32, %c0_i32_0 : i32, i32
  }
  func.func @transform_4(%arg0: i32, %arg1: i32) -> (i32, i32, i32) {
    %c0_i32 = arith.constant 0 : i32
    %c0_i32_0 = arith.constant 0 : i32
    %c0_i32_1 = arith.constant 0 : i32
    return %arg0, %c0_i32, %c0_i32_0 : i32, i32, i32
  }
  func.func @transform_5(%arg0: i32, %arg1: i32) -> (i32, i32, i32) {
    %c0_i32 = arith.constant 0 : i32
    %c0_i32_0 = arith.constant 0 : i32
    %c0_i32_1 = arith.constant 0 : i32
    return %arg0, %c0_i32, %c0_i32_0 : i32, i32, i32
  }
  func.func @transform_6(%arg0: i32, %arg1: i32) -> (i32, i32, i32) {
    %c0_i32 = arith.constant 0 : i32
    %c0_i32_0 = arith.constant 0 : i32
    %c0_i32_1 = arith.constant 0 : i32
    return %arg0, %c0_i32, %c0_i32_0 : i32, i32, i32
  }
  func.func @transform_7(%arg0: i32, %arg1: i32) -> (i32, i32, i32) {
    %c0_i32 = arith.constant 0 : i32
    %c0_i32_0 = arith.constant 0 : i32
    %c0_i32_1 = arith.constant 0 : i32
    return %arg0, %c0_i32, %c0_i32_0 : i32, i32, i32
  }
  func.func @transform_8(%arg0: i32, %arg1: i32) -> (i32, i32, i32) {
    %c0_i32 = arith.constant 0 : i32
    %c0_i32_0 = arith.constant 0 : i32
    %c0_i32_1 = arith.constant 0 : i32
    return %arg0, %c0_i32, %c0_i32_0 : i32, i32, i32
  }
  func.func @transform_9(%arg0: i32, %arg1: i32) -> (i32, i32, i32) {
    %c0_i32 = arith.constant 0 : i32
    %c0_i32_0 = arith.constant 0 : i32
    %c0_i32_1 = arith.constant 0 : i32
    return %arg0, %c0_i32, %c0_i32_0 : i32, i32, i32
  }
  func.func @transform_10(%arg0: i32, %arg1: i32) -> (i32, i32, i32) {
    %c0_i32 = arith.constant 0 : i32
    %c0_i32_0 = arith.constant 0 : i32
    %c0_i32_1 = arith.constant 0 : i32
    return %arg0, %c0_i32, %c0_i32_0 : i32, i32, i32
  }
  func.func @transform_11(%arg0: i32, %arg1: i32) -> (i32, i32, i32) {
    %c0_i32 = arith.constant 0 : i32
    %c0_i32_0 = arith.constant 0 : i32
    %c0_i32_1 = arith.constant 0 : i32
    return %arg0, %c0_i32, %c0_i32_0 : i32, i32, i32
  }
  func.func @transform_12(%arg0: i32, %arg1: i32) -> (i32, i32, i32) {
    %c0_i32 = arith.constant 0 : i32
    %c0_i32_0 = arith.constant 0 : i32
    %c0_i32_1 = arith.constant 0 : i32
    return %arg0, %c0_i32, %c0_i32_0 : i32, i32, i32
  }
  func.func @transform_13(%arg0: i32, %arg1: i32) -> (i32, i32, i32) {
    %c0_i32 = arith.constant 0 : i32
    %c0_i32_0 = arith.constant 0 : i32
    %c0_i32_1 = arith.constant 0 : i32
    return %arg0, %c0_i32, %c0_i32_0 : i32, i32, i32
  }
  func.func @transform_14(%arg0: i32, %arg1: i32) -> (i32, i32, i32) {
    %c0_i32 = arith.constant 0 : i32
    %c0_i32_0 = arith.constant 0 : i32
    %c0_i32_1 = arith.constant 0 : i32
    return %arg0, %c0_i32, %c0_i32_0 : i32, i32, i32
  }
  func.func @transform_15(%arg0: i32, %arg1: i32) -> (i32, i32, i32) {
    %c0_i32 = arith.constant 0 : i32
    %c0_i32_0 = arith.constant 0 : i32
    %c0_i32_1 = arith.constant 0 : i32
    return %arg0, %c0_i32, %c0_i32_0 : i32, i32, i32
  }
  func.func @transform_16(%arg0: i32, %arg1: i32) -> (i32, i32, i32) {
    %c0_i32 = arith.constant 0 : i32
    %c0_i32_0 = arith.constant 0 : i32
    %c0_i32_1 = arith.constant 0 : i32
    return %arg0, %c0_i32, %c0_i32_0 : i32, i32, i32
  }
  func.func @transform_17(%arg0: i32, %arg1: i32) -> (i32, i32, i32) {
    %c0_i32 = arith.constant 0 : i32
    %c0_i32_0 = arith.constant 0 : i32
    return %arg0, %c0_i32, %arg1 : i32, i32, i32
  }
  func.func @transform_18(%arg0: i32, %arg1: i32) -> (i32, i32, i32) {
    %c0_i32 = arith.constant 0 : i32
    %c0_i32_0 = arith.constant 0 : i32
    return %arg0, %c0_i32, %arg1 : i32, i32, i32
  }
  func.func @transform_19(%arg0: i32, %arg1: i32) -> (i32, i32, i32) {
    %c0_i32 = arith.constant 0 : i32
    %c0_i32_0 = arith.constant 0 : i32
    return %arg0, %c0_i32, %arg1 : i32, i32, i32
  }
  func.func @transform_20(%arg0: i32, %arg1: i32) -> (i32, i32) {
    %c0_i32 = arith.constant 0 : i32
    %c0_i32_0 = arith.constant 0 : i32
    %c0_i32_1 = arith.constant 0 : i32
    return %c0_i32, %c0_i32_0 : i32, i32
  }
  func.func @transform_21(%arg0: i32, %arg1: i32) -> (i32, i32) {
    %c0_i32 = arith.constant 0 : i32
    %c0_i32_0 = arith.constant 0 : i32
    %c0_i32_1 = arith.constant 0 : i32
    return %c0_i32, %c0_i32_0 : i32, i32
  }
  func.func @transform_22(%arg0: i32, %arg1: i32) -> (i32, i32) {
    %c0_i32 = arith.constant 0 : i32
    %c0_i32_0 = arith.constant 0 : i32
    %c0_i32_1 = arith.constant 0 : i32
    return %c0_i32, %c0_i32_0 : i32, i32
  }
}

</mosaic_0001>

<bundles_post_ra>
// kernel: tile.9
= control target key start
LH: loop header
LB: loop body
LE: loop exit
PB: predicated region body
PF: predicated region fallthrough
CT: control target
= control target key end

     0   :  { %vm3_vm0 = vcmask 261120   ;;  %s11_s6 = smov 3  ;;  %s74_s0 = inlined_call_operand.vmem [shape: f32[2,17,32], index: 0, kind: input, shape index: {}]   ;;  %s75_s1 = inlined_call_operand.vmem [shape: f32[34,32], index: 1, kind: output, shape index: {}]  }
   0x1   :  { %v2_v0 = vld [vmem:[%s74_s0] sm:$0xff]   ;;  %v26_v1 = vld [vmem:[%s74_s0 + $0x8] sm:$0xff]  }
   0x2   :  { %v28_v2 = vld [vmem:[%s74_s0 + $0x10] ss:$8 sm:%s11_s6]   ;;  %4 = vst.msk [vmem:[%s75_s1] sm:$0xff] %vm3_vm0, %v2_v0   ;;  %27 = vst.msk [vmem:[%s75_s1 + $0x8] sm:$0xff] %vm3_vm0, %v26_v1  }
   0x3   :  { %29 = vst.msk [vmem:[%s75_s1 + $0x10] sm:$0x3] %vm3_vm0, %v28_v2   ;;  %v30_v3 = vld [vmem:[%s74_s0 + $0x19] sm:$0xff]   ;;  %v32_v4 = vld [vmem:[%s74_s0 + $0x21] sm:$0xff]  }
   0x4   :  { %31 = vst.msk [vmem:[%s75_s1 + $0x12] sm:$0xff] %vm3_vm0, %v30_v3   ;;  %33 = vst.msk [vmem:[%s75_s1 + $0x1a] sm:$0xff] %vm3_vm0, %v32_v4  }

// kernel: vision_transformer_forward.1
= control target key start
LH: loop header
LB: loop body
LE: loop exit
PB: predicated region body
PF: predicated region fallthrough
CT: control target
= control target key end

     0   :  { %s6018_s0 = inlined_call_operand.vmem [shape: f32[34,64], index: 0, kind: input, shape index: {}]   ;;  %s6019_s1 = inlined_call_operand.vmem [shape: f32[64,32], index: 1, kind: input, shape index: {}]   ;;  %s6020_s2 = inlined_call_operand.vmem [shape: f32[34,32], index: 2, kind: input, shape index: {}]   ;;  %s6021_s3 = inlined_call_operand.vmem [shape: f32[34,34], index: 3, kind: input, shape index: {}]   ;;  %s6022_s4 = inlined_call_operand.vmem [shape: f32[2,32,32], index: 4, kind: input, shape index: {}]   ;;  %s6023_s5 = inlined_call_operand.vmem [shape: f32[2,32,32], index: 5, kind: input, shape index: {}]   ;;  %s6024_s6 = inlined_call_operand.vmem [shape: f32[2,32,32], index: 6, kind: input, shape index: {}]   ;;  %s6025_s7 = inlined_call_operand.vmem [shape: f32[2,1,32], index: 7, kind: input, shape index: {}]   ;;  %s6026_s8 = inlined_call_operand.vmem [shape: f32[2,1,32], index: 8, kind: input, shape index: {}]   ;;  %s6027_s9 = inlined_call_operand.vmem [shape: f32[2,1,32], index: 9, kind: input, shape index: {}]   ;;  %s6028_s10 = inlined_call_operand.vmem [shape: f32[2,32,32], index: 10, kind: input, shape index: {}]   ;;  %s6029_s11 = inlined_call_operand.vmem [shape: f32[2,1,32], index: 11, kind: input, shape index: {}]   ;;  %s6030_s12 = inlined_call_operand.vmem [shape: f32[2,1,32], index: 12, kind: input, shape index: {}]   ;;  %s6031_s13 = inlined_call_operand.vmem [shape: f32[2,1,32], index: 13, kind: input, shape index: {}]   ;;  %s6032_s14 = inlined_call_operand.vmem [shape: f32[2,1,32], index: 14, kind: input, shape index: {}]   ;;  %s6033_s15 = inlined_call_operand.vmem [shape: f32[2,1,32], index: 15, kind: input, shape index: {}]   ;;  %s6034_s16 = inlined_call_operand.vmem [shape: f32[2,1,32], index: 16, kind: input, shape index: {}]   ;;  %s6035_s17 = inlined_call_operand.vmem [shape: bf16[2,32,2048], index: 17, kind: input, shape index: {}]   ;;  %s6036_s18 = inlined_call_operand.vmem [shape: f32[2,1,2048], index: 18, kind: input, shape index: {}]   ;;  %s6037_s19 = inlined_call_operand.vmem [shape: bf16[2,32,2048], index: 19, kind: input, shape index: {}]   ;;  %s6038_s20 = inlined_call_operand.vmem [shape: f32[32,10], index: 20, kind: input, shape index: {}]   ;;  %s6039_s21 = inlined_call_operand.vmem [shape: f32[1,10], index: 21, kind: input, shape index: {}]   ;;  %s6040_s22 = inlined_call_operand.hbm [shape: f32[2,10], index: 22, kind: output, shape index: {}]  }
   0x1   :  { %6056 = sst [smem:[#allocation20_spill]] %s6018_s0 }
   0x2   :  { %6057 = sst [smem:[#allocation21_spill]] %s6019_s1 }
   0x3   :  { %6058 = sst [smem:[#allocation22_spill]] %s6020_s2 }
   0x4   :  { %6059 = sst [smem:[#allocation23_spill]] %s6021_s3 }
   0x5   :  { %6060 = sst [smem:[#allocation24_spill]] %s6022_s4 }
   0x6   :  { %6061 = sst [smem:[#allocation25_spill]] %s6023_s5 }
   0x7   :  { %6062 = sst [smem:[#allocation26_spill]] %s6024_s6 }
   0x8   :  { %6063 = sst [smem:[#allocation27_spill]] %s6025_s7 }
   0x9   :  { %6064 = sst [smem:[#allocation28_spill]] %s6028_s10 }
   0xa   :  { %6065 = sst [smem:[#allocation29_spill]] %s6033_s15 }
   0xb   :  { %6066 = sst [smem:[#allocation30_spill]] %s6034_s16 }
   0xc   :  { %6067 = sst [smem:[#allocation31_spill]] %s6035_s17 }
   0xd   :  { %6068 = sst [smem:[#allocation32_spill]] %s6036_s18 }
   0xe   :  { %6069 = sst [smem:[#allocation33_spill]] %s6037_s19 }
   0xf   :  { %6070 = sst [smem:[#allocation34_spill]] %s6038_s20 }
  0x10   :  { %6071 = sst [smem:[#allocation35_spill]] %s6039_s21 }
  0x11   :  { %6072 = sst [smem:[#allocation36_spill]] %s6040_s22 }
  0x12   :  { %27 = vsyncpa [#allocation8], 0  ;;  %s4934_s3 = smov 0   ;;  %s4936_s28 = smov 0  }
  0x13   :  { %s4938_s29 = smov 0   ;;  %s4940_s30 = smov 0  }
  0x14   :  { %s4942_s4 = smov 0   ;;  %s4944_s0 = smov 0  }
  0x15   :  { %s4946_s23 = smov 0  }
  0x16 LB: > { %6073 = sst [smem:[#allocation10_spill]] %s4786_s28  ;;  %s42_s5 = sadd.s32 1, %s4798_s4  ;;  %s4806_s23 = sphi %s4946_s23, %s33_s23   ;;  %s4802_s0 = sphi %s4944_s0, %s6130_s0   ;;  %s4798_s4 = sphi %s4942_s4, %s6129_s4   ;;  %s4794_s30 = sphi %s4940_s30, %s6128_s30   ;;  %s4790_s29 = sphi %s4938_s29, %s6127_s29   ;;  %s4786_s28 = sphi %s4936_s28, %s6126_s28   ;;  %s4782_s3 = sphi %s4934_s3, %s6125_s3  }
  0x17   : > { %6074 = sst [smem:[#allocation11_spill]] %s4798_s4  ;;  %p43_p0 = scmp.ge.s32.totalorder %s42_s5, 4 }
  0x18   : > { %6075 = sst [smem:[#allocation12_spill]] %s4802_s0  ;;  %s45_s24 = sadd.s32 1, %s4802_s0 }
  0x19   : > { %6076 = sst [smem:[#allocation13_spill]] %s4806_s23  ;;  %p483_p1 = scmp.ne.s32.totalorder %s4786_s28, %s4782_s3 }
  0x1a   : > { %s6132_s5 = smov (%p43_p0, %s42_s5), 0  ;;  %s6134_s24 = smov (!%p43_p0, %s45_s24), %s4802_s0 }
  0x1b   : > { %6077 = sst [smem:[#allocation14_spill]] %s6132_s5  ;;  %p484_p2 = scmp.eq.s32.totalorder %s4806_s23, 0 }
  0x1c   : > { %p47_p3 = scmp.ge.s32.totalorder %s6134_s24, 2  ;;  %s472_s6 = ssub.s32 %s4798_s4, %s6132_s5 }
  0x1d   : > { %p4980_p4 = por %p484_p2, %p483_p1  ;;  %s476_s27 = sadd.s32 1, %s4786_s28 }
  0x1e   : > { %s6136_s24 = smov (%p47_p3, %s6134_s24), 0  ;;  %p3738_p6 = scmp.ge.s32.totalorder %s4806_s23, 8 }
  0x1f   : > { %6079 = sst [smem:[#allocation15_spill]] %s6136_s24  ;;  %s471_s26 = ssub.s32 %s4802_s0, %s6136_s24 }
  0x20   : > { %s473_s2 = sor.u32 %s472_s6, %s471_s26  ;;  %646 = sbr.rel (%p3738_p6) target bundleno = 67 (0x43), region = 40 }
  0x21   : > { %p474_p5 = scmp.eq.s32.totalorder %s473_s2, 0 }
  0x23   : > { %s4990_s1 = scalar_select %p474_p5, %s4786_s28, %s476_s27  }
  0x25   : > { %6080 = sst [smem:[#allocation16_spill]] %s4990_s1 }
  0x27   : > { %735 = sbr.rel (!%p4980_p4) target bundleno = 53 (0x35), region = 96  ;;  %s737_s5 = sand.u32 (%p4980_p4), 1, %s4786_s28  }
  0x28   : > { %s3740_s22 = sshll.u32 (%p4980_p4), %s4798_s4, 2  ;;  %s3739_s21 = sshll.u32 (%p4980_p4), %s737_s5, 6 }
  0x29   : > { %s3741_s20 = sshll.u32 (%p4980_p4), %s4802_s0, 6  ;;  %s6081_s17 = sld [smem:[#allocation31_spill]] (%p4980_p4) }
  0x2a   : > { %s742_s18 = sadd.s32 (%p4980_p4), %s3741_s20, %s3740_s22  ;;  %s739_s27 = scalar_lea.vmem (%p4980_p4), [#allocation5], %s3739_s21 }
  0x2b   : > { %s3742_s24 = sshll.u32 (%p4980_p4), %s742_s18, 2 }
  0x2f   : > { %s744_s2 = scalar_lea.vmem %s6081_s17, %s3742_s24 }
  0x30   : > { %v757_v0 = vld [vmem:[%s744_s2] sm:$0xff]  ;;  %v759_v1 = vld [vmem:[%s744_s2 + $0x8] sm:$0xff] }
  0x31   : > { %v761_v2 = vld [vmem:[%s744_s2 + $0x40] sm:$0xff]  ;;  %758 = vst [vmem:[%s739_s27] sm:$0xff] %v757_v0  ;;  %760 = vst [vmem:[%s739_s27 + $0x8] sm:$0xff] %v759_v1  ;;  %v763_v3 = vld [vmem:[%s744_s2 + $0x48] sm:$0xff] }
  0x32   : > { %762 = vst [vmem:[%s739_s27 + $0x10] sm:$0xff] %v761_v2  ;;  %v765_v4 = vld [vmem:[%s744_s2 + $0x80] sm:$0xff]  ;;  %v767_v5 = vld [vmem:[%s744_s2 + $0x88] sm:$0xff]  ;;  %764 = vst [vmem:[%s739_s27 + $0x18] sm:$0xff] %v763_v3 }
  0x33   : > { %766 = vst [vmem:[%s739_s27 + $0x20] sm:$0xff] %v765_v4  ;;  %768 = vst [vmem:[%s739_s27 + $0x28] sm:$0xff] %v767_v5  ;;  %v769_v6 = vld [vmem:[%s744_s2 + $0xc0] sm:$0xff]  ;;  %v771_v7 = vld [vmem:[%s744_s2 + $0xc8] sm:$0xff] }
  0x34   : > { %770 = vst [vmem:[%s739_s27 + $0x30] sm:$0xff] %v769_v6  ;;  %772 = vst [vmem:[%s739_s27 + $0x38] sm:$0xff] %v771_v7 }
  0x35 PF: > { %790 = sbr.rel (!%p4980_p4) target bundleno = 67 (0x43), region = 123  ;;  %s792_s18 = sand.u32 (%p4980_p4), 1, %s4786_s28  }
  0x36   : > { %s3744_s20 = sshll.u32 (%p4980_p4), %s4798_s4, 2  ;;  %s3743_s21 = sshll.u32 (%p4980_p4), %s792_s18, 6 }
  0x37   : > { %s3745_s22 = sshll.u32 (%p4980_p4), %s4802_s0, 6  ;;  %s6082_s19 = sld [smem:[#allocation33_spill]] (%p4980_p4) }
  0x38   : > { %s797_s5 = sadd.s32 (%p4980_p4), %s3745_s22, %s3744_s20  ;;  %s794_s2 = scalar_lea.vmem (%p4980_p4), [#allocation6], %s3743_s21 }
  0x39   : > { %s3746_s24 = sshll.u32 (%p4980_p4), %s797_s5, 2 }
  0x3d   : > { %s799_s17 = scalar_lea.vmem %s6082_s19, %s3746_s24 }
  0x3e   : > { %v812_v8 = vld [vmem:[%s799_s17] sm:$0xff]  ;;  %v814_v9 = vld [vmem:[%s799_s17 + $0x8] sm:$0xff] }
  0x3f   : > { %v816_v10 = vld [vmem:[%s799_s17 + $0x40] sm:$0xff]  ;;  %813 = vst [vmem:[%s794_s2] sm:$0xff] %v812_v8  ;;  %815 = vst [vmem:[%s794_s2 + $0x8] sm:$0xff] %v814_v9  ;;  %v818_v11 = vld [vmem:[%s799_s17 + $0x48] sm:$0xff] }
  0x40   : > { %817 = vst [vmem:[%s794_s2 + $0x10] sm:$0xff] %v816_v10  ;;  %v820_v12 = vld [vmem:[%s799_s17 + $0x80] sm:$0xff]  ;;  %v822_v13 = vld [vmem:[%s799_s17 + $0x88] sm:$0xff]  ;;  %819 = vst [vmem:[%s794_s2 + $0x18] sm:$0xff] %v818_v11 }
  0x41   : > { %821 = vst [vmem:[%s794_s2 + $0x20] sm:$0xff] %v820_v12  ;;  %823 = vst [vmem:[%s794_s2 + $0x28] sm:$0xff] %v822_v13  ;;  %v824_v14 = vld [vmem:[%s799_s17 + $0xc0] sm:$0xff]  ;;  %v826_v15 = vld [vmem:[%s799_s17 + $0xc8] sm:$0xff] }
  0x42   : > { %825 = vst [vmem:[%s794_s2 + $0x30] sm:$0xff] %v824_v14  ;;  %827 = vst [vmem:[%s794_s2 + $0x38] sm:$0xff] %v826_v15 }
  0x43 PF: > { %p3747_p7 = scmp.ge.s32.totalorder %s4806_s23, 1  ;;  %p832_p8 = scmp.lt.s32.totalorder %s4806_s23, 9 }
  0x45   : > { %p833_p9 = pnand %p3747_p7, %p832_p8 }
  0x47   : > { %836 = sbr.rel (%p833_p9) target bundleno = 2999 (0xbb7), region = 146 }
  0x4e   : > { %s839_s25 = sand.u32 1, %s4782_s3   ;;  %p961_p10 = scmp.lt.s32.totalorder %s4794_s30, 1 }
  0x4f   : > { %s3748_s27 = sshll.u32 %s839_s25, 6  ;;  %s3758_s18 = sshll.u32 %s4790_s29, 2 }
  0x50   : > { %s5015_s17 = scalar_select %p961_p10, %s4794_s30, 1 }
  0x51   : > { %p5017_p11 = scmp.lt.s32.totalorder %s3758_s18, 15  ;;  %p1020_p12 = scmp.eq.s32.totalorder %s4794_s30, 0 }
  0x52   : > { %s3904_s3 = sshll.u32 %s5015_s17, 5  ;;  %s6085_s26 = sld [smem:[#allocation24_spill]] }
  0x53   : > { %s6087_s0 = sld [smem:[#allocation25_spill]]  ;;  %s6088_s23 = sld [smem:[#allocation26_spill]] }
  0x54   : > { %s6090_s10 = sld [smem:[#allocation28_spill]]  ;;  %s992_s28 = scalar_lea.vmem %s6029_s11, %s5015_s17 }
  0x55   : > { %s1001_s5 = scalar_lea.vmem %s6032_s14, %s5015_s17  ;;  %s6138_s18 = smov (!%p5017_p11, %s3758_s18), 15 }
  0x56   : > { %s3759_s1 = sshll.u32 %s5015_s17, 4  ;;  %p1021_p13 = scmp.eq.s32.totalorder %s4790_s29, 0 }
  0x57   : > { %s6094_s21 = sld [smem:[#allocation32_spill]]  ;;  %s5091_s7 = scalar_lea.vmem [#allocation5], %s3748_s27 }
  0x58   : > { %s5030_s2 = scalar_lea.vmem %s6085_s26, %s3904_s3  ;;  %p1022_p0 = pnand %p1021_p13, %p1020_p12 }
  0x59   : > { %6086 = sst [smem:[#allocation17_spill]] %s5030_s2  ;;  %s5035_s4 = scalar_lea.vmem %s6087_s0, %s3904_s3  ;;  %v4808_v19 = vmov (!%p1022_p0), 0.0|0.0   ;;  %vm4809_vm0 = vmmov (!%p1022_p0), 0   ;;  %v4810_v22 = vmov (!%p1022_p0), 0.0   ;;  %vm1044_vm1 = vcmask (!%p1022_p0), 523264  }
  0x5a   : > { %s5040_s16 = scalar_lea.vmem %s6088_s23, %s3904_s3  ;;  %s5053_s19 = scalar_lea.vmem %s6090_s10, %s3904_s3  ;;  %4376 = vmatprep.subr.bf16.mxu0 (!%p1022_p0), %v4808_v19  ;;  %4482 = vmatprep.subr.bf16.mxu1 (!%p1022_p0), %v4808_v19  ;;  %vm1150_vm2 = vcmask (!%p1022_p0), 261120   ;;  %vm1155_vm3 = vcmask (!%p1022_p0), 254976  }
  0x5b   : > { %6089 = sst [smem:[#allocation18_spill]] %s5040_s16  ;;  %s995_s16 = scalar_lea.vmem %s6030_s12, %s5015_s17  ;;  %4058 = vmatprep.mubr.msk.f32.mxu0 (!%p1022_p0), %vm4809_vm0, %v4810_v22  ;;  %4067 = vmatprep.mubr.msk.f32.mxu1 (!%p1022_p0), %vm4809_vm0, %v4810_v22 }
  0x5c   : > { %6091 = sst [smem:[#allocation19_spill]] %s5053_s19  ;;  %s6092_s3 = sld [smem:[#allocation29_spill]] }
  0x5d   : > { %s6093_s0 = sld [smem:[#allocation30_spill]]  ;;  %s5083_s23 = sadd.s32 %s3759_s1, %s6138_s18 }
  0x5e   : > { %s1016_s22 = scalar_lea.vmem %s6094_s21, %s5083_s23  ;;  %s5093_s24 = scalar_lea.vmem [#allocation6], %s3748_s27 }
  0x5f   : > { %1025 = sbr.rel (%p1022_p0) target bundleno = 342 (0x156), region = 158  ;;  %s6095_s20 = sld [smem:[#allocation21_spill]] (!%p1022_p0) }
  0x60   : > { %s6096_s27 = sld [smem:[#allocation20_spill]] (!%p1022_p0)  ;;  %s6097_s1 = sld [smem:[#allocation22_spill]] (!%p1022_p0) }
  0x62   : > { %s1004_s26 = scalar_lea.vmem %s6092_s3, %s5015_s17 }
  0x63   : > { %s1007_s25 = scalar_lea.vmem %s6093_s0, %s5015_s17 }
  0x65   : > { %v1031_v16 = vld [vmem:[%s6095_s20] sm:$0xff] (!%p1022_p0)  ;;  %v1032_v17 = vld [vmem:[%s6095_s20 + $0x8] sm:$0xff] (!%p1022_p0)  ;;  %v1033_v18 = vld [vmem:[%s6095_s20 + $0x10] sm:$0xff] (!%p1022_p0) }
  0x66   : > { %v4377_v20 = vpack.c.bf16 %v1032_v17, %v1031_v16  ;;  %v1034_v21 = vld [vmem:[%s6095_s20 + $0x18] sm:$0xff]  ;;  %v1035_v24 = vld [vmem:[%s6095_s20 + $0x20] sm:$0xff]  ;;  %v1036_v25 = vld [vmem:[%s6095_s20 + $0x28] sm:$0xff] }
  0x67   : > { %v4380_v23 = vpack.c.bf16 %v1034_v21, %v1033_v18  ;;  %v4383_v26 = vpack.c.bf16 %v1036_v25, %v1035_v24  ;;  %v1037_v27 = vld [vmem:[%s6095_s20 + $0x30] sm:$0xff]  ;;  %v1038_v28 = vld [vmem:[%s6095_s20 + $0x38] sm:$0xff]  ;;  %v1026_v30 = vld [vmem:[%s6096_s27] sm:$0xff] }
  0x68   : > { %4378 = vmatpush3.bf16.msra.mxu0 %v4377_v20  ;;  %4486 = vmatpush3.bf16.msra.mxu1 %v4377_v20  ;;  %v4386_v29 = vpack.c.bf16 %v1038_v28, %v1037_v27  ;;  %v1029_v31 = vld [vmem:[%s6096_s27 + $0x18] sm:$0xff]  ;;  %v1027_v32 = vld [vmem:[%s6096_s27 + $0x8] sm:$0xff]  ;;  %v1030_v33 = vld [vmem:[%s6096_s27 + $0x20] sm:$0x3] }
  0x69   : > { %4379 = vmatprep.subr.bf16.mxu0 %v4808_v19  ;;  %4483 = vmatprep.subr.bf16.mxu1 %v4808_v19  ;;  %v1028_v34 = vld [vmem:[%s6096_s27 + $0x10] sm:$0xff]  ;;  %v1039_v35 = vld [vmem:[%s6097_s1] sm:$0xff]  ;;  %v1042_v36 = vld [vmem:[%s6097_s1 + $0x18] sm:$0xff] }
  0x6a   : > { %v1040_v43 = vld [vmem:[%s6097_s1 + $0x8] sm:$0xff]  ;;  %v1043_v44 = vld [vmem:[%s6097_s1 + $0x20] sm:$0x3]  ;;  %v1041_v51 = vld [vmem:[%s6097_s1 + $0x10] sm:$0xff] }
  0x6c   : > { %4381 = vmatpush3.bf16.msra.mxu0 %v4380_v23  ;;  %4487 = vmatpush3.bf16.msra.mxu1 %v4380_v23 }
  0x6d   : > { %4382 = vmatprep.subr.bf16.mxu0 %v4808_v19  ;;  %4484 = vmatprep.subr.bf16.mxu1 %v4808_v19 }
  0x70   : > { %4384 = vmatpush3.bf16.msra.mxu0 %v4383_v26  ;;  %4488 = vmatpush3.bf16.msra.mxu1 %v4383_v26 }
  0x71   : > { %4385 = vmatprep.subr.bf16.mxu0 %v4808_v19  ;;  %4485 = vmatprep.subr.bf16.mxu1 %v4808_v19 }
  0x74   : > { %4387 = vmatpush3.bf16.msra.mxu0 %v4386_v29  ;;  %4489 = vmatpush3.bf16.msra.mxu1 %v4386_v29 }
  0x77   : > { %4059 = vmatmul.mubr.msk.f32.vlgmr.msra.gmra.mrb[0].mxu0 %vm1044_vm1, %v1026_v30  ;;  %4068 = vmatmul.mubr.msk.f32.vlgmr.msra.gmra.mrb[0].mxu1 %vm1044_vm1, %v1029_v31 }
  0x78   : > { %4061 = vmatprep.mubr.msk.f32.mxu0 %vm4809_vm0, %v4810_v22  ;;  %4070 = vmatprep.mubr.msk.f32.mxu1 %vm4809_vm0, %v4810_v22 }
  0x7b   : > { %4062 = vmatmul.mubr.msk.f32.gmra.mrb[2].mxu0 %vm1044_vm1, %v1027_v32  ;;  %4071 = vmatmul.mubr.msk.f32.gmra.mrb[2].mxu1 %vm1044_vm1, %v1030_v33 }
  0x7c   : > { %4064 = vmatprep.mubr.msk.f32.mxu0 %vm4809_vm0, %v4810_v22 }
  0x7f   : > { %4065 = vmatmul.mubr.msk.f32.gmra.mrb[4].mxu0 %vm1044_vm1, %v1028_v34 }
 0x14a   : > { %v1126_v37 = vpop.f32.mrb[0].mxu0  ;;  %v1141_v38 = vpop.f32.mrb[0].mxu1 }
 0x14b   : > { %v1127_v39 = vadd.f32 %v1126_v37, %v1039_v35  ;;  %v4060_v40 = vpop.f32.mrb[1].mxu0  ;;  %v1142_v41 = vadd.f32 %v1141_v38, %v1042_v36  ;;  %v4069_v42 = vpop.f32.mrb[1].mxu1 }
 0x14d   : > { %1151 = vst.msk [vmem:[#allocation2] sm:$0xff] %vm1150_vm2, %v1127_v39  ;;  %1154 = vst.msk [vmem:[#allocation2 + $0x18] sm:$0xff] %vm1150_vm2, %v1142_v41 }
 0x14e   : > { %v1131_v45 = vpop.f32.mrb[2].mxu0  ;;  %v1146_v46 = vpop.f32.mrb[2].mxu1 }
 0x14f   : > { %v1132_v47 = vadd.f32 %v1131_v45, %v1040_v43  ;;  %v4063_v48 = vpop.f32.mrb[3].mxu0  ;;  %v1147_v49 = vadd.f32 %v1146_v46, %v1043_v44  ;;  %v4072_v50 = vpop.f32.mrb[3].mxu1 }
 0x151   : > { %1152 = vst.msk [vmem:[#allocation2 + $0x8] sm:$0xff] %vm1150_vm2, %v1132_v47 }
 0x152   : > { %1156 = vst.msk [vmem:[#allocation2 + $0x20] sm:$0x3] %vm1155_vm3, %v1147_v49  ;;  %v1136_v52 = vpop.f32.mrb[4].mxu0 }
 0x153   : > { %v1137_v53 = vadd.f32 %v1136_v52, %v1041_v51  ;;  %v4066_v54 = vpop.f32.mrb[5].mxu0 }
 0x155   : > { %1153 = vst.msk [vmem:[#allocation2 + $0x10] sm:$0xff] %vm1150_vm2, %v1137_v53 }
 0x156 PF: > { %p3765_p1 = scmp.ne.s32.totalorder %s4790_s29, 0 }
 0x157   : > { %v1282_v55 = vld [vmem:[%s5035_s4] sm:$0xff] (!%p3765_p1)  ;;  %s6098_s21 = sld [smem:[#allocation17_spill]] (!%p3765_p1)  ;;  %v1283_v56 = vld [vmem:[%s5035_s4 + $0x8] sm:$0xff] (!%p3765_p1)  ;;  %v1284_v57 = vld [vmem:[%s5035_s4 + $0x10] sm:$0xff] (!%p3765_p1)  ;;  %v4811_v58 = vmov (!%p3765_p1), 0.0|0.0   ;;  %vm4812_vm4 = vmmov (!%p3765_p1), 0   ;;  %s6100_s10 = scalar_lea.vmem (!%p3765_p1), %s6026_s8, %s5015_s17  ;;  %v1484_v31 = vlaneseq (!%p3765_p1) }
 0x158   : > { %1159 = sbr.rel (%p3765_p1) target bundleno = 1939 (0x793), region = 162  ;;  %4394 = vmatprep.subr.bf16.mxu1 (!%p3765_p1), %v4811_v58  ;;  %v4395_v59 = vpack.c.bf16 (!%p3765_p1), %v1283_v56, %v1282_v55  ;;  %v1285_v60 = vld [vmem:[%s5035_s4 + $0x18] sm:$0xff] (!%p3765_p1)  ;;  %v4813_v61 = vmov (!%p3765_p1), 0.0   ;;  %vm1176_vm5 = vcmask (!%p3765_p1), 261120   ;;  %s6099_s4 = sld [smem:[#allocation18_spill]] (!%p3765_p1)  ;;  %4388 = vmatprep.subr.bf16.mxu0 (!%p3765_p1), %v4811_v58  ;;  %v1160_v5 = vld [vmem:[#allocation2] sm:$0xff] (!%p3765_p1) }
 0x159   : > { %4104 = vmatprep.mubr.msk.f32.mxu1 (!%p3765_p1), %vm4812_vm4, %v4813_v61  ;;  %2860 = vst.msk [vmem:[#allocation4] sm:$0xff] (!%p3765_p1), %vm1176_vm5, %v4813_v61  ;;  %2861 = vst.msk [vmem:[#allocation4 + $0x8] sm:$0xff] (!%p3765_p1), %vm1176_vm5, %v4813_v61  ;;  %4081 = vmatprep.mubr.msk.f32.mxu0 (!%p3765_p1), %vm4812_vm4, %v4813_v61  ;;  %v4398_v63 = vpack.c.bf16 (!%p3765_p1), %v1285_v60, %v1284_v57  ;;  %v1161_v8 = vld [vmem:[#allocation2 + $0x8] sm:$0xff] (!%p3765_p1)  ;;  %v1163_v11 = vld [vmem:[#allocation2 + $0x18] sm:$0xff] (!%p3765_p1)  ;;  %v5259_v39 = vand.u32 (!%p3765_p1), 127, %v1484_v31  ;;  %s6103_s3 = sld [smem:[#allocation27_spill]] (!%p3765_p1) }
 0x15a   : > { %2862 = vst.msk [vmem:[#allocation4 + $0x10] sm:$0xff] (!%p3765_p1), %vm1176_vm5, %v4813_v61  ;;  %2863 = vst.msk [vmem:[#allocation4 + $0x18] sm:$0xff] (!%p3765_p1), %vm1176_vm5, %v4813_v61  ;;  %4396 = vmatpush3.bf16.msra.mxu1 (!%p3765_p1), %v4395_v59  ;;  %v1164_v12 = vld [vmem:[#allocation2 + $0x20] sm:$0x3] (!%p3765_p1)  ;;  %vm1869_vm2 = vcmask (!%p3765_p1), 1041408   ;;  %vm1619_vm3 = vcmask (!%p3765_p1), 277504  }
 0x15b   : > { %4397 = vmatprep.subr.bf16.mxu1 (!%p3765_p1), %v4811_v58  ;;  %v3772_v18 = vld [vmem:[%s6100_s10] ss:$0 sm:$0xff] (!%p3765_p1)  ;;  %vm5243_vm6 = vmpackc.low (!%p3765_p1), %vm1176_vm5, %vm1176_vm5  ;;  %vm1681_vm7 = vcmp.ge.s32.totalorder (!%p3765_p1), %v5259_v39, 8  ;;  %vm1682_vm8 = vcmp.lt.s32.totalorder (!%p3765_p1), %v5259_v39, 16  ;;  %vm1487_vm10 = vcmp.lt.s32.totalorder (!%p3765_p1), %v5259_v39, 8  ;;  %vm2071_vm11 = vcmp.ge.s32.totalorder (!%p3765_p1), %v5259_v39, 16 }
 0x15c   : > { %v1162_v10 = vld [vmem:[#allocation2 + $0x10] sm:$0xff] (!%p3765_p1)  ;;  %vm5280_vm9 = vmand (!%p3765_p1), %vm1681_vm7, %vm1682_vm8  ;;  %vm2072_vm12 = vcmp.lt.s32.totalorder (!%p3765_p1), %v5259_v39, 24  ;;  %vm2357_vm14 = vcmp.ge.s32.totalorder (!%p3765_p1), %v5259_v39, 24  ;;  %vm2358_vm15 = vcmp.lt.s32.totalorder (!%p3765_p1), %v5259_v39, 32  ;;  %s6112_s10 = sld [smem:[#allocation23_spill]] (!%p3765_p1)  ;;  %s6113_s15 = sld [smem:[#allocation19_spill]] (!%p3765_p1) }
 0x15d   : > { %v1165_v62 = vld [vmem:[%s6098_s21] sm:$0xff] (!%p3765_p1)  ;;  %v1166_v0 = vld [vmem:[%s6098_s21 + $0x8] sm:$0xff] (!%p3765_p1)  ;;  %v1167_v1 = vld [vmem:[%s6098_s21 + $0x10] sm:$0xff] (!%p3765_p1) }
 0x15e   : > { %v1168_v2 = vld [vmem:[%s6098_s21 + $0x18] sm:$0xff] (!%p3765_p1)  ;;  %v4389_v3 = vpack.c.bf16 (!%p3765_p1), %v1166_v0, %v1165_v62  ;;  %4399 = vmatpush3.bf16.msra.mxu1 (!%p3765_p1), %v4398_v63  ;;  %v1383_v6 = vld [vmem:[%s6099_s4] sm:$0xff] (!%p3765_p1)  ;;  %v1384_v7 = vld [vmem:[%s6099_s4 + $0x8] sm:$0xff] (!%p3765_p1)  ;;  %s6114_s21 = scalar_lea.vmem (!%p3765_p1), %s6031_s13, %s5015_s17 }
 0x15f   : > { %v4392_v4 = vpack.c.bf16 %v1168_v2, %v1167_v1  ;;  %4406 = vmatprep.subr.bf16.mxu1 %v4811_v58  ;;  %v4401_v9 = vpack.c.bf16 %v1384_v7, %v1383_v6  ;;  %v1385_v13 = vld [vmem:[%s6099_s4 + $0x10] sm:$0xff]  ;;  %v1386_v14 = vld [vmem:[%s6099_s4 + $0x18] sm:$0xff]  ;;  %s6104_s18 = scalar_lea.vmem %s6103_s3, %s5015_s17  ;;  %vm5361_vm13 = vmand %vm2071_vm11, %vm2072_vm12  ;;  %s6111_s4 = scalar_lea.vmem %s6027_s9, %s5015_s17 }
 0x160   : > { %4390 = vmatpush3.bf16.msra.mxu0 %v4389_v3  ;;  %v4404_v15 = vpack.c.bf16 %v1386_v14, %v1385_v13  ;;  %v3766_v44 = vld [vmem:[%s6104_s18] ss:$0 sm:$0xff]  ;;  %vm5409_vm0 = vmand %vm2357_vm14, %vm2358_vm15 }
 0x161   : > { %4391 = vmatprep.subr.bf16.mxu0 %v4811_v58  ;;  %4105 = vmatmul.mubr.msk.f32.vlgmr.msra.gmra.mrb[0].mxu1 %vm1176_vm5, %v1160_v5  ;;  %v3778_v14 = vld [vmem:[%s6111_s4] ss:$0 sm:$0xff]  ;;  %vm4424_vm1 = vmpackc.low %vm5280_vm9, %vm5280_vm9 }
 0x162   : > { %4107 = vmatprep.mubr.msk.f32.mxu1 %vm4812_vm4, %v4813_v61  ;;  %vm4432_vm7 = vmpackc.low %vm1487_vm10, %vm1487_vm10 }
 0x163   : > { %vm4448_vm8 = vmpackc.low %vm5361_vm13, %vm5361_vm13 }
 0x164   : > { %4393 = vmatpush3.bf16.msra.mxu0 %v4392_v4 }
 0x165   : > { %4400 = vmatprep.subr.bf16.mxu0 %v4811_v58  ;;  %4108 = vmatmul.mubr.msk.f32.gmra.mrb[2].mxu1 %vm1176_vm5, %v1161_v8 }
 0x166   : > { %4110 = vmatprep.mubr.msk.f32.mxu1 %vm4812_vm4, %v4813_v61 }
 0x167   : > { %4082 = vmatmul.mubr.msk.f32.vlgmr.msra.gmra.mrb[0].mxu0 %vm1176_vm5, %v1160_v5 }
 0x168   : > { %4084 = vmatprep.mubr.msk.f32.mxu0 %vm4812_vm4, %v4813_v61  ;;  %4402 = vmatpush3.bf16.msra.mxu0 %v4401_v9 }
 0x169   : > { %4403 = vmatprep.subr.bf16.mxu0 %v4811_v58  ;;  %4111 = vmatmul.mubr.msk.f32.gmra.mrb[4].mxu1 %vm1176_vm5, %v1162_v10 }
 0x16a   : > { %4113 = vmatprep.mubr.msk.f32.mxu1 %vm4812_vm4, %v4813_v61 }
 0x16b   : > { %4085 = vmatmul.mubr.msk.f32.gmra.mrb[2].mxu0 %vm1176_vm5, %v1161_v8 }
 0x16c   : > { %4087 = vmatprep.mubr.msk.f32.mxu0 %vm4812_vm4, %v4813_v61  ;;  %4405 = vmatpush3.bf16.msra.mxu0 %v4404_v15 }
 0x16d   : > { %4114 = vmatmul.mubr.msk.f32.gmra.mrb[6].mxu1 %vm1176_vm5, %v1163_v11  ;;  %4414 = vmatprep.subr.bf16.mxu0 %v4811_v58 }
 0x16e   : > { %4116 = vmatprep.mubr.msk.f32.mxu1 %vm4812_vm4, %v4813_v61 }
 0x16f   : > { %4088 = vmatmul.mubr.msk.f32.gmra.mrb[4].mxu0 %vm1176_vm5, %v1162_v10 }
 0x170   : > { %4090 = vmatprep.mubr.msk.f32.mxu0 %vm4812_vm4, %v4813_v61 }
 0x171   : > { %4117 = vmatmul.mubr.msk.f32.gmra.mrb[8].mxu1 %vm1176_vm5, %v1164_v12 }
 0x172   : > { %4152 = vmatprep.mubr.msk.f32.mxu1 %vm4812_vm4, %v4813_v61 }
 0x173   : > { %4091 = vmatmul.mubr.msk.f32.gmra.mrb[6].mxu0 %vm1176_vm5, %v1163_v11 }
 0x174   : > { %4093 = vmatprep.mubr.msk.f32.mxu0 %vm4812_vm4, %v4813_v61 }
 0x177   : > { %4094 = vmatmul.mubr.msk.f32.gmra.mrb[8].mxu0 %vm1176_vm5, %v1164_v12 }
 0x178   : > { %4127 = vmatprep.mubr.msk.f32.mxu0 %vm4812_vm4, %v4813_v61 }
 0x17b   : > { %4128 = vmatmul.mubr.msk.f32.vlgmr.msra.gmra.mrb[10].mxu0 %vm1176_vm5, %v1160_v5 }
 0x17c   : > { %4130 = vmatprep.mubr.msk.f32.mxu0 %vm4812_vm4, %v4813_v61 }
 0x17f   : > { %4131 = vmatmul.mubr.msk.f32.gmra.mrb[12].mxu0 %vm1176_vm5, %v1161_v8 }
 0x180   : > { %4133 = vmatprep.mubr.msk.f32.mxu0 %vm4812_vm4, %v4813_v61 }
 0x183   : > { %4134 = vmatmul.mubr.msk.f32.gmra.mrb[14].mxu0 %vm1176_vm5, %v1162_v10 }
 0x184   : > { %4136 = vmatprep.mubr.msk.f32.mxu0 %vm4812_vm4, %v4813_v61 }
 0x187   : > { %4137 = vmatmul.mubr.msk.f32.gmra.mrb[16].mxu0 %vm1176_vm5, %v1163_v11 }
 0x188   : > { %4139 = vmatprep.mubr.msk.f32.mxu0 %vm4812_vm4, %v4813_v61 }
 0x18b   : > { %4140 = vmatmul.mubr.msk.f32.gmra.mrb[18].mxu0 %vm1176_vm5, %v1164_v12 }
 0x18c   : > { %4177 = vmatprep.mubr.msk.f32.mxu0 %vm4812_vm4, %v4813_v61 }
 0x234   : > { %v1359_v16 = vpop.f32.mrb[0].mxu1 }
 0x235   : > { %v4106_v17 = vpop.f32.mrb[1].mxu1  ;;  %v1360_v22 = vadd.f32 %v3772_v18, %v1359_v16 }
 0x238   : > { %v1364_v20 = vpop.f32.mrb[2].mxu1 }
 0x239   : > { %v1365_v23 = vadd.f32 %v3772_v18, %v1364_v20  ;;  %v4109_v24 = vpop.f32.mrb[3].mxu1 }
 0x23a   : > { %v1258_v19 = vpop.f32.mrb[0].mxu0 }
 0x23b   : > { %v4083_v21 = vpop.f32.mrb[1].mxu0  ;;  %v5247_v26 = vpack.c.bf16 %v1365_v23, %v1360_v22  ;;  %v5278_v48 = vadd.f32 %v3766_v44, %v1258_v19 }
 0x23c   : > { %v1369_v28 = vpop.f32.mrb[4].mxu1 }
 0x23d   : > { %v4112_v30 = vpop.f32.mrb[5].mxu1  ;;  %4409 = vmatpush3.bf16.xpose.msk.msra.mxu1 %vm5243_vm6, %v5247_v26  ;;  %4417 = vmatpush3.bf16.xpose.msk.msra.mxu0 %vm5243_vm6, %v5247_v26  ;;  %v1370_v35 = vadd.f32 %v3772_v18, %v1369_v28  ;;  %v1684_v51 = vsel %vm5280_vm9, %v5278_v48, 0.0  ;;  %v1489_v52 = vsel %vm1487_vm10, %v5278_v48, 0.0  ;;  %v2074_v3 = vsel %vm5361_vm13, %v5278_v48, 0.0 }
 0x23e   : > { %v1263_v27 = vpop.f32.mrb[2].mxu0  ;;  %4410 = vmatprep.subr.bf16.mxu1 %v4811_v58  ;;  %4418 = vmatprep.subr.bf16.mxu0 %v4811_v58  ;;  %v2360_v9 = vsel %vm5409_vm0, %v5278_v48, 0.0 }
 0x23f   : > { %v4086_v29 = vpop.f32.mrb[3].mxu0  ;;  %v5289_v50 = vadd.f32 %v3766_v44, %v1263_v27 }
 0x240   : > { %v1374_v33 = vpop.f32.mrb[6].mxu1 }
 0x241   : > { %v1375_v36 = vadd.f32 %v3772_v18, %v1374_v33  ;;  %v4115_v37 = vpop.f32.mrb[7].mxu1  ;;  %v1685_v54 = vsel %vm5280_vm9, %v5289_v50, 0.0  ;;  %v1490_v55 = vsel %vm1487_vm10, %v5289_v50, 0.0  ;;  %v2075_v4 = vsel %vm5361_vm13, %v5289_v50, 0.0  ;;  %v5473_v33 = vld [vmem:[%s6112_s10] sm:$0xff] }
 0x242   : > { %v1268_v32 = vpop.f32.mrb[4].mxu0  ;;  %v2361_v10 = vsel %vm5409_vm0, %v5289_v50, 0.0 }
 0x243   : > { %v4089_v34 = vpop.f32.mrb[5].mxu0  ;;  %v5257_v38 = vpack.c.bf16 %v1375_v36, %v1370_v35  ;;  %v5306_v53 = vadd.f32 %v3766_v44, %v1268_v32 }
 0x244   : > { %v1379_v41 = vpop.f32.mrb[8].mxu1 }
 0x245   : > { %4413 = vmatpush3.bf16.xpose.msk.msra.mxu1 %vm5243_vm6, %v5257_v38  ;;  %4421 = vmatpush3.bf16.xpose.msk.msra.mxu0 %vm5243_vm6, %v5257_v38  ;;  %v4118_v43 = vpop.f32.mrb[9].mxu1  ;;  %v5276_v47 = vadd.f32 %v3772_v18, %v1379_v41  ;;  %v1686_v57 = vsel %vm5280_vm9, %v5306_v53, 0.0  ;;  %v1491_v59 = vsel %vm1487_vm10, %v5306_v53, 0.0  ;;  %v2076_v5 = vsel %vm5361_vm13, %v5306_v53, 0.0 }
 0x246   : > { %v1273_v40 = vpop.f32.mrb[6].mxu0  ;;  %4150 = vmatprep.subr.mxu1 %v4813_v61  ;;  %4175 = vmatprep.subr.mxu0 %v4813_v61  ;;  %v2362_v11 = vsel %vm5409_vm0, %v5306_v53, 0.0 }
 0x247   : > { %v4092_v42 = vpop.f32.mrb[7].mxu0  ;;  %v5321_v56 = vadd.f32 %v3766_v44, %v1273_v40  ;;  %v5481_v40 = vld [vmem:[%s6112_s10 + $0x8] sm:$0xff] }
 0x249   : > { %v1687_v62 = vsel %vm5280_vm9, %v5321_v56, 0.0  ;;  %v1492_v63 = vsel %vm1487_vm10, %v5321_v56, 0.0  ;;  %v2077_v6 = vsel %vm5361_vm13, %v5321_v56, 0.0  ;;  %v2363_v12 = vsel %vm5409_vm0, %v5321_v56, 0.0 }
 0x24a   : > { %v1278_v45 = vpop.f32.mrb[8].mxu0 }
 0x24b   : > { %v4095_v46 = vpop.f32.mrb[9].mxu0  ;;  %v1279_v60 = vadd.f32 %v3766_v44, %v1278_v45 }
 0x24d   : > { %4151 = vmatpush3.xpose.msk.msra.mxu1 %vm1176_vm5, %v5276_v47  ;;  %4176 = vmatpush3.xpose.msk.msra.mxu0 %vm1176_vm5, %v5276_v47  ;;  %v1688_v0 = vsel %vm5280_vm9, %v1279_v60, 0.0  ;;  %v1493_v1 = vsel %vm1487_vm10, %v1279_v60, 0.0  ;;  %v2078_v7 = vsel %vm5361_vm13, %v1279_v60, 0.0  ;;  %v2364_v13 = vsel %vm5409_vm0, %v1279_v60, 0.0 }
 0x24e   : > { %4438 = vmatprep.subr.bf16.mxu0 %v4811_v58  ;;  %4422 = vmatprep.subr.bf16.mxu1 %v4811_v58  ;;  %v1460_v15 = vpop.f32.mrb[10].mxu0 }
 0x24f   : > { %v4129_v16 = vpop.f32.mrb[11].mxu0  ;;  %v1461_v17 = vadd.f32 %v3778_v14, %v1460_v15 }
 0x250   : > { %4178 = vmatmul.mubr.msk.f32.vlgmr.msra.gmra.mrb[20].mxu0 %vm1176_vm5, %v1684_v51  ;;  %4153 = vmatmul.mubr.msk.f32.vlgmr.msra.gmra.mrb[10].mxu1 %vm1176_vm5, %v1489_v52 }
 0x251   : > { %4441 = vmatpush3.bf16.xpose.msk.msra.mxu0 %vm5243_vm6, %v5247_v26  ;;  %4180 = vmatprep.mubr.msk.f32.mxu0 %vm4812_vm4, %v4813_v61 }
 0x252   : > { %4155 = vmatprep.mubr.msk.f32.mxu1 %vm4812_vm4, %v4813_v61  ;;  %4442 = vmatprep.subr.bf16.mxu0 %v4811_v58  ;;  %v1465_v18 = vpop.f32.mrb[12].mxu0 }
 0x253   : > { %v1466_v19 = vadd.f32 %v3778_v14, %v1465_v18  ;;  %v4132_v20 = vpop.f32.mrb[13].mxu0 }
 0x254   : > { %4181 = vmatmul.mubr.msk.f32.gmra.mrb[22].mxu0 %vm1176_vm5, %v1685_v54  ;;  %4156 = vmatmul.mubr.msk.f32.gmra.mrb[12].mxu1 %vm1176_vm5, %v1490_v55  ;;  %v5501_v54 = vld [vmem:[%s6112_s10 + $0x18] sm:$0xff] }
 0x255   : > { %4183 = vmatprep.mubr.msk.f32.mxu0 %vm4812_vm4, %v4813_v61  ;;  %4158 = vmatprep.mubr.msk.f32.mxu1 %vm4812_vm4, %v4813_v61  ;;  %v5455_v21 = vpack.c.bf16 %v1466_v19, %v1461_v17 }
 0x256   : > { %v1470_v22 = vpop.f32.mrb[14].mxu0 }
 0x257   : > { %4425 = vmatpush3.bf16.msk.msra.mxu1 %vm4424_vm1, %v5455_v21  ;;  %v4135_v23 = vpop.f32.mrb[15].mxu0  ;;  %v1471_v24 = vadd.f32 %v3778_v14, %v1470_v22 }
 0x258   : > { %4184 = vmatmul.mubr.msk.f32.gmra.mrb[24].mxu0 %vm1176_vm5, %v1686_v57  ;;  %4159 = vmatmul.mubr.msk.f32.gmra.mrb[14].mxu1 %vm1176_vm5, %v1491_v59 }
 0x259   : > { %4445 = vmatpush3.bf16.xpose.msk.msra.mxu0 %vm5243_vm6, %v5257_v38  ;;  %4186 = vmatprep.mubr.msk.f32.mxu0 %vm4812_vm4, %v4813_v61 }
 0x25a   : > { %4161 = vmatprep.mubr.msk.f32.mxu1 %vm4812_vm4, %v4813_v61  ;;  %4250 = vmatprep.subr.mxu0 %v4813_v61  ;;  %v1475_v25 = vpop.f32.mrb[16].mxu0 }
 0x25b   : > { %4426 = vmatprep.subr.bf16.mxu1 %v4811_v58  ;;  %v4138_v27 = vpop.f32.mrb[17].mxu0 }
 0x25c   : > { %4187 = vmatmul.mubr.msk.f32.gmra.mrb[26].mxu0 %vm1176_vm5, %v1687_v62  ;;  %4162 = vmatmul.mubr.msk.f32.gmra.mrb[16].mxu1 %vm1176_vm5, %v1492_v63  ;;  %v5511_v63 = vld [vmem:[%s6112_s10 + $0x20] sm:$0x3] }
 0x25d   : > { %4189 = vmatprep.mubr.msk.f32.mxu0 %vm4812_vm4, %v4813_v61  ;;  %4164 = vmatprep.mubr.msk.f32.mxu1 %vm4812_vm4, %v4813_v61 }
 0x25e   : > { %v1480_v29 = vpop.f32.mrb[18].mxu0 }
 0x25f   : > { %v4141_v30 = vpop.f32.mrb[19].mxu0  ;;  %v5463_v31 = vadd.f32 %v3778_v14, %v1480_v29 }
 0x260   : > { %4190 = vmatmul.mubr.msk.f32.gmra.mrb[28].mxu0 %vm1176_vm5, %v1688_v0  ;;  %4165 = vmatmul.mubr.msk.f32.gmra.mrb[18].mxu1 %vm1176_vm5, %v1493_v1 }
 0x261   : > { %4251 = vmatpush3.xpose.msk.msra.mxu0 %vm1176_vm5, %v5276_v47  ;;  %4252 = vmatprep.mubr.msk.f32.mxu0 %vm4812_vm4, %v4813_v61  ;;  %v1853_v32 = vsel %vm5280_vm9, %v5463_v31, 0.0  ;;  %vm4464_vm9 = vmpackc.low %vm5409_vm0, %vm5409_vm0 }
 0x262   : > { %4454 = vmatprep.subr.bf16.mxu0 %v4811_v58  ;;  %4202 = vmatprep.mubr.msk.f32.mxu1 %vm4812_vm4, %v4813_v61 }
 0x264   : > { %4253 = vmatmul.mubr.msk.f32.vlgmr.msra.gmra.mrb[30].mxu0 %vm1176_vm5, %v2074_v3 }
 0x265   : > { %4457 = vmatpush3.bf16.xpose.msk.msra.mxu0 %vm5243_vm6, %v5247_v26  ;;  %4255 = vmatprep.mubr.msk.f32.mxu0 %vm4812_vm4, %v4813_v61  ;;  %v1476_v26 = vadd.f32 %v3778_v14, %v1475_v25 }
 0x266   : > { %4458 = vmatprep.subr.bf16.mxu0 %v4811_v58 }
 0x267   : > { %v5459_v28 = vpack.c.bf16 %v1476_v26, %v1471_v24 }
 0x268   : > { %4256 = vmatmul.mubr.msk.f32.gmra.mrb[32].mxu0 %vm1176_vm5, %v2075_v4 }
 0x269   : > { %4258 = vmatprep.mubr.msk.f32.mxu0 %vm4812_vm4, %v4813_v61  ;;  %4429 = vmatpush3.bf16.msk.msra.mxu1 %vm4424_vm1, %v5459_v28 }
 0x26a   : > { %4200 = vmatprep.subr.mxu1 %v4813_v61 }
 0x26c   : > { %4259 = vmatmul.mubr.msk.f32.gmra.mrb[34].mxu0 %vm1176_vm5, %v2076_v5 }
 0x26d   : > { %4461 = vmatpush3.bf16.xpose.msk.msra.mxu0 %vm5243_vm6, %v5257_v38  ;;  %4261 = vmatprep.mubr.msk.f32.mxu0 %vm4812_vm4, %v4813_v61  ;;  %vm1632_vm6 = vcmask 271360  }
 0x26e   : > { %4300 = vmatprep.subr.mxu0 %v4813_v61  ;;  %4201 = vmatpush3.msk.msra.mxu1 %vm1869_vm2, %v1853_v32 }
 0x26f   : > { %4430 = vmatprep.subr.bf16.mxu1 %v4811_v58 }
 0x270   : > { %4262 = vmatmul.mubr.msk.f32.gmra.mrb[36].mxu0 %vm1176_vm5, %v2077_v6 }
 0x271   : > { %4264 = vmatprep.mubr.msk.f32.mxu0 %vm4812_vm4, %v4813_v61 }
 0x274   : > { %4265 = vmatmul.mubr.msk.f32.gmra.mrb[38].mxu0 %vm1176_vm5, %v2078_v7 }
 0x275   : > { %4301 = vmatpush3.xpose.msk.msra.mxu0 %vm1176_vm5, %v5276_v47  ;;  %4302 = vmatprep.mubr.msk.f32.mxu0 %vm4812_vm4, %v4813_v61  ;;  %v5491_v47 = vld [vmem:[%s6112_s10 + $0x10] sm:$0xff] }
 0x276   : > { %4470 = vmatprep.subr.bf16.mxu0 %v4811_v58 }
 0x278   : > { %4303 = vmatmul.mubr.msk.f32.vlgmr.msra.gmra.mrb[40].mxu0 %vm1176_vm5, %v2360_v9 }
 0x279   : > { %4305 = vmatprep.mubr.msk.f32.mxu0 %vm4812_vm4, %v4813_v61 }
 0x27c   : > { %4306 = vmatmul.mubr.msk.f32.gmra.mrb[42].mxu0 %vm1176_vm5, %v2361_v10 }
 0x27d   : > { %4308 = vmatprep.mubr.msk.f32.mxu0 %vm4812_vm4, %v4813_v61 }
 0x280   : > { %4309 = vmatmul.mubr.msk.f32.gmra.mrb[44].mxu0 %vm1176_vm5, %v2362_v11 }
 0x281   : > { %4311 = vmatprep.mubr.msk.f32.mxu0 %vm4812_vm4, %v4813_v61 }
 0x284   : > { %4312 = vmatmul.mubr.msk.f32.gmra.mrb[46].mxu0 %vm1176_vm5, %v2363_v12 }
 0x285   : > { %4314 = vmatprep.mubr.msk.f32.mxu0 %vm4812_vm4, %v4813_v61 }
 0x288   : > { %4315 = vmatmul.mubr.msk.f32.gmra.mrb[48].mxu0 %vm1176_vm5, %v2364_v13 }
 0x289   : > { %4350 = vmatprep.mubr.msk.f32.mxu0 %vm4812_vm4, %v4813_v61 }
 0x323   : > { %v1770_v34 = vpop.f32.mrb[20].mxu0  ;;  %v1595_v35 = vpop.f32.mrb[10].mxu1 }
 0x324   : > { %v5476_v36 = vadd.f32 %v1770_v34, %v5473_v33  ;;  %v4154_v37 = vpop.f32.mrb[11].mxu1  ;;  %v4179_v38 = vpop.f32.mrb[21].mxu0  ;;  %v5514_v0 = vadd.f32 %v1595_v35, %v5473_v33 }
 0x326   : > { %v1794_v41 = vsel %vm1619_vm3, %v5476_v36, -inf  ;;  %v1620_v11 = vsel %vm1619_vm3, %v5514_v0, -inf }
 0x327   : > { %1795 = vmax.xlane.f32.xlu0 %v1794_v41  ;;  %v1775_v42 = vpop.f32.mrb[22].mxu0  ;;  %v1600_v43 = vpop.f32.mrb[12].mxu1 }
 0x328   : > { %v5486_v44 = vadd.f32 %v1775_v42, %v5481_v40  ;;  %v4157_v45 = vpop.f32.mrb[13].mxu1  ;;  %v4182_v46 = vpop.f32.mrb[23].mxu0  ;;  %v5522_v9 = vadd.f32 %v1600_v43, %v5481_v40 }
 0x32a   : > { %v1797_v48 = vsel %vm1619_vm3, %v5486_v44, -inf  ;;  %v1623_v18 = vsel %vm1619_vm3, %v5522_v9, -inf }
 0x32b   : > { %1798 = vmax.xlane.f32.xlu0 %v1797_v48  ;;  %v1780_v49 = vpop.f32.mrb[24].mxu0  ;;  %v1605_v50 = vpop.f32.mrb[14].mxu1 }
 0x32c   : > { %v5496_v51 = vadd.f32 %v1780_v49, %v5491_v47  ;;  %v4160_v52 = vpop.f32.mrb[15].mxu1  ;;  %v4185_v53 = vpop.f32.mrb[25].mxu0  ;;  %v5525_v10 = vadd.f32 %v1605_v50, %v5491_v47 }
 0x32e   : > { %v1800_v55 = vsel %vm1619_vm3, %v5496_v51, -inf  ;;  %v1626_v17 = vsel %vm1619_vm3, %v5525_v10, -inf }
 0x32f   : > { %1801 = vmax.xlane.f32.xlu1 %v1800_v55  ;;  %v1785_v56 = vpop.f32.mrb[26].mxu0  ;;  %v1610_v57 = vpop.f32.mrb[16].mxu1 }
 0x330   : > { %v5506_v59 = vadd.f32 %v1785_v56, %v5501_v54  ;;  %v4163_v60 = vpop.f32.mrb[17].mxu1  ;;  %v4188_v62 = vpop.f32.mrb[27].mxu0  ;;  %v5532_v15 = vadd.f32 %v1610_v57, %v5501_v54 }
 0x332   : > { %v1803_v1 = vsel %vm1619_vm3, %v5506_v59, -inf  ;;  %v1629_v25 = vsel %vm1619_vm3, %v5532_v15, -inf }
 0x333   : > { %1804 = vmax.xlane.f32.xlu1 %v1803_v1  ;;  %v1790_v3 = vpop.f32.mrb[28].mxu0  ;;  %v1615_v4 = vpop.f32.mrb[18].mxu1 }
 0x334   : > { %v5519_v5 = vadd.f32 %v1790_v3, %v5511_v63  ;;  %v4166_v6 = vpop.f32.mrb[19].mxu1  ;;  %v4191_v7 = vpop.f32.mrb[29].mxu0  ;;  %v5535_v16 = vadd.f32 %v1615_v4, %v5511_v63 }
 0x336   : > { %v1806_v12 = vsel %vm1632_vm6, %v5519_v5, -inf  ;;  %v1633_v24 = vsel %vm1632_vm6, %v5535_v16, -inf }
 0x337   : > { %1621 = vmax.xlane.f32.xlu1 %v1620_v11  ;;  %1807 = vmax.xlane.f32.xlu0 %v1806_v12  ;;  %v2160_v13 = vpop.f32.mrb[30].mxu0 }
 0x338   : > { %v4254_v14 = vpop.f32.mrb[31].mxu0  ;;  %v5542_v22 = vadd.f32 %v2160_v13, %v5473_v33 }
 0x33a   : > { %v2184_v30 = vsel %vm1619_vm3, %v5542_v22, -inf }
 0x33b   : > { %1627 = vmax.xlane.f32.xlu1 %v1626_v17  ;;  %1624 = vmax.xlane.f32.xlu0 %v1623_v18  ;;  %v2165_v19 = vpop.f32.mrb[32].mxu0 }
 0x33c   : > { %v4257_v20 = vpop.f32.mrb[33].mxu0  ;;  %v5545_v23 = vadd.f32 %v2165_v19, %v5481_v40 }
 0x33e   : > { %v2187_v32 = vsel %vm1619_vm3, %v5545_v23, -inf }
 0x33f   : > { %1634 = vmax.xlane.f32.xlu1 %v1633_v24  ;;  %1630 = vmax.xlane.f32.xlu0 %v1629_v25  ;;  %v2170_v26 = vpop.f32.mrb[34].mxu0 }
 0x340   : > { %v4260_v27 = vpop.f32.mrb[35].mxu0  ;;  %v5552_v29 = vadd.f32 %v2170_v26, %v5491_v47 }
 0x342   : > { %v2190_v38 = vsel %vm1619_vm3, %v5552_v29, -inf }
 0x343   : > { %2185 = vmax.xlane.f32.xlu0 %v2184_v30  ;;  %2188 = vmax.xlane.f32.xlu1 %v2187_v32  ;;  %v2175_v34 = vpop.f32.mrb[36].mxu0 }
 0x344   : > { %v5559_v35 = vadd.f32 %v2175_v34, %v5501_v54  ;;  %v4263_v37 = vpop.f32.mrb[37].mxu0 }
 0x346   : > { %v2193_v41 = vsel %vm1619_vm3, %v5559_v35, -inf }
 0x347   : > { %2191 = vmax.xlane.f32.xlu0 %v2190_v38  ;;  %2194 = vmax.xlane.f32.xlu1 %v2193_v41  ;;  %v2180_v42 = vpop.f32.mrb[38].mxu0 }
 0x348   : > { %v5566_v43 = vadd.f32 %v2180_v42, %v5511_v63  ;;  %v4266_v45 = vpop.f32.mrb[39].mxu0 }
 0x34a   : > { %v2196_v46 = vsel %vm1632_vm6, %v5566_v43, -inf }
 0x34b   : > { %2197 = vmax.xlane.f32.xlu0 %v2196_v46  ;;  %v2446_v48 = vpop.f32.mrb[40].mxu0 }
 0x34c   : > { %v5571_v49 = vadd.f32 %v2446_v48, %v5473_v33  ;;  %v4304_v50 = vpop.f32.mrb[41].mxu0 }
 0x34e   : > { %v2470_v52 = vsel %vm1619_vm3, %v5571_v49, -inf }
 0x34f   : > { %2471 = vmax.xlane.f32.xlu1 %v2470_v52  ;;  %v2451_v53 = vpop.f32.mrb[42].mxu0 }
 0x350   : > { %v5576_v55 = vadd.f32 %v2451_v53, %v5481_v40  ;;  %v4307_v56 = vpop.f32.mrb[43].mxu0 }
 0x352   : > { %v2473_v57 = vsel %vm1619_vm3, %v5576_v55, -inf }
 0x353   : > { %2474 = vmax.xlane.f32.xlu0 %v2473_v57  ;;  %v2456_v60 = vpop.f32.mrb[44].mxu0 }
 0x354   : > { %v5581_v62 = vadd.f32 %v2456_v60, %v5491_v47  ;;  %v4310_v33 = vpop.f32.mrb[45].mxu0 }
 0x356   : > { %v2476_v1 = vsel %vm1619_vm3, %v5581_v62, -inf }
 0x357   : > { %2477 = vmax.xlane.f32.xlu1 %v2476_v1  ;;  %v2461_v3 = vpop.f32.mrb[46].mxu0 }
 0x358   : > { %v5586_v4 = vadd.f32 %v2461_v3, %v5501_v54  ;;  %v4313_v40 = vpop.f32.mrb[47].mxu0 }
 0x35a   : > { %v2479_v6 = vsel %vm1619_vm3, %v5586_v4, -inf }
 0x35b   : > { %2480 = vmax.xlane.f32.xlu0 %v2479_v6  ;;  %v2466_v7 = vpop.f32.mrb[48].mxu0 }
 0x35c   : > { %v5591_v11 = vadd.f32 %v2466_v7, %v5511_v63  ;;  %v4316_v47 = vpop.f32.mrb[49].mxu0 }
 0x35e   : > { %v2482_v12 = vsel %vm1632_vm6, %v5591_v11, -inf }
 0x35f   : > { %2483 = vmax.xlane.f32.xlu1 %v2482_v12 }
 0x3b4   : > { %v1796_v13 = vpop.xlane.xlu0 %1795 }
 0x3b5   : > { %v1809_v14 = vsub.f32 %v5476_v36, %v1796_v13 }
 0x3b7   : > { %v1814_v17 = vmul.f32 1.442695, %v1809_v14 }
 0x3b8   : > { %v1799_v54 = vpop.xlane.xlu0 %1798 }
 0x3b9   : > { %4593 = vpow2.f32 %v1814_v17  ;;  %v1810_v18 = vsub.f32 %v5486_v44, %v1799_v54 }
 0x3bb   : > { %v1816_v19 = vmul.f32 1.442695, %v1810_v18 }
 0x3bc   : > { %v1802_v20 = vpop.xlane.xlu1 %1801 }
 0x3bd   : > { %4595 = vpow2.f32 %v1816_v19  ;;  %v1811_v24 = vsub.f32 %v5496_v51, %v1802_v20 }
 0x3bf   : > { %v1818_v63 = vmul.f32 1.442695, %v1811_v24 }
 0x3c0   : > { %v1805_v25 = vpop.xlane.xlu1 %1804 }
 0x3c1   : > { %4597 = vpow2.f32 %v1818_v63  ;;  %v1812_v26 = vsub.f32 %v5506_v59, %v1805_v25 }
 0x3c3   : > { %v5599_v27 = vpop.eup %4593  ;;  %v1820_v30 = vmul.f32 1.442695, %v1812_v26 }
 0x3c4   : > { %v1622_v32 = vpop.xlane.xlu1 %1621  ;;  %v1808_v36 = vpop.xlane.xlu0 %1807  ;;  %v1824_v34 = vsel %vm1619_vm3, %v5599_v27, 0.0 }
 0x3c5   : > { %4599 = vpow2.f32 %v1820_v30  ;;  %v1636_v44 = vsub.f32 %v5514_v0, %v1622_v32  ;;  %v1813_v37 = vsub.f32 %v5519_v5, %v1808_v36  ;;  %1825 = vadd.xlane.f32.xlu0 %v1824_v34 }
 0x3c7   : > { %v5605_v51 = vpop.eup %4595  ;;  %v1641_v38 = vmul.f32 1.442695, %v1636_v44  ;;  %v1822_v41 = vmul.f32 1.442695, %v1813_v37 }
 0x3c8   : > { %v1628_v42 = vpop.xlane.xlu1 %1627  ;;  %v1625_v59 = vpop.xlane.xlu0 %1624  ;;  %v1827_v45 = vsel %vm1619_vm3, %v5605_v51, 0.0 }
 0x3c9   : > { %4601 = vpow2.f32 %v1641_v38  ;;  %v1638_v46 = vsub.f32 %v5525_v10, %v1628_v42  ;;  %v1637_v48 = vsub.f32 %v5522_v9, %v1625_v59  ;;  %1828 = vadd.xlane.f32.xlu1 %v1827_v45 }
 0x3ca   : > { %4603 = vpow2.f32 %v1822_v41 }
 0x3cb   : > { %v5611_v0 = vpop.eup %4597  ;;  %v1645_v5 = vmul.f32 1.442695, %v1638_v46  ;;  %v1643_v50 = vmul.f32 1.442695, %v1637_v48 }
 0x3cc   : > { %v1635_v52 = vpop.xlane.xlu1 %1634  ;;  %v1631_v53 = vpop.xlane.xlu0 %1630  ;;  %v1830_v56 = vsel %vm1619_vm3, %v5611_v0, 0.0 }
 0x3cd   : > { %4605 = vpow2.f32 %v1645_v5  ;;  %v1640_v57 = vsub.f32 %v5535_v16, %v1635_v52  ;;  %v1639_v60 = vsub.f32 %v5532_v15, %v1631_v53  ;;  %1831 = vadd.xlane.f32.xlu0 %v1830_v56 }
 0x3ce   : > { %4607 = vpow2.f32 %v1643_v50 }
 0x3cf   : > { %v5617_v10 = vpop.eup %4599  ;;  %v1649_v9 = vmul.f32 1.442695, %v1640_v57  ;;  %v1647_v33 = vmul.f32 1.442695, %v1639_v60 }
 0x3d0   : > { %v2186_v1 = vpop.xlane.xlu0 %2185  ;;  %v2189_v3 = vpop.xlane.xlu1 %2188  ;;  %v1833_v40 = vsel %vm1619_vm3, %v5617_v10, 0.0 }
 0x3d1   : > { %4609 = vpow2.f32 %v1649_v9  ;;  %v2199_v6 = vsub.f32 %v5542_v22, %v2186_v1  ;;  %v2200_v7 = vsub.f32 %v5545_v23, %v2189_v3  ;;  %1834 = vadd.xlane.f32.xlu1 %v1833_v40 }
 0x3d2   : > { %4611 = vpow2.f32 %v1647_v33 }
 0x3d3   : > { %v5623_v16 = vpop.eup %4601  ;;  %v2204_v15 = vmul.f32 1.442695, %v2199_v6  ;;  %v2206_v47 = vmul.f32 1.442695, %v2200_v7 }
 0x3d4   : > { %v5625_v12 = vpop.eup %4603  ;;  %v2192_v13 = vpop.xlane.xlu0 %2191  ;;  %v1651_v17 = vsel %vm1619_vm3, %v5623_v16, 0.0 }
 0x3d5   : > { %v2195_v14 = vpop.xlane.xlu1 %2194  ;;  %4613 = vpow2.f32 %v2204_v15  ;;  %v2201_v54 = vsub.f32 %v5552_v29, %v2192_v13  ;;  %v1836_v23 = vsel %vm1632_vm6, %v5625_v12, 0.0  ;;  %1652 = vadd.xlane.f32.xlu1 %v1651_v17 }
 0x3d6   : > { %v2202_v22 = vsub.f32 %v5559_v35, %v2195_v14  ;;  %4615 = vpow2.f32 %v2206_v47  ;;  %1837 = vadd.xlane.f32.xlu0 %v1836_v23  ;;  %v2644_v23 = vld [vmem:[%s6113_s15 + $0x8] sm:$0xff] }
 0x3d7   : > { %v5633_v18 = vpop.eup %4605  ;;  %v2208_v19 = vmul.f32 1.442695, %v2201_v54 }
 0x3d8   : > { %v2210_v20 = vmul.f32 1.442695, %v2202_v22  ;;  %v5635_v24 = vpop.eup %4607  ;;  %v2198_v63 = vpop.xlane.xlu0 %2197  ;;  %v1657_v25 = vsel %vm1619_vm3, %v5633_v18, 0.0  ;;  %v2643_v22 = vld [vmem:[%s6113_s15] sm:$0xff] }
 0x3d9   : > { %4617 = vpow2.f32 %v2208_v19  ;;  %v2203_v29 = vsub.f32 %v5566_v43, %v2198_v63  ;;  %v1654_v35 = vsel %vm1619_vm3, %v5635_v24, 0.0  ;;  %1658 = vadd.xlane.f32.xlu1 %v1657_v25  ;;  %v2645_v19 = vld [vmem:[%s6113_s15 + $0x10] sm:$0xff]  ;;  %v2646_v63 = vld [vmem:[%s6113_s15 + $0x18] sm:$0xff] }
 0x3da   : > { %4619 = vpow2.f32 %v2210_v20  ;;  %1655 = vadd.xlane.f32.xlu0 %v1654_v35  ;;  %v4471_v20 = vpack.c.bf16 %v2644_v23, %v2643_v22  ;;  %v4474_v25 = vpack.c.bf16 %v2646_v63, %v2645_v19 }
 0x3db   : > { %v5642_v26 = vpop.eup %4609  ;;  %v2212_v30 = vmul.f32 1.442695, %v2203_v29 }
 0x3dc   : > { %v5644_v32 = vpop.eup %4611  ;;  %v2472_v36 = vpop.xlane.xlu1 %2471  ;;  %v1663_v34 = vsel %vm1632_vm6, %v5642_v26, 0.0  ;;  %4472 = vmatpush3.bf16.msra.mxu0 %v4471_v20 }
 0x3dd   : > { %4621 = vpow2.f32 %v2212_v30  ;;  %v2485_v44 = vsub.f32 %v5571_v49, %v2472_v36  ;;  %v1660_v43 = vsel %vm1619_vm3, %v5644_v32, 0.0  ;;  %1664 = vadd.xlane.f32.xlu1 %v1663_v34  ;;  %4473 = vmatprep.subr.bf16.mxu0 %v4811_v58 }
 0x3de   : > { %1661 = vadd.xlane.f32.xlu0 %v1660_v43 }
 0x3df   : > { %v5651_v37 = vpop.eup %4613  ;;  %v2490_v38 = vmul.f32 1.442695, %v2485_v44 }
 0x3e0   : > { %v5653_v41 = vpop.eup %4615  ;;  %v2475_v42 = vpop.xlane.xlu0 %2474  ;;  %v2214_v59 = vsel %vm1619_vm3, %v5651_v37, 0.0  ;;  %4475 = vmatpush3.bf16.msra.mxu0 %v4474_v25 }
 0x3e1   : > { %4623 = vpow2.f32 %v2490_v38  ;;  %v2486_v45 = vsub.f32 %v5576_v55, %v2475_v42  ;;  %v2217_v49 = vsel %vm1619_vm3, %v5653_v41, 0.0 }
 0x3e2   : > { %2215 = vadd.xlane.f32.xlu0 %v2214_v59  ;;  %2218 = vadd.xlane.f32.xlu1 %v2217_v49 }
 0x3e3   : > { %v5660_v46 = vpop.eup %4617  ;;  %v2492_v48 = vmul.f32 1.442695, %v2486_v45 }
 0x3e4   : > { %v5662_v5 = vpop.eup %4619  ;;  %v2478_v50 = vpop.xlane.xlu1 %2477  ;;  %v2220_v52 = vsel %vm1619_vm3, %v5660_v46, 0.0 }
 0x3e5   : > { %4625 = vpow2.f32 %v2492_v48  ;;  %v2487_v53 = vsub.f32 %v5581_v62, %v2478_v50  ;;  %v2223_v55 = vsel %vm1619_vm3, %v5662_v5, 0.0 }
 0x3e6   : > { %2221 = vadd.xlane.f32.xlu0 %v2220_v52  ;;  %2224 = vadd.xlane.f32.xlu1 %v2223_v55 }
 0x3e7   : > { %v5669_v56 = vpop.eup %4621  ;;  %v2494_v57 = vmul.f32 1.442695, %v2487_v53 }
 0x3e8   : > { %v2481_v60 = vpop.xlane.xlu0 %2480  ;;  %v2226_v9 = vsel %vm1632_vm6, %v5669_v56, 0.0 }
 0x3e9   : > { %4627 = vpow2.f32 %v2494_v57  ;;  %v2488_v33 = vsub.f32 %v5586_v4, %v2481_v60 }
 0x3ea   : > { %2227 = vadd.xlane.f32.xlu0 %v2226_v9 }
 0x3eb   : > { %v5674_v1 = vpop.eup %4623  ;;  %v2496_v3 = vmul.f32 1.442695, %v2488_v33 }
 0x3ec   : > { %v2484_v62 = vpop.xlane.xlu1 %2483  ;;  %v2500_v40 = vsel %vm1619_vm3, %v5674_v1, 0.0 }
 0x3ed   : > { %4629 = vpow2.f32 %v2496_v3  ;;  %v2489_v6 = vsub.f32 %v5591_v11, %v2484_v62  ;;  %2501 = vadd.xlane.f32.xlu1 %v2500_v40 }
 0x3ef   : > { %v5679_v7 = vpop.eup %4625  ;;  %v2498_v15 = vmul.f32 1.442695, %v2489_v6 }
 0x3f0   : > { %v2503_v4 = vsel %vm1619_vm3, %v5679_v7, 0.0 }
 0x3f1   : > { %4631 = vpow2.f32 %v2498_v15  ;;  %2504 = vadd.xlane.f32.xlu0 %v2503_v4 }
 0x3f3   : > { %v5683_v47 = vpop.eup %4627 }
 0x3f4   : > { %v2506_v13 = vsel %vm1619_vm3, %v5683_v47, 0.0 }
 0x3f5   : > { %2507 = vadd.xlane.f32.xlu1 %v2506_v13 }
 0x3f7   : > { %v5687_v11 = vpop.eup %4629 }
 0x3f8   : > { %v2509_v14 = vsel %vm1619_vm3, %v5687_v11, 0.0 }
 0x3f9   : > { %2510 = vadd.xlane.f32.xlu0 %v2509_v14 }
 0x3fb   : > { %v5691_v17 = vpop.eup %4631 }
 0x3fc   : > { %v2512_v54 = vsel %vm1632_vm6, %v5691_v17, 0.0 }
 0x3fd   : > { %2513 = vadd.xlane.f32.xlu1 %v2512_v54 }
 0x452   : > { %v1826_v29 = vpop.xlane.xlu0 %1825 }
 0x453   : > { %4633 = vrcp.f32 %v1826_v29 }
 0x456   : > { %v1829_v35 = vpop.xlane.xlu1 %1828 }
 0x457   : > { %4635 = vrcp.f32 %v1829_v35 }
 0x45a   : > { %v1832_v30 = vpop.xlane.xlu0 %1831 }
 0x45b   : > { %4637 = vrcp.f32 %v1832_v30 }
 0x45d   : > { %v4634_v36 = vpop.eup %4633 }
 0x45e   : > { %v1844_v34 = vmul.f32 %v4634_v36, %v5599_v27  ;;  %v1835_v44 = vpop.xlane.xlu1 %1834 }
 0x45f   : > { %4639 = vrcp.f32 %v1835_v44 }
 0x460   : > { %4203 = vmatmul.mubr.msk.f32.vlgmr.msra.gmra.mrb[20].mxu1 %vm1619_vm3, %v1844_v34 }
 0x461   : > { %v4636_v43 = vpop.eup %4635  ;;  %4433 = vmatpush3.bf16.msk.msra.mxu1 %vm4432_vm7, %v5455_v21  ;;  %4205 = vmatprep.mubr.msk.f32.mxu1 %vm4812_vm4, %v4813_v61 }
 0x462   : > { %4434 = vmatprep.subr.bf16.mxu1 %v4811_v58  ;;  %v1845_v38 = vmul.f32 %v4636_v43, %v5605_v51  ;;  %v1653_v27 = vpop.xlane.xlu1 %1652  ;;  %v1680_v51 = vsel %vm1487_vm10, %v5463_v31, 0.0  ;;  %vm2778_vm10 = vcmask 254976  }
 0x463   : > { %v1838_v42 = vpop.xlane.xlu0 %1837  ;;  %2864 = vst.msk [vmem:[#allocation4 + $0x20] sm:$0x3] %vm2778_vm10, %v4813_v61 }
 0x464   : > { %4641 = vrcp.f32 %v1838_v42  ;;  %4206 = vmatmul.mubr.msk.f32.gmra.mrb[22].mxu1 %vm1619_vm3, %v1845_v38 }
 0x465   : > { %v4638_v59 = vpop.eup %4637  ;;  %4437 = vmatpush3.bf16.msk.msra.mxu1 %vm4432_vm7, %v5459_v28  ;;  %4208 = vmatprep.mubr.msk.f32.mxu1 %vm4812_vm4, %v4813_v61  ;;  %4643 = vrcp.f32 %v1653_v27 }
 0x466   : > { %4225 = vmatprep.subr.mxu1 %v4813_v61  ;;  %v1846_v45 = vmul.f32 %v4638_v59, %v5611_v0  ;;  %v1659_v52 = vpop.xlane.xlu1 %1658  ;;  %v3864_v59 = vld [vmem:[%s992_s28] ss:$0 sm:$0xff] }
 0x467   : > { %v1656_v49 = vpop.xlane.xlu0 %1655 }
 0x468   : > { %4209 = vmatmul.mubr.msk.f32.gmra.mrb[24].mxu1 %vm1619_vm3, %v1846_v45  ;;  %4645 = vrcp.f32 %v1656_v49 }
 0x469   : > { %v4640_v48 = vpop.eup %4639  ;;  %4226 = vmatpush3.msk.msra.mxu1 %vm1869_vm2, %v1680_v51  ;;  %4211 = vmatprep.mubr.msk.f32.mxu1 %vm4812_vm4, %v4813_v61  ;;  %4647 = vrcp.f32 %v1659_v52 }
 0x46a   : > { %v1847_v50 = vmul.f32 %v4640_v48, %v5617_v10  ;;  %4446 = vmatprep.subr.bf16.mxu1 %v4811_v58  ;;  %v1665_v57 = vpop.xlane.xlu1 %1664  ;;  %v4683_v48 = vld [vmem:[#allocation2] sm:$0xff] }
 0x46b   : > { %v1662_v39 = vpop.xlane.xlu0 %1661 }
 0x46c   : > { %4212 = vmatmul.mubr.msk.f32.gmra.mrb[26].mxu1 %vm1619_vm3, %v1847_v50  ;;  %4649 = vrcp.f32 %v1662_v39 }
 0x46d   : > { %4214 = vmatprep.mubr.msk.f32.mxu1 %vm4812_vm4, %v4813_v61  ;;  %4651 = vrcp.f32 %v1665_v57 }
 0x46e   : > { %v4642_v0 = vpop.eup %4641 }
 0x46f   : > { %v1848_v53 = vmul.f32 %v4642_v0, %v5625_v12  ;;  %v4644_v55 = vpop.eup %4643  ;;  %v2216_v12 = vpop.xlane.xlu0 %2215 }
 0x470   : > { %v1671_v10 = vmul.f32 %v4644_v55, %v5623_v16  ;;  %4653 = vrcp.f32 %v2216_v12  ;;  %v2219_v33 = vpop.xlane.xlu1 %2218  ;;  %v4684_v55 = vld [vmem:[#allocation2 + $0x8] sm:$0xff] }
 0x471   : > { %4215 = vmatmul.mubr.msk.f32.gmra.mrb[28].mxu1 %vm1619_vm3, %v1848_v53  ;;  %4655 = vrcp.f32 %v2219_v33 }
 0x472   : > { %4227 = vmatprep.mubr.msk.f32.mxu1 %vm4812_vm4, %v4813_v61  ;;  %v4646_v60 = vpop.eup %4645 }
 0x473   : > { %v1672_v9 = vmul.f32 %v4646_v60, %v5635_v24  ;;  %v4648_v16 = vpop.eup %4647  ;;  %v2243_v24 = vsel %vm5361_vm13, %v5463_v31, 0.0  ;;  %v2222_v40 = vpop.xlane.xlu0 %2221 }
 0x474   : > { %v1673_v3 = vmul.f32 %v4648_v16, %v5633_v18  ;;  %4657 = vrcp.f32 %v2222_v40  ;;  %v2225_v2 = vpop.xlane.xlu1 %2224  ;;  %v4686_v40 = vld [vmem:[#allocation2 + $0x18] sm:$0xff] }
 0x475   : > { %4228 = vmatmul.mubr.msk.f32.vlgmr.msra.gmra.mrb[20].mxu1 %vm1619_vm3, %v1671_v10  ;;  %4659 = vrcp.f32 %v2225_v2 }
 0x476   : > { %4449 = vmatpush3.bf16.msk.msra.mxu1 %vm4448_vm8, %v5455_v21  ;;  %4230 = vmatprep.mubr.msk.f32.mxu1 %vm4812_vm4, %v4813_v61  ;;  %v4650_v62 = vpop.eup %4649 }
 0x477   : > { %4450 = vmatprep.subr.bf16.mxu1 %v4811_v58  ;;  %v1674_v6 = vmul.f32 %v4650_v62, %v5644_v32  ;;  %v4652_v15 = vpop.eup %4651  ;;  %v2228_v13 = vpop.xlane.xlu0 %2227 }
 0x478   : > { %v1675_v18 = vmul.f32 %v4652_v15, %v5642_v26  ;;  %4661 = vrcp.f32 %v2228_v13 }
 0x479   : > { %4231 = vmatmul.mubr.msk.f32.gmra.mrb[22].mxu1 %vm1619_vm3, %v1672_v9  ;;  %v4685_v9 = vld [vmem:[#allocation2 + $0x10] sm:$0xff] }
 0x47a   : > { %4453 = vmatpush3.bf16.msk.msra.mxu1 %vm4448_vm8, %v5459_v28  ;;  %4233 = vmatprep.mubr.msk.f32.mxu1 %vm4812_vm4, %v4813_v61  ;;  %v4654_v4 = vpop.eup %4653  ;;  %v2502_v26 = vpop.xlane.xlu1 %2501 }
 0x47b   : > { %4275 = vmatprep.subr.mxu1 %v4813_v61  ;;  %v2234_v32 = vmul.f32 %v4654_v4, %v5651_v37  ;;  %v4656_v14 = vpop.eup %4655  ;;  %4663 = vrcp.f32 %v2502_v26 }
 0x47c   : > { %v2235_v54 = vmul.f32 %v4656_v14, %v5653_v41 }
 0x47d   : > { %4234 = vmatmul.mubr.msk.f32.gmra.mrb[24].mxu1 %vm1619_vm3, %v1673_v3 }
 0x47e   : > { %4276 = vmatpush3.msk.msra.mxu1 %vm1869_vm2, %v2243_v24  ;;  %4236 = vmatprep.mubr.msk.f32.mxu1 %vm4812_vm4, %v4813_v61  ;;  %v4658_v37 = vpop.eup %4657  ;;  %v2505_v22 = vpop.xlane.xlu0 %2504 }
 0x47f   : > { %4462 = vmatprep.subr.bf16.mxu1 %v4811_v58  ;;  %v4660_v23 = vpop.eup %4659  ;;  %4665 = vrcp.f32 %v2505_v22 }
 0x480   : > { %v2237_v41 = vmul.f32 %v4660_v23, %v5662_v5 }
 0x481   : > { %4237 = vmatmul.mubr.msk.f32.gmra.mrb[26].mxu1 %vm1619_vm3, %v1674_v6 }
 0x482   : > { %4239 = vmatprep.mubr.msk.f32.mxu1 %vm4812_vm4, %v4813_v61  ;;  %v4662_v19 = vpop.eup %4661 }
 0x483   : > { %v2238_v8 = vmul.f32 %v4662_v19, %v5669_v56 }
 0x485   : > { %4240 = vmatmul.mubr.msk.f32.gmra.mrb[28].mxu1 %vm1619_vm3, %v1675_v18 }
 0x486   : > { %4277 = vmatprep.mubr.msk.f32.mxu1 %vm4812_vm4, %v4813_v61 }
 0x489   : > { %4278 = vmatmul.mubr.msk.f32.vlgmr.msra.gmra.mrb[20].mxu1 %vm1619_vm3, %v2234_v32  ;;  %v4687_v32 = vld [vmem:[#allocation2 + $0x20] sm:$0x3] }
 0x48a   : > { %4465 = vmatpush3.bf16.msk.msra.mxu1 %vm4464_vm9, %v5455_v21  ;;  %4280 = vmatprep.mubr.msk.f32.mxu1 %vm4812_vm4, %v4813_v61  ;;  %v2236_v21 = vmul.f32 %v4658_v37, %v5660_v46  ;;  %v2511_v46 = vpop.xlane.xlu0 %2510 }
 0x48b   : > { %4466 = vmatprep.subr.bf16.mxu1 %v4811_v58  ;;  %v2529_v58 = vsel %vm5409_vm0, %v5463_v31, 0.0  ;;  %v4664_v31 = vpop.eup %4663 }
 0x48c   : > { %v2520_v20 = vmul.f32 %v4664_v31, %v5674_v1  ;;  %v4666_v63 = vpop.eup %4665 }
 0x48d   : > { %4281 = vmatmul.mubr.msk.f32.gmra.mrb[22].mxu1 %vm1619_vm3, %v2235_v54  ;;  %v2521_v25 = vmul.f32 %v4666_v63, %v5679_v7 }
 0x48e   : > { %4469 = vmatpush3.bf16.msk.msra.mxu1 %vm4464_vm9, %v5459_v28  ;;  %4283 = vmatprep.mubr.msk.f32.mxu1 %vm4812_vm4, %v4813_v61  ;;  %v2508_v28 = vpop.xlane.xlu1 %2507 }
 0x48f   : > { %4325 = vmatprep.subr.mxu1 %v4813_v61  ;;  %4667 = vrcp.f32 %v2508_v28 }
 0x490   : > { %4669 = vrcp.f32 %v2511_v46 }
 0x491   : > { %4284 = vmatmul.mubr.msk.f32.gmra.mrb[24].mxu1 %vm1619_vm3, %v2236_v21 }
 0x492   : > { %4326 = vmatpush3.msk.msra.mxu1 %vm1869_vm2, %v2529_v58  ;;  %4286 = vmatprep.mubr.msk.f32.mxu1 %vm4812_vm4, %v4813_v61  ;;  %v2514_v5 = vpop.xlane.xlu1 %2513 }
 0x493   : > { %4671 = vrcp.f32 %v2514_v5 }
 0x495   : > { %4287 = vmatmul.mubr.msk.f32.gmra.mrb[26].mxu1 %vm1619_vm3, %v2237_v41 }
 0x496   : > { %4289 = vmatprep.mubr.msk.f32.mxu1 %vm4812_vm4, %v4813_v61 }
 0x499   : > { %4290 = vmatmul.mubr.msk.f32.gmra.mrb[28].mxu1 %vm1619_vm3, %v2238_v8  ;;  %v4668_v56 = vpop.eup %4667 }
 0x49a   : > { %4327 = vmatprep.mubr.msk.f32.mxu1 %vm4812_vm4, %v4813_v61  ;;  %v2522_v29 = vmul.f32 %v4668_v56, %v5683_v47  ;;  %v4670_v35 = vpop.eup %4669 }
 0x49b   : > { %v2523_v1 = vmul.f32 %v4670_v35, %v5687_v11 }
 0x49d   : > { %4328 = vmatmul.mubr.msk.f32.vlgmr.msra.gmra.mrb[20].mxu1 %vm1619_vm3, %v2520_v20  ;;  %v4672_v30 = vpop.eup %4671 }
 0x49e   : > { %4330 = vmatprep.mubr.msk.f32.mxu1 %vm4812_vm4, %v4813_v61  ;;  %v2524_v7 = vmul.f32 %v4672_v30, %v5691_v17 }
 0x4a1   : > { %4331 = vmatmul.mubr.msk.f32.gmra.mrb[22].mxu1 %vm1619_vm3, %v2521_v25 }
 0x4a2   : > { %4333 = vmatprep.mubr.msk.f32.mxu1 %vm4812_vm4, %v4813_v61 }
 0x4a5   : > { %4334 = vmatmul.mubr.msk.f32.gmra.mrb[24].mxu1 %vm1619_vm3, %v2522_v29 }
 0x4a6   : > { %4336 = vmatprep.mubr.msk.f32.mxu1 %vm4812_vm4, %v4813_v61 }
 0x4a9   : > { %4337 = vmatmul.mubr.msk.f32.gmra.mrb[26].mxu1 %vm1619_vm3, %v2523_v1 }
 0x4aa   : > { %4339 = vmatprep.mubr.msk.f32.mxu1 %vm4812_vm4, %v4813_v61 }
 0x4ad   : > { %4340 = vmatmul.mubr.msk.f32.gmra.mrb[28].mxu1 %vm1619_vm3, %v2524_v7 }
 0x570   : > { %v2614_v36 = vpop.f32.mrb[20].mxu1 }
 0x571   : > { %v4329_v47 = vpop.f32.mrb[21].mxu1  ;;  %4351 = vmatmul.mubr.msk.f32.vlgmr.msra.gmra.mrb[50].mxu0 %vm1176_vm5, %v2614_v36 }
 0x572   : > { %4353 = vmatprep.mubr.msk.f32.mxu0 %vm4812_vm4, %v4813_v61 }
 0x574   : > { %v2619_v34 = vpop.f32.mrb[22].mxu1 }
 0x575   : > { %v4332_v44 = vpop.f32.mrb[23].mxu1  ;;  %4354 = vmatmul.mubr.msk.f32.gmra.mrb[52].mxu0 %vm1176_vm5, %v2619_v34 }
 0x576   : > { %4356 = vmatprep.mubr.msk.f32.mxu0 %vm4812_vm4, %v4813_v61 }
 0x578   : > { %v2624_v11 = vpop.f32.mrb[24].mxu1 }
 0x579   : > { %v4335_v43 = vpop.f32.mrb[25].mxu1  ;;  %4357 = vmatmul.mubr.msk.f32.gmra.mrb[54].mxu0 %vm1176_vm5, %v2624_v11 }
 0x57a   : > { %4359 = vmatprep.mubr.msk.f32.mxu0 %vm4812_vm4, %v4813_v61 }
 0x57c   : > { %v2629_v17 = vpop.f32.mrb[26].mxu1 }
 0x57d   : > { %v4338_v38 = vpop.f32.mrb[27].mxu1  ;;  %4360 = vmatmul.mubr.msk.f32.gmra.mrb[56].mxu0 %vm1176_vm5, %v2629_v17 }
 0x57e   : > { %4362 = vmatprep.mubr.msk.f32.mxu0 %vm4812_vm4, %v4813_v61 }
 0x580   : > { %v2634_v42 = vpop.f32.mrb[28].mxu1 }
 0x581   : > { %v4341_v27 = vpop.f32.mrb[29].mxu1  ;;  %4363 = vmatmul.mubr.msk.f32.gmra.mrb[58].mxu0 %vm1176_vm5, %v2634_v42 }
 0x644   : > { %v2735_v45 = vpop.f32.mrb[50].mxu0 }
 0x645   : > { %v2736_v49 = vadd.f32 %v3864_v59, %v2735_v45  ;;  %v4352_v51 = vpop.f32.mrb[51].mxu0 }
 0x647   : > { %v2759_v50 = vadd.f32 %v4683_v48, %v2736_v49  ;;  %v3870_v48 = vld [vmem:[%s995_s16] ss:$0 sm:$0xff] }
 0x648   : > { %v2740_v52 = vpop.f32.mrb[52].mxu0 }
 0x649   : > { %v2741_v0 = vadd.f32 %v3864_v59, %v2740_v52  ;;  %v4355_v39 = vpop.f32.mrb[53].mxu0  ;;  %v2766_v53 = vsel %vm1176_vm5, %v2759_v50, 0.0 }
 0x64a   : > { %2767 = vadd.xlane.f32.xlu0 %v2766_v53  ;;  %v3871_v39 = vld [vmem:[%s6114_s21] ss:$0 sm:$0xff] }
 0x64b   : > { %v2760_v10 = vadd.f32 %v4684_v55, %v2741_v0 }
 0x64c   : > { %v2745_v57 = vpop.f32.mrb[54].mxu0 }
 0x64d   : > { %v2746_v61 = vadd.f32 %v3864_v59, %v2745_v57  ;;  %v4358_v60 = vpop.f32.mrb[55].mxu0  ;;  %v2769_v12 = vsel %vm1176_vm5, %v2760_v10, 0.0 }
 0x64e   : > { %2770 = vadd.xlane.f32.xlu1 %v2769_v12 }
 0x64f   : > { %v2761_v16 = vadd.f32 %v4685_v9, %v2746_v61 }
 0x650   : > { %v2750_v33 = vpop.f32.mrb[56].mxu0 }
 0x651   : > { %v2751_v3 = vadd.f32 %v3864_v59, %v2750_v33  ;;  %v4361_v62 = vpop.f32.mrb[57].mxu0  ;;  %v2772_v24 = vsel %vm1176_vm5, %v2761_v16, 0.0 }
 0x652   : > { %2773 = vadd.xlane.f32.xlu0 %v2772_v24 }
 0x653   : > { %v2762_v6 = vadd.f32 %v4686_v40, %v2751_v3 }
 0x654   : > { %v2755_v15 = vpop.f32.mrb[58].mxu0 }
 0x655   : > { %v2756_v2 = vadd.f32 %v3864_v59, %v2755_v15  ;;  %v4364_v18 = vpop.f32.mrb[59].mxu0  ;;  %v2775_v4 = vsel %vm1176_vm5, %v2762_v6, 0.0 }
 0x656   : > { %2776 = vadd.xlane.f32.xlu1 %v2775_v4 }
 0x657   : > { %v2763_v13 = vadd.f32 %v4687_v32, %v2756_v2 }
 0x659   : > { %v2779_v14 = vsel %vm2778_vm10, %v2763_v13, 0.0 }
 0x65a   : > { %2780 = vadd.xlane.f32.xlu0 %v2779_v14 }
 0x6d7   : > { %v2768_v26 = vpop.xlane.xlu0 %2767 }
 0x6d8   : > { %v2783_v54 = vmul.f32 0.03125, %v2768_v26 }
 0x6da   : > { %v2788_v37 = vsub.f32 %v2759_v50, %v2783_v54 }
 0x6db   : > { %v2771_v22 = vpop.xlane.xlu1 %2770 }
 0x6dc   : > { %v2784_v21 = vmul.f32 0.03125, %v2771_v22  ;;  %v2793_v23 = vmul.f32 %v2788_v37, %v2788_v37 }
 0x6de   : > { %v2789_v58 = vsub.f32 %v2760_v10, %v2784_v21  ;;  %v2798_v28 = vsel %vm1176_vm5, %v2793_v23, 0.0 }
 0x6df   : > { %v2774_v41 = vpop.xlane.xlu0 %2773  ;;  %2799 = vadd.xlane.f32.xlu1 %v2798_v28 }
 0x6e0   : > { %v2785_v19 = vmul.f32 0.03125, %v2774_v41  ;;  %v2794_v46 = vmul.f32 %v2789_v58, %v2789_v58 }
 0x6e2   : > { %v2790_v8 = vsub.f32 %v2761_v16, %v2785_v19  ;;  %v2801_v31 = vsel %vm1176_vm5, %v2794_v46, 0.0 }
 0x6e3   : > { %v2777_v20 = vpop.xlane.xlu1 %2776  ;;  %2802 = vadd.xlane.f32.xlu0 %v2801_v31 }
 0x6e4   : > { %v2786_v5 = vmul.f32 0.03125, %v2777_v20  ;;  %v2795_v63 = vmul.f32 %v2790_v8, %v2790_v8 }
 0x6e6   : > { %v2791_v25 = vsub.f32 %v2762_v6, %v2786_v5  ;;  %v2804_v56 = vsel %vm1176_vm5, %v2795_v63, 0.0 }
 0x6e7   : > { %2805 = vadd.xlane.f32.xlu1 %v2804_v56  ;;  %v2781_v29 = vpop.xlane.xlu0 %2780 }
 0x6e8   : > { %v2787_v35 = vmul.f32 0.03125, %v2781_v29  ;;  %v2796_v1 = vmul.f32 %v2791_v25, %v2791_v25 }
 0x6ea   : > { %v2792_v30 = vsub.f32 %v2763_v13, %v2787_v35  ;;  %v2807_v7 = vsel %vm1176_vm5, %v2796_v1, 0.0 }
 0x6eb   : > { %2808 = vadd.xlane.f32.xlu0 %v2807_v7 }
 0x6ec   : > { %v2797_v36 = vmul.f32 %v2792_v30, %v2792_v30 }
 0x6ee   : > { %v2810_v47 = vsel %vm2778_vm10, %v2797_v36, 0.0 }
 0x6ef   : > { %2811 = vadd.xlane.f32.xlu1 %v2810_v47 }
 0x76c   : > { %v2800_v34 = vpop.xlane.xlu1 %2799 }
 0x76d   : > { %v2813_v44 = vmul.f32 0.03125, %v2800_v34 }
 0x76f   : > { %v2818_v11 = vadd.f32 1e-05, %v2813_v44 }
 0x770   : > { %v2803_v43 = vpop.xlane.xlu0 %2802 }
 0x771   : > { %4673 = vrsqrt.f32 %v2818_v11  ;;  %v2814_v17 = vmul.f32 0.03125, %v2803_v43 }
 0x773   : > { %v2819_v38 = vadd.f32 1e-05, %v2814_v17 }
 0x774   : > { %v2806_v42 = vpop.xlane.xlu1 %2805 }
 0x775   : > { %4675 = vrsqrt.f32 %v2819_v38  ;;  %v2815_v27 = vmul.f32 0.03125, %v2806_v42 }
 0x777   : > { %v2820_v59 = vadd.f32 1e-05, %v2815_v27 }
 0x778   : > { %v2809_v45 = vpop.xlane.xlu0 %2808 }
 0x779   : > { %4677 = vrsqrt.f32 %v2820_v59  ;;  %v2816_v49 = vmul.f32 0.03125, %v2809_v45 }
 0x77b   : > { %v4674_v51 = vpop.eup %4673  ;;  %v2821_v50 = vadd.f32 1e-05, %v2816_v49 }
 0x77c   : > { %v2828_v52 = vmul.f32 %v4674_v51, %v2788_v37  ;;  %v2812_v0 = vpop.xlane.xlu1 %2811 }
 0x77d   : > { %4679 = vrsqrt.f32 %v2821_v50  ;;  %v2817_v53 = vmul.f32 0.03125, %v2812_v0 }
 0x77e   : > { %v2839_v55 = vmul.f32 %v3870_v48, %v2828_v52 }
 0x77f   : > { %v4676_v10 = vpop.eup %4675  ;;  %v2822_v57 = vadd.f32 1e-05, %v2817_v53 }
 0x780   : > { %v2850_v61 = vadd.f32 %v3871_v39, %v2839_v55  ;;  %v2829_v60 = vmul.f32 %v4676_v10, %v2789_v58 }
 0x781   : > { %4681 = vrsqrt.f32 %v2822_v57 }
 0x782   : > { %2855 = vst.msk [vmem:[#allocation3] sm:$0xff] %vm1176_vm5, %v2850_v61  ;;  %v2840_v12 = vmul.f32 %v3870_v48, %v2829_v60 }
 0x783   : > { %v4678_v9 = vpop.eup %4677 }
 0x784   : > { %v2851_v16 = vadd.f32 %v3871_v39, %v2840_v12  ;;  %v2830_v33 = vmul.f32 %v4678_v9, %v2790_v8 }
 0x786   : > { %2856 = vst.msk [vmem:[#allocation3 + $0x8] sm:$0xff] %vm1176_vm5, %v2851_v16  ;;  %v2841_v3 = vmul.f32 %v3870_v48, %v2830_v33 }
 0x787   : > { %v4680_v62 = vpop.eup %4679 }
 0x788   : > { %v2852_v24 = vadd.f32 %v3871_v39, %v2841_v3  ;;  %v2831_v40 = vmul.f32 %v4680_v62, %v2791_v25 }
 0x78a   : > { %2857 = vst.msk [vmem:[#allocation3 + $0x10] sm:$0xff] %vm1176_vm5, %v2852_v24  ;;  %v2842_v6 = vmul.f32 %v3870_v48, %v2831_v40 }
 0x78b   : > { %v4682_v15 = vpop.eup %4681 }
 0x78c   : > { %v2853_v2 = vadd.f32 %v3871_v39, %v2842_v6  ;;  %v2832_v18 = vmul.f32 %v4682_v15, %v2792_v30 }
 0x78e   : > { %2858 = vst.msk [vmem:[#allocation3 + $0x18] sm:$0xff] %vm1176_vm5, %v2853_v2  ;;  %v2843_v4 = vmul.f32 %v3870_v48, %v2832_v18 }
 0x790   : > { %v2854_v32 = vadd.f32 %v3871_v39, %v2843_v4 }
 0x792   : > { %2859 = vst.msk [vmem:[#allocation3 + $0x20] sm:$0x3] %vm2778_vm10, %v2854_v32 }
 0x793 PF: > { %v4688_v13 = vld [vmem:[%s5091_s7 + $0x4] ss:$16 sps:$4 sm:$0xff]   ;;  %v4690_v14 = vld [vmem:[%s5091_s7 + $0xc] ss:$16 sps:$4 sm:$0xff]   ;;  %v4814_v26 = vmov 0   ;;  %vm2943_vm4 = vcmask 261120   ;;  %v2883_v36 = vlaneseq }
 0x794   : > { %2985 = vmatprep.mubr.bf16.mxu0 %v4814_v26  ;;  %3046 = vmatprep.mubr.bf16.mxu1 %v4814_v26  ;;  %v4692_v54 = vld [vmem:[%s5091_s7] ss:$16 sps:$4 sm:$0xff]   ;;  %v4693_v37 = vld [vmem:[%s5091_s7 + $0x8] ss:$16 sps:$4 sm:$0xff]   ;;  %v4694_v22 = vld [vmem:[%s5091_s7 + $0x24] ss:$16 sps:$4 sm:$0xff]  }
 0x795   : > { %2953 = vmatprep.subr.bf16.mxu0 %v4688_v13  ;;  %3014 = vmatprep.subr.bf16.mxu1 %v4690_v14  ;;  %v4696_v21 = vld [vmem:[%s5091_s7 + $0x2c] ss:$16 sps:$4 sm:$0xff]   ;;  %v4698_v23 = vld [vmem:[%s5091_s7 + $0x20] ss:$16 sps:$4 sm:$0xff]   ;;  %v4699_v58 = vld [vmem:[%s5091_s7 + $0x28] ss:$16 sps:$4 sm:$0xff]  }
 0x796   : > { %2954 = vmatpush1.bf16.msra.mxu0 %v4692_v54  ;;  %3015 = vmatpush1.bf16.msra.mxu1 %v4693_v37  ;;  %v2865_v28 = vld [vmem:[#allocation3] sm:$0xff]  ;;  %v2866_v41 = vld [vmem:[#allocation3 + $0x8] sm:$0xff]  ;;  %v2867_v31 = vld [vmem:[#allocation3 + $0x10] sm:$0xff]  ;;  %v2884_v47 = vshrl.u32 %v2883_v36, 7  ;;  %p3283_p2 = scmp.eq.s32.totalorder %s4790_s29, 3  ;;  %vm3281_vm5 = vcmask 254976  }
 0x797   : > { %2955 = vmatprep.subr.bf16.mxu0 %v4694_v22  ;;  %3016 = vmatprep.subr.bf16.mxu1 %v4696_v21  ;;  %v2870_v19 = vpack.c.bf16 %v2866_v41, %v2865_v28  ;;  %v4702_v46 = vld [vmem:[%s5093_s24 + $0x4] ss:$16 sps:$4 sm:$0xff]   ;;  %v4705_v8 = vld [vmem:[%s5093_s24 + $0xc] ss:$16 sps:$4 sm:$0xff]   ;;  %v4700_v5 = vld [vmem:[%s5093_s24] ss:$16 sps:$4 sm:$0xff]  }
 0x798   : > { %v2868_v20 = vld [vmem:[#allocation3 + $0x18] sm:$0xff]  ;;  %v4708_v25 = vld [vmem:[%s5093_s24 + $0x24] ss:$16 sps:$4 sm:$0xff]   ;;  %v4706_v1 = vld [vmem:[%s5093_s24 + $0x20] ss:$16 sps:$4 sm:$0xff]   ;;  %v2885_v34 = vsub.s32 0, %v2884_v47 }
 0x799   : > { %v4703_v63 = vld [vmem:[%s5093_s24 + $0x8] ss:$16 sps:$4 sm:$0xff]   ;;  %v4711_v56 = vld [vmem:[%s5093_s24 + $0x2c] ss:$16 sps:$4 sm:$0xff]   ;;  %v2871_v29 = vpack.c.bf16 %v2868_v20, %v2867_v31  ;;  %v2869_v35 = vld [vmem:[#allocation3 + $0x20] sm:$0x3] }
 0x79a   : > { %2956 = vmatpush1.bf16.msra.mxu0 %v4698_v23  ;;  %3017 = vmatpush1.bf16.msra.mxu1 %v4699_v58  ;;  %v4709_v30 = vld [vmem:[%s5093_s24 + $0x28] ss:$16 sps:$4 sm:$0xff]   ;;  %v2872_v7 = vpack.c.bf16 %v2869_v35, %v2869_v35  ;;  %v2893_v44 = vsub.s32 2, %v2884_v47  ;;  %v2889_v43 = vsub.s32 1, %v2884_v47  ;;  %v2897_v17 = vsub.s32 3, %v2884_v47  ;;  %p3894_p3 = scmp.ne.s32.totalorder %s4790_s29, 3 }
 0x79b   : > { %3160 = vmatprep.subr.bf16.mxu0 %v4702_v46  ;;  %3216 = vmatprep.subr.bf16.mxu1 %v4705_v8  ;;  %v2881_v11 = vld [vmem:[%s1016_s22] sm:$0xf] }
 0x79c   : > { %v5885_v38 = vrot.slane %v2881_v11, %v2885_v34  ;;  %v5887_v42 = vrot.slane %v2881_v11, %v2893_v44  ;;  %v5889_v27 = vrot.slane %v2881_v11, %v2889_v43  ;;  %v5891_v59 = vrot.slane %v2881_v11, %v2897_v17 }
 0x79d   : > { %3880 = vmatmul.mubr.msk.bf16.vlgmr.msra.gmra.mrb[0].mxu0 %vm2943_vm4, %v2870_v19  ;;  %3883 = vmatmul.mubr.msk.bf16.vlgmr.msra.gmra.mrb[0].mxu1 %vm2943_vm4, %v2870_v19 }
 0x79e   : > { %2995 = vmatprep.mubr.bf16.mxu0 %v4814_v26  ;;  %3056 = vmatprep.mubr.bf16.mxu1 %v4814_v26 }
 0x7a3   : > { %3161 = vmatpush1.bf16.xpose.msra.mxu0 %v4700_v5  ;;  %3217 = vmatpush1.bf16.xpose.msra.mxu1 %v4703_v63 }
 0x7a4   : > { %3162 = vmatprep.subr.bf16.mxu0 %v4708_v25  ;;  %3218 = vmatprep.subr.bf16.mxu1 %v4711_v56 }
 0x7a5   : > { %3881 = vmatmul.mubr.msk.bf16.gmra.mrb[4].mxu0 %vm2943_vm4, %v2871_v29  ;;  %3884 = vmatmul.mubr.msk.bf16.gmra.mrb[4].mxu1 %vm2943_vm4, %v2871_v29 }
 0x7a6   : > { %3005 = vmatprep.mubr.bf16.mxu0 %v4814_v26  ;;  %3066 = vmatprep.mubr.bf16.mxu1 %v4814_v26 }
 0x7ab   : > { %3163 = vmatpush1.bf16.xpose.msra.mxu0 %v4706_v1  ;;  %3219 = vmatpush1.bf16.xpose.msra.mxu1 %v4709_v30 }
 0x7ad   : > { %3882 = vmatmul.mubr.msk.bf16.gmra.mrb[8].mxu0 %vm2943_vm4, %v2872_v7  ;;  %3885 = vmatmul.mubr.msk.bf16.gmra.mrb[8].mxu1 %vm2943_vm4, %v2872_v7 }
 0x870   : > { %v2987_v45 = vpop.f32.mrb[0].mxu0  ;;  %v3048_v49 = vpop.f32.mrb[0].mxu1 }
 0x871   : > { %v2988_v51 = vadd.f32 %v2987_v45, %v5885_v38  ;;  %v3049_v48 = vadd.f32 %v3048_v49, %v5887_v42  ;;  %v2989_v50 = vpop.f32.mrb[1].mxu0  ;;  %v3050_v52 = vpop.f32.mrb[1].mxu1 }
 0x872   : > { %v2990_v0 = vadd.f32 %v2989_v50, %v5889_v27  ;;  %v3051_v39 = vadd.f32 %v3050_v52, %v5891_v59  ;;  %v2991_v53 = vpop.f32.mrb[2].mxu0  ;;  %v3052_v55 = vpop.f32.mrb[2].mxu1 }
 0x873   : > { %v2992_v10 = vadd.f32 %v2991_v53, %v5885_v38  ;;  %v3053_v57 = vadd.f32 %v3052_v55, %v5887_v42  ;;  %v2993_v61 = vpop.f32.mrb[3].mxu0  ;;  %v3054_v60 = vpop.f32.mrb[3].mxu1  ;;  %v3075_v16 = vmax.f32 %v2988_v51, 0.0  ;;  %v3077_v33 = vmax.f32 %v3049_v48, 0.0 }
 0x874   : > { %v2994_v12 = vadd.f32 %v2993_v61, %v5889_v27  ;;  %v3055_v9 = vadd.f32 %v3054_v60, %v5891_v59  ;;  %v3076_v24 = vmax.f32 %v2990_v0, 0.0  ;;  %v3078_v40 = vmax.f32 %v3051_v39, 0.0  ;;  %v3107_v60 = vld [vmem:[#allocation4] sm:$0xff] }
 0x875   : > { %v3079_v3 = vmax.f32 %v2992_v10, 0.0  ;;  %v3081_v62 = vmax.f32 %v3053_v57, 0.0 }
 0x876   : > { %v3080_v6 = vmax.f32 %v2994_v12, 0.0  ;;  %v3082_v15 = vmax.f32 %v3055_v9, 0.0 }
 0x877   : > { %v3095_v2 = vpack.c.bf16 %v3079_v3, %v3075_v16  ;;  %v3097_v18 = vpack.c.bf16 %v3081_v62, %v3077_v33  ;;  %v3108_v62 = vld [vmem:[#allocation4 + $0x8] sm:$0xff] }
 0x878   : > { %v3096_v4 = vpack.c.bf16 %v3080_v6, %v3076_v24  ;;  %v3098_v32 = vpack.c.bf16 %v3082_v15, %v3078_v40  ;;  %v2997_v13 = vpop.f32.mrb[4].mxu0  ;;  %v3058_v14 = vpop.f32.mrb[4].mxu1 }
 0x879   : > { %v2998_v26 = vadd.f32 %v2997_v13, %v5885_v38  ;;  %v3059_v54 = vadd.f32 %v3058_v14, %v5887_v42  ;;  %v2999_v37 = vpop.f32.mrb[5].mxu0  ;;  %v3060_v22 = vpop.f32.mrb[5].mxu1 }
 0x87a   : > { %v3000_v21 = vadd.f32 %v2999_v37, %v5889_v27  ;;  %v3061_v23 = vadd.f32 %v3060_v22, %v5891_v59  ;;  %v3001_v58 = vpop.f32.mrb[6].mxu0  ;;  %v3062_v28 = vpop.f32.mrb[6].mxu1  ;;  %3192 = vmatprep.mubr.bf16.mxu0 %v3096_v4  ;;  %3248 = vmatprep.mubr.bf16.mxu1 %v3098_v32  ;;  %v3109_v32 = vld [vmem:[#allocation4 + $0x10] sm:$0xff]  ;;  %v3110_v22 = vld [vmem:[#allocation4 + $0x18] sm:$0xff] }
 0x87b   : > { %v3002_v41 = vadd.f32 %v3001_v58, %v5885_v38  ;;  %v3063_v19 = vadd.f32 %v3062_v28, %v5887_v42  ;;  %v3003_v46 = vpop.f32.mrb[7].mxu0  ;;  %v3064_v8 = vpop.f32.mrb[7].mxu1  ;;  %3193 = vmatmul.mubr.bf16.vlgmr.msra.gmra.mrb[12].mxu0 %v3095_v2  ;;  %3249 = vmatmul.mubr.bf16.vlgmr.msra.gmra.mrb[12].mxu1 %v3097_v18  ;;  %v3083_v5 = vmax.f32 %v2998_v26, 0.0  ;;  %v3085_v63 = vmax.f32 %v3059_v54, 0.0 }
 0x87c   : > { %v3004_v31 = vadd.f32 %v3003_v46, %v5889_v27  ;;  %v3065_v20 = vadd.f32 %v3064_v8, %v5891_v59  ;;  %v3084_v29 = vmax.f32 %v3000_v21, 0.0  ;;  %v3086_v35 = vmax.f32 %v3061_v23, 0.0  ;;  %v3111_v8 = vld [vmem:[#allocation4 + $0x20] sm:$0x3] }
 0x87d   : > { %v3087_v25 = vmax.f32 %v3002_v41, 0.0  ;;  %v3089_v56 = vmax.f32 %v3063_v19, 0.0 }
 0x87e   : > { %v3088_v1 = vmax.f32 %v3004_v31, 0.0  ;;  %v3090_v30 = vmax.f32 %v3065_v20, 0.0 }
 0x87f   : > { %v3099_v7 = vpack.c.bf16 %v3087_v25, %v3083_v5  ;;  %v3101_v36 = vpack.c.bf16 %v3089_v56, %v3085_v63 }
 0x880   : > { %v3100_v47 = vpack.c.bf16 %v3088_v1, %v3084_v29  ;;  %v3102_v34 = vpack.c.bf16 %v3090_v30, %v3086_v35  ;;  %v3007_v44 = vpop.f32.mrb[8].mxu0  ;;  %v3068_v11 = vpop.f32.mrb[8].mxu1  ;;  %v3287_v30 = vld [vmem:[#allocation3] sm:$0xff] (!%p3894_p3) }
 0x881   : > { %v3008_v43 = vadd.f32 %v3007_v44, %v5885_v38  ;;  %v3069_v17 = vadd.f32 %v3068_v11, %v5887_v42  ;;  %v3009_v45 = vpop.f32.mrb[9].mxu0  ;;  %v3070_v49 = vpop.f32.mrb[9].mxu1  ;;  %v3288_v11 = vld [vmem:[#allocation3 + $0x8] sm:$0xff] (!%p3894_p3) }
 0x882   : > { %v3010_v51 = vadd.f32 %v3009_v45, %v5889_v27  ;;  %v3071_v48 = vadd.f32 %v3070_v49, %v5891_v59  ;;  %v3011_v50 = vpop.f32.mrb[10].mxu0  ;;  %v3072_v52 = vpop.f32.mrb[10].mxu1  ;;  %3200 = vmatprep.mubr.bf16.mxu0 %v3100_v47  ;;  %3256 = vmatprep.mubr.bf16.mxu1 %v3102_v34  ;;  %v3289_v34 = vld [vmem:[#allocation3 + $0x10] sm:$0xff] (!%p3894_p3)  ;;  %v3290_v45 = vld [vmem:[#allocation3 + $0x18] sm:$0xff] (!%p3894_p3) }
 0x883   : > { %v3012_v0 = vpop.f32.mrb[11].mxu0  ;;  %v3073_v39 = vpop.f32.mrb[11].mxu1  ;;  %3201 = vmatmul.mubr.bf16.gmra.mrb[16].mxu0 %v3099_v7  ;;  %3257 = vmatmul.mubr.bf16.gmra.mrb[16].mxu1 %v3101_v36  ;;  %v3091_v38 = vmax.f32 %v3008_v43, 0.0  ;;  %v3093_v10 = vmax.f32 %v3069_v17, 0.0  ;;  %v3895_v36 = vld [vmem:[%s1007_s25] ss:$0 sm:$0xff] (!%p3894_p3) }
 0x884   : > { %v3092_v53 = vmax.f32 %v3010_v51, 0.0  ;;  %v3094_v55 = vmax.f32 %v3071_v48, 0.0  ;;  %v3291_v52 = vld [vmem:[#allocation3 + $0x20] sm:$0x3] (!%p3894_p3) }
 0x885   : > { %v3103_v27 = vpack.c.bf16 %v3091_v38, %v3091_v38  ;;  %v3105_v61 = vpack.c.bf16 %v3093_v10, %v3093_v10 }
 0x886   : > { %v3104_v42 = vpack.c.bf16 %v3092_v53, %v3092_v53  ;;  %v3106_v57 = vpack.c.bf16 %v3094_v55, %v3094_v55 }
 0x888   : > { %3208 = vmatprep.mubr.bf16.mxu0 %v3104_v42  ;;  %3264 = vmatprep.mubr.bf16.mxu1 %v3106_v57 }
 0x88b   : > { %3209 = vmatmul.mubr.bf16.gmra.mrb[20].mxu0 %v3103_v27  ;;  %3265 = vmatmul.mubr.bf16.gmra.mrb[20].mxu1 %v3105_v61 }
 0x94e   : > { %v3194_v59 = vpop.f32.mrb[12].mxu0  ;;  %v3250_v12 = vpop.f32.mrb[12].mxu1 }
 0x94f   : > { %v3251_v9 = vadd.f32 %v3250_v12, %v3194_v59  ;;  %v3196_v16 = vpop.f32.mrb[13].mxu0  ;;  %v3252_v33 = vpop.f32.mrb[13].mxu1 }
 0x950   : > { %v3197_v3 = vpop.f32.mrb[14].mxu0  ;;  %v3253_v24 = vpop.f32.mrb[14].mxu1 }
 0x951   : > { %v3272_v40 = vadd.f32 %v3251_v9, %v3107_v60  ;;  %v3254_v6 = vadd.f32 %v3253_v24, %v3197_v3  ;;  %v3199_v15 = vpop.f32.mrb[15].mxu0  ;;  %v3255_v2 = vpop.f32.mrb[15].mxu1 }
 0x953   : > { %3277 = vst.msk [vmem:[#allocation4] sm:$0xff] %vm2943_vm4, %v3272_v40  ;;  %v3273_v18 = vadd.f32 %v3254_v6, %v3108_v62 }
 0x955   : > { %3278 = vst.msk [vmem:[#allocation4 + $0x8] sm:$0xff] %vm2943_vm4, %v3273_v18 }
 0x956   : > { %v3202_v4 = vpop.f32.mrb[16].mxu0  ;;  %v3258_v13 = vpop.f32.mrb[16].mxu1 }
 0x957   : > { %v3259_v14 = vadd.f32 %v3258_v13, %v3202_v4  ;;  %v3204_v26 = vpop.f32.mrb[17].mxu0  ;;  %v3260_v54 = vpop.f32.mrb[17].mxu1 }
 0x958   : > { %v3205_v37 = vpop.f32.mrb[18].mxu0  ;;  %v3261_v21 = vpop.f32.mrb[18].mxu1 }
 0x959   : > { %v3274_v23 = vadd.f32 %v3259_v14, %v3109_v32  ;;  %v3262_v58 = vadd.f32 %v3261_v21, %v3205_v37  ;;  %v3207_v28 = vpop.f32.mrb[19].mxu0  ;;  %v3263_v41 = vpop.f32.mrb[19].mxu1 }
 0x95a   : > { %v3292_v7 = vld [vmem:[#allocation4] sm:$0xff] (!%p3894_p3) }
 0x95b   : > { %3279 = vst.msk [vmem:[#allocation4 + $0x10] sm:$0xff] %vm2943_vm4, %v3274_v23  ;;  %v3275_v19 = vadd.f32 %v3262_v58, %v3110_v22  ;;  %v3297_v47 = vadd.f32 (!%p3894_p3), %v3292_v7, %v3287_v30 }
 0x95c   : > { %v3293_v17 = vld [vmem:[#allocation4 + $0x8] sm:$0xff] (!%p3894_p3) }
 0x95d   : > { %3280 = vst.msk [vmem:[#allocation4 + $0x18] sm:$0xff] %vm2943_vm4, %v3275_v19  ;;  %3286 = sbr.rel (%p3894_p3) target bundleno = 2730 (0xaaa), region = 166  ;;  %v3309_v51 = vadd.f32 (!%p3894_p3), %v3895_v36, %v3297_v47  ;;  %v3298_v48 = vadd.f32 (!%p3894_p3), %v3293_v17, %v3288_v11  ;;  %v3896_v47 = vld [vmem:[%s1001_s5] ss:$0 sm:$0xff] (!%p3894_p3) }
 0x95e   : > { %v3210_v46 = vpop.f32.mrb[20].mxu0  ;;  %v3266_v31 = vpop.f32.mrb[20].mxu1 }
 0x95f   : > { %v3267_v20 = vadd.f32 %v3266_v31, %v3210_v46  ;;  %v3212_v5 = vpop.f32.mrb[21].mxu0  ;;  %v3268_v63 = vpop.f32.mrb[21].mxu1  ;;  %v3316_v55 = vsel (!%p3894_p3), %vm2943_vm4, %v3309_v51, 0.0  ;;  %v3310_v38 = vadd.f32 (!%p3894_p3), %v3895_v36, %v3298_v48 }
 0x960   : > { %v3213_v25 = vpop.f32.mrb[22].mxu0  ;;  %v3269_v56 = vpop.f32.mrb[22].mxu1  ;;  %3317 = vadd.xlane.f32.xlu0 (!%p3894_p3), %v3316_v55 }
 0x961   : > { %v3276_v29 = vadd.f32 %v3267_v20, %v3111_v8  ;;  %v3214_v35 = vpop.f32.mrb[23].mxu0  ;;  %v3270_v1 = vpop.f32.mrb[23].mxu1  ;;  %v3319_v57 = vsel (!%p3894_p3), %vm2943_vm4, %v3310_v38, 0.0 }
 0x962   : > { %v3294_v44 = vld [vmem:[#allocation4 + $0x10] sm:$0xff] (!%p3894_p3) }
 0x963   : > { %3282 = vst.msk [vmem:[#allocation4 + $0x20] sm:$0x3] %vm3281_vm5, %v3276_v29  ;;  %v3299_v43 = vadd.f32 (!%p3894_p3), %v3294_v44, %v3289_v34  ;;  %v3897_v44 = vld [vmem:[%s1004_s26] ss:$0 sm:$0xff] (!%p3894_p3) }
 0x964   : > { %v3295_v49 = vld [vmem:[#allocation4 + $0x18] sm:$0xff]  ;;  %3320 = vadd.xlane.f32.xlu0 %v3319_v57 }
 0x965   : > { %v3300_v50 = vadd.f32 %v3295_v49, %v3290_v45  ;;  %v3311_v39 = vadd.f32 %v3895_v36, %v3299_v43 }
 0x967   : > { %v3312_v10 = vadd.f32 %v3895_v36, %v3300_v50  ;;  %v3322_v42 = vsel %vm2943_vm4, %v3311_v39, 0.0 }
 0x968   : > { %3323 = vadd.xlane.f32.xlu1 %v3322_v42 }
 0x969   : > { %v3325_v61 = vsel %vm2943_vm4, %v3312_v10, 0.0 }
 0x96a   : > { %v3296_v0 = vld [vmem:[#allocation4 + $0x20] sm:$0x3] }
 0x96b   : > { %v3301_v53 = vadd.f32 %v3296_v0, %v3291_v52 }
 0x96c   : > { %3326 = vadd.xlane.f32.xlu1 %v3325_v61 }
 0x96d   : > { %v3313_v27 = vadd.f32 %v3895_v36, %v3301_v53 }
 0x96f   : > { %v3328_v59 = vsel %vm3281_vm5, %v3313_v27, 0.0 }
 0x970   : > { %3329 = vadd.xlane.f32.xlu0 %v3328_v59 }
 0x9ed   : > { %v3318_v60 = vpop.xlane.xlu0 %3317 }
 0x9ee   : > { %v3332_v12 = vmul.f32 0.03125, %v3318_v60 }
 0x9f0   : > { %v3337_v33 = vsub.f32 %v3309_v51, %v3332_v12 }
 0x9f1   : > { %v3321_v62 = vpop.xlane.xlu0 %3320 }
 0x9f2   : > { %v3333_v24 = vmul.f32 0.03125, %v3321_v62  ;;  %v3342_v6 = vmul.f32 %v3337_v33, %v3337_v33 }
 0x9f4   : > { %v3338_v18 = vsub.f32 %v3310_v38, %v3333_v24  ;;  %v3347_v4 = vsel %vm2943_vm4, %v3342_v6, 0.0 }
 0x9f5   : > { %v3324_v9 = vpop.xlane.xlu1 %3323  ;;  %3348 = vadd.xlane.f32.xlu1 %v3347_v4 }
 0x9f6   : > { %v3334_v16 = vmul.f32 0.03125, %v3324_v9  ;;  %v3343_v54 = vmul.f32 %v3338_v18, %v3338_v18 }
 0x9f8   : > { %v3339_v3 = vsub.f32 %v3311_v39, %v3334_v16  ;;  %v3350_v21 = vsel %vm2943_vm4, %v3343_v54, 0.0 }
 0x9f9   : > { %v3327_v40 = vpop.xlane.xlu1 %3326  ;;  %3351 = vadd.xlane.f32.xlu0 %v3350_v21 }
 0x9fa   : > { %v3335_v15 = vmul.f32 0.03125, %v3327_v40  ;;  %v3344_v2 = vmul.f32 %v3339_v3, %v3339_v3 }
 0x9fc   : > { %v3340_v32 = vsub.f32 %v3312_v10, %v3335_v15  ;;  %v3353_v26 = vsel %vm2943_vm4, %v3344_v2, 0.0 }
 0x9fd   : > { %v3330_v13 = vpop.xlane.xlu0 %3329  ;;  %3354 = vadd.xlane.f32.xlu1 %v3353_v26 }
 0x9fe   : > { %v3336_v14 = vmul.f32 0.03125, %v3330_v13  ;;  %v3345_v37 = vmul.f32 %v3340_v32, %v3340_v32 }
 0xa00   : > { %v3341_v22 = vsub.f32 %v3313_v27, %v3336_v14  ;;  %v3356_v23 = vsel %vm2943_vm4, %v3345_v37, 0.0 }
 0xa01   : > { %3357 = vadd.xlane.f32.xlu0 %v3356_v23 }
 0xa02   : > { %v3346_v58 = vmul.f32 %v3341_v22, %v3341_v22 }
 0xa04   : > { %v3359_v28 = vsel %vm3281_vm5, %v3346_v58, 0.0 }
 0xa05   : > { %3360 = vadd.xlane.f32.xlu1 %v3359_v28 }
 0xa82   : > { %v3349_v41 = vpop.xlane.xlu1 %3348 }
 0xa83   : > { %v3362_v19 = vmul.f32 0.03125, %v3349_v41 }
 0xa85   : > { %v3367_v46 = vadd.f32 1e-05, %v3362_v19 }
 0xa86   : > { %v3352_v31 = vpop.xlane.xlu0 %3351 }
 0xa87   : > { %4712 = vrsqrt.f32 %v3367_v46  ;;  %v3363_v5 = vmul.f32 0.03125, %v3352_v31 }
 0xa89   : > { %v3368_v25 = vadd.f32 1e-05, %v3363_v5 }
 0xa8a   : > { %v3355_v8 = vpop.xlane.xlu1 %3354 }
 0xa8b   : > { %v3364_v20 = vmul.f32 0.03125, %v3355_v8 }
 0xa8d   : > { %v3369_v63 = vadd.f32 1e-05, %v3364_v20 }
 0xa8e   : > { %v3358_v29 = vpop.xlane.xlu0 %3357 }
 0xa8f   : > { %4714 = vrsqrt.f32 %v3369_v63  ;;  %v3365_v1 = vmul.f32 0.03125, %v3358_v29 }
 0xa90   : > { %4716 = vrsqrt.f32 %v3368_v25 }
 0xa91   : > { %v3370_v7 = vadd.f32 1e-05, %v3365_v1  ;;  %v4713_v36 = vpop.eup %4712 }
 0xa92   : > { %v3361_v56 = vpop.xlane.xlu1 %3360  ;;  %v3377_v34 = vmul.f32 %v4713_v36, %v3337_v33 }
 0xa93   : > { %v3366_v35 = vmul.f32 0.03125, %v3361_v56 }
 0xa94   : > { %v3388_v11 = vmul.f32 %v3896_v47, %v3377_v34 }
 0xa95   : > { %v3371_v30 = vadd.f32 1e-05, %v3366_v35 }
 0xa96   : > { %v3399_v45 = vadd.f32 %v3897_v44, %v3388_v11 }
 0xa97   : > { %4718 = vrsqrt.f32 %v3371_v30 }
 0xa98   : > { %4720 = vrsqrt.f32 %v3370_v7  ;;  %3404 = vst.msk [vmem:[#allocation2] sm:$0xff] %vm2943_vm4, %v3399_v45 }
 0xa99   : > { %v4715_v43 = vpop.eup %4714 }
 0xa9a   : > { %v4717_v17 = vpop.eup %4716  ;;  %v3379_v49 = vmul.f32 %v4715_v43, %v3339_v3 }
 0xa9b   : > { %v3378_v51 = vmul.f32 %v4717_v17, %v3338_v18 }
 0xa9c   : > { %v3390_v48 = vmul.f32 %v3896_v47, %v3379_v49 }
 0xa9d   : > { %v3389_v52 = vmul.f32 %v3896_v47, %v3378_v51 }
 0xa9e   : > { %v3401_v39 = vadd.f32 %v3897_v44, %v3390_v48 }
 0xa9f   : > { %v3400_v55 = vadd.f32 %v3897_v44, %v3389_v52 }
 0xaa0   : > { %3406 = vst.msk [vmem:[#allocation2 + $0x10] sm:$0xff] %vm2943_vm4, %v3401_v39 }
 0xaa1   : > { %v4719_v50 = vpop.eup %4718  ;;  %3405 = vst.msk [vmem:[#allocation2 + $0x8] sm:$0xff] %vm2943_vm4, %v3400_v55 }
 0xaa2   : > { %v4721_v0 = vpop.eup %4720  ;;  %v3381_v53 = vmul.f32 %v4719_v50, %v3341_v22 }
 0xaa3   : > { %v3380_v38 = vmul.f32 %v4721_v0, %v3340_v32 }
 0xaa4   : > { %v3392_v10 = vmul.f32 %v3896_v47, %v3381_v53 }
 0xaa5   : > { %v3391_v42 = vmul.f32 %v3896_v47, %v3380_v38 }
 0xaa6   : > { %v3403_v57 = vadd.f32 %v3897_v44, %v3392_v10 }
 0xaa7   : > { %v3402_v27 = vadd.f32 %v3897_v44, %v3391_v42 }
 0xaa8   : > { %3408 = vst.msk [vmem:[#allocation2 + $0x20] sm:$0x3] %vm3281_vm5, %v3403_v57 }
 0xaa9   : > { %3407 = vst.msk [vmem:[#allocation2 + $0x18] sm:$0xff] %vm2943_vm4, %v3402_v27 }
 0xaaa PF: > { %p3409_p4 = scmp.eq.s32.totalorder %s4794_s30, 1 }
 0xaac   : > { %p3410_p5 = pnand %p3409_p4, %p3283_p2 }
 0xaad   : > { %s6118_s26 = sld [smem:[#allocation34_spill]] (!%p3410_p5)  ;;  %v4815_v12 = vmov (!%p3410_p5), 0.0|0.0   ;;  %vm4816_vm11 = vmmov (!%p3410_p5), 0   ;;  %v4817_v33 = vmov (!%p3410_p5), 0.0   ;;  %v3414_v62 = vld [vmem:[#allocation2] sm:$0xff] (!%p3410_p5)  ;;  %v3415_v24 = vld [vmem:[#allocation2 + $0x10] sm:$0xff] (!%p3410_p5) }
 0xaae   : > { %3413 = sbr.rel (%p3410_p5) target bundleno = 2964 (0xb94), region = 170  ;;  %4476 = vmatprep.subr.bf16.mxu0 (!%p3410_p5), %v4815_v12  ;;  %4373 = vmatprep.mubr.msk.f32.mxu0 (!%p3410_p5), %vm4816_vm11, %v4817_v33  ;;  %vm3416_vm12 = vcmask (!%p3410_p5), 1040384   ;;  %s6119_s7 = sld [smem:[#allocation35_spill]] (!%p3410_p5)  ;;  %vm3502_vm13 = vcmask (!%p3410_p5), 74752  }
 0xaaf   : > { %v3417_v40 = vsel (!%p3410_p5), %vm3416_vm12, %v3414_v62, %v3415_v24 }
 0xab3   : > { %v3418_v61 = vld [vmem:[%s6118_s26] sm:$0xff] (!%p3410_p5)  ;;  %v3419_v59 = vld [vmem:[%s6118_s26 + $0x8] sm:$0xff] (!%p3410_p5)  ;;  %v3420_v60 = vld [vmem:[%s6118_s26 + $0x10] sm:$0xff] (!%p3410_p5) }
 0xab4   : > { %v4477_v9 = vpack.c.bf16 (!%p3410_p5), %v3419_v59, %v3418_v61  ;;  %v3421_v16 = vld [vmem:[%s6118_s26 + $0x18] sm:$0xff] (!%p3410_p5)  ;;  %v3898_v6 = vld [vmem:[%s6119_s7] ss:$0 sm:$0xff] (!%p3410_p5) }
 0xab5   : > { %v4480_v3 = vpack.c.bf16 %v3421_v16, %v3420_v60 }
 0xab6   : > { %4478 = vmatpush3.bf16.msra.mxu0 %v4477_v9 }
 0xab7   : > { %4479 = vmatprep.subr.bf16.mxu0 %v4815_v12 }
 0xaba   : > { %4481 = vmatpush3.bf16.msra.mxu0 %v4480_v3 }
 0xabd   : > { %4374 = vmatmul.mubr.msk.f32.vlgmr.msra.gmra.mrb[0].mxu0 %vm2943_vm4, %v3417_v40 }
 0xb90   : > { %v3498_v15 = vpop.f32.mrb[0].mxu0 }
 0xb91   : > { %v3499_v2 = vadd.f32 %v3898_v6, %v3498_v15  ;;  %v4375_v18 = vpop.f32.mrb[1].mxu0 }
 0xb93   : > { %3503 = vst.msk [vmem:[#allocation7] sm:$0x3] %vm3502_vm13, %v3499_v2 }
 0xb94 PF: > { %s6120_s4 = sld [smem:[#allocation13_spill]]  ;;  %s4818_s24 = smov [#allocation7]  }
 0xb95   : > { %s3511_s25 = sshll.u32 %s4818_s24, 4  ;;  %s3512_s25 = int_to_ptr.vmem [resolvable:$true] %s3511_s25 }
 0xb96   : > { %s4722_s2 = scalar_lea.vmem %s3512_s25, 32  ;;  %p4729_p10 = scmp.lt.s32.totalorder %s3512_s25, %s3512_s25 }
 0xb97   : > { %p4723_p7 = scmp.ne.s32.totalorder %s3512_s25, %s4722_s2  ;;  %p4730_p11 = scmp.lt.s32.totalorder %s4722_s2, %s4722_s2 }
 0xb99   : > { %p4731_p12 = por %p4730_p11, %p4729_p10 }
 0xb9a   : > { %s6121_s23 = sadd.s32 4294967295, %s6120_s4  }
 0xb9b   : > { %p5971_p6 = scmp.eq.s32.totalorder %s6121_s23, 7 }
 0xb9d   : > { %p4724_p8 = pnand %p4723_p7, %p5971_p6 }
 0xb9f   : > { %p4725_p9 = pneg %p4724_p8 }
 0xba1   : > { %p4732_p13 = pnand %p4731_p12, %p4725_p9 }
 0xba3   : > { %4735 = shalt.err (!%p4732_p13)
}
 0xba4   : > { %s6123_s6 = sld [smem:[#allocation36_spill]] }
 0xbaa   : > { %s4736_s17 = scalar_lea.hbm %s6123_s6, 32 }
 0xbab   : > { %p4737_p0 = scmp.ne.s32.totalorder %s6123_s6, %s4736_s17  ;;  %p4742_p3 = scmp.lt.u32.totalorder %s4736_s17, %s6123_s6 }
 0xbad   : > { %p4738_p1 = pnand %p4737_p0, %p5971_p6 }
 0xbaf   : > { %p4739_p2 = pneg %p4738_p1 }
 0xbb1   : > { %p4744_p4 = pnand %p4742_p3, %p4739_p2 }
 0xbb3   : > { %4747 = shalt.err (!%p4744_p4)
}
 0xbb4   : > { %4521 = dma.vmem_to_hbm [thread:$0]  (%p5971_p6), %s3512_s25, 32, %s6123_s6, [#allocation8]  }
 0xbb5   : > { %4777 = dma.done.wait (%p5971_p6), [#allocation8], 32  }
 0xbb6   : > { %4779 = vsyncadd (%p5971_p6), [#allocation8], 4294967264 }
 0xbb7 PF: > { %s6124_s30 = sld [smem:[#allocation13_spill]]  ;;  %s6125_s3 = sld [smem:[#allocation10_spill]] }
 0xbb8   : > { %s6126_s28 = sld [smem:[#allocation16_spill]]  ;;  %s6127_s29 = sld [smem:[#allocation11_spill]] }
 0xbb9   : > { %s6129_s4 = sld [smem:[#allocation14_spill]]  ;;  %s6130_s0 = sld [smem:[#allocation15_spill]] }
 0xbbd   : > { %s33_s23 = sadd.s32 1, %s6124_s30   ;;  %s6128_s30 = sld [smem:[#allocation12_spill]] }
 0xbbe   : > { %p30_p5 = scmp.ge.s32.totalorder %s33_s23, 10  }
 0xbc0   :  { %32 = sbr.rel (!%p30_p5) target bundleno = 22 (0x16), region = 252 }
 0xbc7   :  { %3524 = vsyncpa [#allocation8], 1 }
 0xbc8   :  { %3526 = vsyncpa [#allocation8 + $0x1], 1 }

</bundles_post_ra>
